<compile_context>
chip_gen: v6e
topology: v6e:2x2x1
jax: 0.10.0
libtpu: 0.0.40
codegen_flags: <defaults>
</compile_context>

<pallas_src>
import functools

import jax
import jax.numpy as jnp
from jax.experimental import pallas as pl
from jax.experimental.pallas import tpu as pltpu


def _corr_kernel(f1_ref, f2_ref, out_ref, f2pad_ref, *,
                 W, d, C, HW, pad_rows, c_chunk, tile, hold_f1):
    # f1_ref   : (C, H*W)              feature map 1, spatially flattened
    # f2_ref   : (C, H*W)              feature map 2, spatially flattened
    # out_ref  : (D*D, H*W)            one correlation map per displacement
    # f2pad_ref: (C, (H+2*pad_rows)*W) scratch: vertically zero-padded fm2
    D = 2 * d + 1
    DD = D * D
    PW = pad_rows * W
    Lp = f2pad_ref.shape[-1]

    # ---- Stage feature_map_2 into the vertically zero-padded scratch. ------
    # TODO(synk): DMA feature_map_2 straight into f2pad_ref[:, PW:PW+HW] from
    # an HBM ref (memory_space=pl.ANY + make_async_copy) to drop this
    # VMEM->VMEM copy and the double-buffered f2 input block; needs the
    # lane-offset DMA destination validated on all target chips.
    if PW > 0:
        z = jnp.zeros((c_chunk, PW), jnp.float32)
    for c0 in range(0, C, c_chunk):
        if PW > 0:
            f2pad_ref[c0:c0 + c_chunk, :PW] = z
            f2pad_ref[c0:c0 + c_chunk, PW + HW:Lp] = z
        f2pad_ref[c0:c0 + c_chunk, PW:PW + HW] = f2_ref[c0:c0 + c_chunk, :]

    n_tiles = HW // tile
    for t in range(n_tiles):
        t0 = t * tile

        # Horizontal-validity masks, one per dx, hoisted out of the dy loop.
        # mask[dx][p] is True iff 0 <= (global_col(p) + dx) < W.
        lane = jax.lax.broadcasted_iota(jnp.int32, (1, tile), 1) + t0
        col = lane % W
        masks = {dx: jnp.logical_and(col + dx >= 0, col + dx < W)
                 for dx in range(-d, d + 1)}

        # Register-block feature_map_1 across ALL displacements when it fits
        # in a few vregs; otherwise fall back to per-chunk reloads.
        if hold_f1:
            a_full = f1_ref[:, t0:t0 + tile]          # (C, tile), stays live

        staged = []       # up to 8 finished (1, tile) rows awaiting one store
        k_base = 0
        k = 0
        # Unrolled displacement loop, fully static offsets, lane-dense slices.
        # TODO(synk): at FlowNet-scale C replace the static channel-chunk
        # unroll with lax.fori_loop (bounded live ranges / compile time) and
        # consider bf16 inputs on v6e/v7x.
        for dy in range(-d, d + 1):
            row_off = (dy + pad_rows) * W
            for dx in range(-d, d + 1):
                start = row_off + dx + t0
                # Deferred reduction: accumulate (c_chunk, tile) with VPU adds,
                # ONE cross-sublane sum per displacement at the end.
                acc = None
                for c0 in range(0, C, c_chunk):
                    if hold_f1:
                        a = a_full[c0:c0 + c_chunk]
                    else:
                        a = f1_ref[c0:c0 + c_chunk, t0:t0 + tile]
                    b = f2pad_ref[c0:c0 + c_chunk, start:start + tile]
                    prod = a * b
                    acc = prod if acc is None else acc + prod
                r = jnp.sum(acc, axis=0, keepdims=True)            # (1, tile)
                # Zero columns whose horizontal shift falls outside [0, W)
                # (these read a wrapped neighbour row; the true value is the
                # zero padding of the torch implementation).
                r = jnp.where(masks[dx], r, jnp.float32(0.0))
                staged.append(r)
                k += 1
                # Batched output stores: full-sublane slabs instead of DD
                # single-row masked stores.
                if len(staged) == 8 or k == DD:
                    if len(staged) == 1:
                        blk = staged[0]
                    else:
                        blk = jnp.concatenate(staged, axis=0)
                    out_ref[k_base:k_base + len(staged), t0:t0 + tile] = blk
                    k_base = k
                    staged = []


def _pick_tile(HW):
    for t in (1024, 512, 256, 128):
        if HW % t == 0:
            return t
    return HW


# TODO(synk): for FlowNet-scale shapes (large C/H/W or max_displacement) add a
# row-tile grid axis with a d-row fm2 halo so blocks + scratch fit v7x's
# 64 MiB VMEM and both v7x TensorCores get work at small N.
def correlation_layer(feature_map_1, feature_map_2, max_displacement=3):
    """Pallas implementation of CorrelationLayer.forward.

    Args:
      feature_map_1: (N, C, H, W) float32
      feature_map_2: (N, C, H, W) float32
    Returns:
      (N, 1, H, W, (2*max_displacement+1)**2) float32
    """
    N, C, H, W = feature_map_1.shape
    d = int(max_displacement)
    D = 2 * d + 1
    DD = D * D
    HW = H * W

    # Vertical halo rows so every shifted flat window stays in bounds:
    #   pad_rows = d + ceil(d / W)
    pad_rows = d + (d + W - 1) // W
    Lp = (H + 2 * pad_rows) * W

    # Free reshapes (contiguous), no data movement.
    f1_flat = feature_map_1.reshape(N, C, HW)
    f2_flat = feature_map_2.reshape(N, C, HW)

    # Spatial lane tile (register-blocking granularity).
    tile = _pick_tile(HW)

    # Channel chunk: divides C, prefers multiples of 8 (f32 sublane), and caps
    # the live (c_chunk, tile) accumulator at roughly 8 vregs.
    max_chunk = min(C, max(8, 8192 // tile))
    divs = [x for x in range(1, max_chunk + 1) if C % x == 0]
    mult8 = [x for x in divs if x % 8 == 0]
    c_chunk = max(mult8) if mult8 else max(divs)

    # Hold the whole (C, tile) f1 slab in vregs across all DD displacements
    # when it is small enough (<= ~16 vregs).
    hold_f1 = (C * tile) <= 16 * 1024

    kernel = functools.partial(
        _corr_kernel, W=W, d=d, C=C, HW=HW, pad_rows=pad_rows,
        c_chunk=c_chunk, tile=tile, hold_f1=hold_f1)

    # Honest VMEM budget: double-buffered input/output blocks + padded scratch.
    dd_pad = ((DD + 7) // 8) * 8
    vmem_needed = (2 * (2 * C * HW) + 2 * dd_pad * HW + C * Lp) * 4 + (2 << 20)
    try:
        phys = int(pltpu.get_tpu_info().vmem_capacity_bytes)
    except Exception:
        phys = 64 * 1024 * 1024            # v7x per-core floor as safe default
    vmem_cap = max(16 << 20, phys - (8 << 20))      # leave compiler headroom
    vmem_limit = int(min(vmem_cap, max(16 << 20, vmem_needed)))

    cost = pl.CostEstimate(
        flops=2 * N * C * HW * DD,
        transcendentals=0,
        bytes_accessed=4 * (2 * N * C * HW + N * DD * HW),
    )

    corr = pl.pallas_call(
        kernel,
        out_shape=jax.ShapeDtypeStruct((N, DD, HW), jnp.float32),
        grid_spec=pltpu.PrefetchScalarGridSpec(
            num_scalar_prefetch=0,
            grid=(N,),
            in_specs=[
                pl.BlockSpec((pl.Squeezed(), C, HW), lambda n: (n, 0, 0)),
                pl.BlockSpec((pl.Squeezed(), C, HW), lambda n: (n, 0, 0)),
            ],
            out_specs=pl.BlockSpec((pl.Squeezed(), DD, HW), lambda n: (n, 0, 0)),
            scratch_shapes=[pltpu.VMEM((C, Lp), jnp.float32)],
        ),
        compiler_params=pltpu.CompilerParams(
            dimension_semantics=("parallel",),
            vmem_limit_bytes=vmem_limit,
        ),
        cost_estimate=cost,
    )(f1_flat, f2_flat)

    # (N, DD, H*W) -> (N, 1, H, W, DD); layout-only, matches torch's
    # .permute(0,2,3,1).unsqueeze(1).  Fold into the consumer in a real model.
    corr = corr.reshape(N, DD, H, W)
    return jnp.transpose(corr, (0, 2, 3, 1))[:, None, :, :, :]


def _reference(feature_map_1, feature_map_2, max_displacement=3):
    """Pure-JAX reference mirroring the PyTorch loop, for correctness check."""
    N, C, H, W = feature_map_1.shape
    d = max_displacement
    fm2p = jnp.pad(feature_map_2, ((0, 0), (0, 0), (d, d), (d, d)))
    maps = []
    for dy in range(-d, d + 1):
        for dx in range(-d, d + 1):
            win = fm2p[:, :, d + dy:d + dy + H, d + dx:d + dx + W]
            maps.append(jnp.sum(feature_map_1 * win, axis=1, keepdims=True))
    vol = jnp.concatenate(maps, axis=1)               # (N, D*D, H, W)
    return jnp.transpose(vol, (0, 2, 3, 1))[:, None]  # (N, 1, H, W, D*D)


if __name__ == "__main__":
    key = jax.random.PRNGKey(0)
    k1, k2 = jax.random.split(key)

    N, C, H, W = 2, 4, 16, 16
    max_displacement = 3  # D*D = 49 for the small example

    fm1 = jax.random.normal(k1, (N, C, H, W), dtype=jnp.float32)
    fm2 = jax.random.normal(k2, (N, C, H, W), dtype=jnp.float32)

    fwd = jax.jit(functools.partial(correlation_layer,
                                    max_displacement=max_displacement))
    out = jax.block_until_ready(fwd(fm1, fm2))

    ref = _reference(fm1, fm2, max_displacement=max_displacement)
    assert out.shape == (N, 1, H, W, (2 * max_displacement + 1) ** 2), out.shape
    assert jnp.allclose(out, ref, atol=1e-5, rtol=1e-5), "mismatch vs reference"

    print("KERNEL_OK")
</pallas_src>

<mosaic_0001>
module attributes {stable_mosaic.version = 11 : i64} {
  func.func @_corr_kernel(%arg0: i32, %arg1: memref<1x4x256xf32, #tpu.memory_space<vmem>>, %arg2: memref<1x4x256xf32, #tpu.memory_space<vmem>>, %arg3: memref<1x49x256xf32, #tpu.memory_space<vmem>>, %arg4: memref<4x384xf32, #tpu.memory_space<vmem>>) attributes {dimension_semantics = [#tpu.dimension_semantics<parallel>], iteration_bounds = array<i64: 2>, scalar_prefetch = 0 : i64, scratch_operands = 1 : i64, tpu.core_type = #tpu.core_type<tc>, window_params = [{transform_indices = @transform_0, window_bounds = array<i64: 1, 4, 256>}, {transform_indices = @transform_1, window_bounds = array<i64: 1, 4, 256>}, {transform_indices = @transform_2, window_bounds = array<i64: 1, 49, 256>}]} {
    %cst = arith.constant 0.000000e+00 : f32
    %0 = vector.broadcast %cst : f32 to vector<4x64xf32>
    %c0 = arith.constant 0 : index
    %c0_0 = arith.constant 0 : index
    %1 = vector.load %arg4[%c0, %c0_0] : memref<4x384xf32, #tpu.memory_space<vmem>>, vector<4x64xf32>
    tpu.vector_store %arg4[%c0, %c0_0], %0 {strides = array<i32>} : memref<4x384xf32, #tpu.memory_space<vmem>>, vector<4x64xf32>,
    %c0_1 = arith.constant 0 : index
    %c320 = arith.constant 320 : index
    %2 = vector.load %arg4[%c0_1, %c320] : memref<4x384xf32, #tpu.memory_space<vmem>>, vector<4x64xf32>
    tpu.vector_store %arg4[%c0_1, %c320], %0 {strides = array<i32>} : memref<4x384xf32, #tpu.memory_space<vmem>>, vector<4x64xf32>,
    %c0_2 = arith.constant 0 : index
    %c0_3 = arith.constant 0 : index
    %c0_4 = arith.constant 0 : index
    %3 = vector.load %arg2[%c0_2, %c0_3, %c0_4] : memref<1x4x256xf32, #tpu.memory_space<vmem>>, vector<1x4x256xf32>
    %4 = vector.shape_cast %3 : vector<1x4x256xf32> to vector<4x256xf32>
    %c0_5 = arith.constant 0 : index
    %c64 = arith.constant 64 : index
    %5 = vector.load %arg4[%c0_5, %c64] : memref<4x384xf32, #tpu.memory_space<vmem>>, vector<4x256xf32>
    tpu.vector_store %arg4[%c0_5, %c64], %4 {strides = array<i32>} : memref<4x384xf32, #tpu.memory_space<vmem>>, vector<4x256xf32>,
    %6 = tpu.iota {dimensions = array<i32: 1>} : vector<1x256xi32>
    %c0_i32 = arith.constant 0 : i32
    %7 = vector.broadcast %c0_i32 : i32 to vector<1x256xi32>
    %8 = arith.addi %6, %7 : vector<1x256xi32>
    %c16_i32 = arith.constant 16 : i32
    %c0_i32_6 = arith.constant 0 : i32
    %9 = arith.cmpi eq, %c16_i32, %c0_i32_6 : i32
    %c1_i32 = arith.constant 1 : i32
    %10 = arith.select %9, %c1_i32, %c16_i32 : i32
    %11 = vector.broadcast %10 : i32 to vector<1x256xi32>
    %12 = arith.remsi %8, %11 : vector<1x256xi32>
    %c0_i32_7 = arith.constant 0 : i32
    %13 = vector.broadcast %c0_i32_7 : i32 to vector<1x256xi32>
    %14 = arith.cmpi ne, %12, %13 : vector<1x256xi32>
    %c0_i32_8 = arith.constant 0 : i32
    %15 = vector.broadcast %c0_i32_8 : i32 to vector<1x256xi32>
    %16 = arith.cmpi slt, %12, %15 : vector<1x256xi32>
    %c0_i32_9 = arith.constant 0 : i32
    %17 = arith.cmpi slt, %10, %c0_i32_9 : i32
    %18 = vector.broadcast %17 : i1 to vector<1x256xi1>
    %19 = vector.broadcast %18 : vector<1x256xi1> to vector<1x256xi1>
    %20 = arith.xori %16, %19 : vector<1x256xi1>
    %21 = arith.andi %20, %14 : vector<1x256xi1>
    %22 = vector.broadcast %10 : i32 to vector<1x256xi32>
    %23 = arith.addi %12, %22 : vector<1x256xi32>
    %24 = arith.select %21, %23, %12 : vector<1x256xi1>, vector<1x256xi32>
    %c-3_i32 = arith.constant -3 : i32
    %25 = vector.broadcast %c-3_i32 : i32 to vector<1x256xi32>
    %26 = arith.addi %24, %25 : vector<1x256xi32>
    %c0_i32_10 = arith.constant 0 : i32
    %27 = vector.broadcast %c0_i32_10 : i32 to vector<1x256xi32>
    %28 = arith.cmpi sge, %26, %27 : vector<1x256xi32>
    %c-3_i32_11 = arith.constant -3 : i32
    %29 = vector.broadcast %c-3_i32_11 : i32 to vector<1x256xi32>
    %30 = arith.addi %24, %29 : vector<1x256xi32>
    %c16_i32_12 = arith.constant 16 : i32
    %31 = vector.broadcast %c16_i32_12 : i32 to vector<1x256xi32>
    %32 = arith.cmpi slt, %30, %31 : vector<1x256xi32>
    %33 = arith.andi %28, %32 : vector<1x256xi1>
    %c-2_i32 = arith.constant -2 : i32
    %34 = vector.broadcast %c-2_i32 : i32 to vector<1x256xi32>
    %35 = arith.addi %24, %34 : vector<1x256xi32>
    %c0_i32_13 = arith.constant 0 : i32
    %36 = vector.broadcast %c0_i32_13 : i32 to vector<1x256xi32>
    %37 = arith.cmpi sge, %35, %36 : vector<1x256xi32>
    %c-2_i32_14 = arith.constant -2 : i32
    %38 = vector.broadcast %c-2_i32_14 : i32 to vector<1x256xi32>
    %39 = arith.addi %24, %38 : vector<1x256xi32>
    %c16_i32_15 = arith.constant 16 : i32
    %40 = vector.broadcast %c16_i32_15 : i32 to vector<1x256xi32>
    %41 = arith.cmpi slt, %39, %40 : vector<1x256xi32>
    %42 = arith.andi %37, %41 : vector<1x256xi1>
    %c-1_i32 = arith.constant -1 : i32
    %43 = vector.broadcast %c-1_i32 : i32 to vector<1x256xi32>
    %44 = arith.addi %24, %43 : vector<1x256xi32>
    %c0_i32_16 = arith.constant 0 : i32
    %45 = vector.broadcast %c0_i32_16 : i32 to vector<1x256xi32>
    %46 = arith.cmpi sge, %44, %45 : vector<1x256xi32>
    %c-1_i32_17 = arith.constant -1 : i32
    %47 = vector.broadcast %c-1_i32_17 : i32 to vector<1x256xi32>
    %48 = arith.addi %24, %47 : vector<1x256xi32>
    %c16_i32_18 = arith.constant 16 : i32
    %49 = vector.broadcast %c16_i32_18 : i32 to vector<1x256xi32>
    %50 = arith.cmpi slt, %48, %49 : vector<1x256xi32>
    %51 = arith.andi %46, %50 : vector<1x256xi1>
    %c0_i32_19 = arith.constant 0 : i32
    %52 = vector.broadcast %c0_i32_19 : i32 to vector<1x256xi32>
    %53 = arith.addi %24, %52 : vector<1x256xi32>
    %c0_i32_20 = arith.constant 0 : i32
    %54 = vector.broadcast %c0_i32_20 : i32 to vector<1x256xi32>
    %55 = arith.cmpi sge, %53, %54 : vector<1x256xi32>
    %c0_i32_21 = arith.constant 0 : i32
    %56 = vector.broadcast %c0_i32_21 : i32 to vector<1x256xi32>
    %57 = arith.addi %24, %56 : vector<1x256xi32>
    %c16_i32_22 = arith.constant 16 : i32
    %58 = vector.broadcast %c16_i32_22 : i32 to vector<1x256xi32>
    %59 = arith.cmpi slt, %57, %58 : vector<1x256xi32>
    %60 = arith.andi %55, %59 : vector<1x256xi1>
    %c1_i32_23 = arith.constant 1 : i32
    %61 = vector.broadcast %c1_i32_23 : i32 to vector<1x256xi32>
    %62 = arith.addi %24, %61 : vector<1x256xi32>
    %c0_i32_24 = arith.constant 0 : i32
    %63 = vector.broadcast %c0_i32_24 : i32 to vector<1x256xi32>
    %64 = arith.cmpi sge, %62, %63 : vector<1x256xi32>
    %c1_i32_25 = arith.constant 1 : i32
    %65 = vector.broadcast %c1_i32_25 : i32 to vector<1x256xi32>
    %66 = arith.addi %24, %65 : vector<1x256xi32>
    %c16_i32_26 = arith.constant 16 : i32
    %67 = vector.broadcast %c16_i32_26 : i32 to vector<1x256xi32>
    %68 = arith.cmpi slt, %66, %67 : vector<1x256xi32>
    %69 = arith.andi %64, %68 : vector<1x256xi1>
    %c2_i32 = arith.constant 2 : i32
    %70 = vector.broadcast %c2_i32 : i32 to vector<1x256xi32>
    %71 = arith.addi %24, %70 : vector<1x256xi32>
    %c0_i32_27 = arith.constant 0 : i32
    %72 = vector.broadcast %c0_i32_27 : i32 to vector<1x256xi32>
    %73 = arith.cmpi sge, %71, %72 : vector<1x256xi32>
    %c2_i32_28 = arith.constant 2 : i32
    %74 = vector.broadcast %c2_i32_28 : i32 to vector<1x256xi32>
    %75 = arith.addi %24, %74 : vector<1x256xi32>
    %c16_i32_29 = arith.constant 16 : i32
    %76 = vector.broadcast %c16_i32_29 : i32 to vector<1x256xi32>
    %77 = arith.cmpi slt, %75, %76 : vector<1x256xi32>
    %78 = arith.andi %73, %77 : vector<1x256xi1>
    %c3_i32 = arith.constant 3 : i32
    %79 = vector.broadcast %c3_i32 : i32 to vector<1x256xi32>
    %80 = arith.addi %24, %79 : vector<1x256xi32>
    %c0_i32_30 = arith.constant 0 : i32
    %81 = vector.broadcast %c0_i32_30 : i32 to vector<1x256xi32>
    %82 = arith.cmpi sge, %80, %81 : vector<1x256xi32>
    %c3_i32_31 = arith.constant 3 : i32
    %83 = vector.broadcast %c3_i32_31 : i32 to vector<1x256xi32>
    %84 = arith.addi %24, %83 : vector<1x256xi32>
    %c16_i32_32 = arith.constant 16 : i32
    %85 = vector.broadcast %c16_i32_32 : i32 to vector<1x256xi32>
    %86 = arith.cmpi slt, %84, %85 : vector<1x256xi32>
    %87 = arith.andi %82, %86 : vector<1x256xi1>
    %c0_33 = arith.constant 0 : index
    %c0_34 = arith.constant 0 : index
    %c0_35 = arith.constant 0 : index
    %88 = vector.load %arg1[%c0_33, %c0_34, %c0_35] : memref<1x4x256xf32, #tpu.memory_space<vmem>>, vector<1x4x256xf32>
    %89 = vector.shape_cast %88 : vector<1x4x256xf32> to vector<4x256xf32>
    %c0_36 = arith.constant 0 : index
    %c13 = arith.constant 13 : index
    %90 = vector.load %arg4[%c0_36, %c13] : memref<4x384xf32, #tpu.memory_space<vmem>>, vector<4x256xf32>
    %91 = arith.mulf %89, %90 : vector<4x256xf32>
    %cst_37 = arith.constant dense<0.000000e+00> : vector<256xf32>
    %92 = vector.multi_reduction <add>, %91, %cst_37 [0] : vector<4x256xf32> to vector<256xf32>
    %93 = vector.shape_cast %92 : vector<256xf32> to vector<1x256xf32>
    %cst_38 = arith.constant 0.000000e+00 : f32
    %94 = vector.broadcast %cst_38 : f32 to vector<1x256xf32>
    %95 = arith.select %33, %93, %94 : vector<1x256xi1>, vector<1x256xf32>
    %c0_39 = arith.constant 0 : index
    %c14 = arith.constant 14 : index
    %96 = vector.load %arg4[%c0_39, %c14] : memref<4x384xf32, #tpu.memory_space<vmem>>, vector<4x256xf32>
    %97 = arith.mulf %89, %96 : vector<4x256xf32>
    %cst_40 = arith.constant dense<0.000000e+00> : vector<256xf32>
    %98 = vector.multi_reduction <add>, %97, %cst_40 [0] : vector<4x256xf32> to vector<256xf32>
    %99 = vector.shape_cast %98 : vector<256xf32> to vector<1x256xf32>
    %cst_41 = arith.constant 0.000000e+00 : f32
    %100 = vector.broadcast %cst_41 : f32 to vector<1x256xf32>
    %101 = arith.select %42, %99, %100 : vector<1x256xi1>, vector<1x256xf32>
    %c0_42 = arith.constant 0 : index
    %c15 = arith.constant 15 : index
    %102 = vector.load %arg4[%c0_42, %c15] : memref<4x384xf32, #tpu.memory_space<vmem>>, vector<4x256xf32>
    %103 = arith.mulf %89, %102 : vector<4x256xf32>
    %cst_43 = arith.constant dense<0.000000e+00> : vector<256xf32>
    %104 = vector.multi_reduction <add>, %103, %cst_43 [0] : vector<4x256xf32> to vector<256xf32>
    %105 = vector.shape_cast %104 : vector<256xf32> to vector<1x256xf32>
    %cst_44 = arith.constant 0.000000e+00 : f32
    %106 = vector.broadcast %cst_44 : f32 to vector<1x256xf32>
    %107 = arith.select %51, %105, %106 : vector<1x256xi1>, vector<1x256xf32>
    %c0_45 = arith.constant 0 : index
    %c16 = arith.constant 16 : index
    %108 = vector.load %arg4[%c0_45, %c16] : memref<4x384xf32, #tpu.memory_space<vmem>>, vector<4x256xf32>
    %109 = arith.mulf %89, %108 : vector<4x256xf32>
    %cst_46 = arith.constant dense<0.000000e+00> : vector<256xf32>
    %110 = vector.multi_reduction <add>, %109, %cst_46 [0] : vector<4x256xf32> to vector<256xf32>
    %111 = vector.shape_cast %110 : vector<256xf32> to vector<1x256xf32>
    %cst_47 = arith.constant 0.000000e+00 : f32
    %112 = vector.broadcast %cst_47 : f32 to vector<1x256xf32>
    %113 = arith.select %60, %111, %112 : vector<1x256xi1>, vector<1x256xf32>
    %c0_48 = arith.constant 0 : index
    %c17 = arith.constant 17 : index
    %114 = vector.load %arg4[%c0_48, %c17] : memref<4x384xf32, #tpu.memory_space<vmem>>, vector<4x256xf32>
    %115 = arith.mulf %89, %114 : vector<4x256xf32>
    %cst_49 = arith.constant dense<0.000000e+00> : vector<256xf32>
    %116 = vector.multi_reduction <add>, %115, %cst_49 [0] : vector<4x256xf32> to vector<256xf32>
    %117 = vector.shape_cast %116 : vector<256xf32> to vector<1x256xf32>
    %cst_50 = arith.constant 0.000000e+00 : f32
    %118 = vector.broadcast %cst_50 : f32 to vector<1x256xf32>
    %119 = arith.select %69, %117, %118 : vector<1x256xi1>, vector<1x256xf32>
    %c0_51 = arith.constant 0 : index
    %c18 = arith.constant 18 : index
    %120 = vector.load %arg4[%c0_51, %c18] : memref<4x384xf32, #tpu.memory_space<vmem>>, vector<4x256xf32>
    %121 = arith.mulf %89, %120 : vector<4x256xf32>
    %cst_52 = arith.constant dense<0.000000e+00> : vector<256xf32>
    %122 = vector.multi_reduction <add>, %121, %cst_52 [0] : vector<4x256xf32> to vector<256xf32>
    %123 = vector.shape_cast %122 : vector<256xf32> to vector<1x256xf32>
    %cst_53 = arith.constant 0.000000e+00 : f32
    %124 = vector.broadcast %cst_53 : f32 to vector<1x256xf32>
    %125 = arith.select %78, %123, %124 : vector<1x256xi1>, vector<1x256xf32>
    %c0_54 = arith.constant 0 : index
    %c19 = arith.constant 19 : index
    %126 = vector.load %arg4[%c0_54, %c19] : memref<4x384xf32, #tpu.memory_space<vmem>>, vector<4x256xf32>
    %127 = arith.mulf %89, %126 : vector<4x256xf32>
    %cst_55 = arith.constant dense<0.000000e+00> : vector<256xf32>
    %128 = vector.multi_reduction <add>, %127, %cst_55 [0] : vector<4x256xf32> to vector<256xf32>
    %129 = vector.shape_cast %128 : vector<256xf32> to vector<1x256xf32>
    %cst_56 = arith.constant 0.000000e+00 : f32
    %130 = vector.broadcast %cst_56 : f32 to vector<1x256xf32>
    %131 = arith.select %87, %129, %130 : vector<1x256xi1>, vector<1x256xf32>
    %c0_57 = arith.constant 0 : index
    %c29 = arith.constant 29 : index
    %132 = vector.load %arg4[%c0_57, %c29] : memref<4x384xf32, #tpu.memory_space<vmem>>, vector<4x256xf32>
    %133 = arith.mulf %89, %132 : vector<4x256xf32>
    %cst_58 = arith.constant dense<0.000000e+00> : vector<256xf32>
    %134 = vector.multi_reduction <add>, %133, %cst_58 [0] : vector<4x256xf32> to vector<256xf32>
    %135 = vector.shape_cast %134 : vector<256xf32> to vector<1x256xf32>
    %cst_59 = arith.constant 0.000000e+00 : f32
    %136 = vector.broadcast %cst_59 : f32 to vector<1x256xf32>
    %137 = arith.select %33, %135, %136 : vector<1x256xi1>, vector<1x256xf32>
    %138 = tpu.concatenate %95, %101, %107, %113, %119, %125, %131, %137 in 0 : vector<1x256xf32>, vector<1x256xf32>, vector<1x256xf32>, vector<1x256xf32>, vector<1x256xf32>, vector<1x256xf32>, vector<1x256xf32>, vector<1x256xf32> -> vector<8x256xf32>
    %c0_60 = arith.constant 0 : index
    %c0_61 = arith.constant 0 : index
    %c0_62 = arith.constant 0 : index
    %139 = vector.load %arg3[%c0_60, %c0_61, %c0_62] : memref<1x49x256xf32, #tpu.memory_space<vmem>>, vector<1x8x256xf32>
    %140 = vector.shape_cast %139 : vector<1x8x256xf32> to vector<8x256xf32>
    %141 = vector.shape_cast %138 : vector<8x256xf32> to vector<1x8x256xf32>
    tpu.vector_store %arg3[%c0_60, %c0_61, %c0_62], %141 {strides = array<i32>} : memref<1x49x256xf32, #tpu.memory_space<vmem>>, vector<1x8x256xf32>,
    %c0_63 = arith.constant 0 : index
    %c30 = arith.constant 30 : index
    %142 = vector.load %arg4[%c0_63, %c30] : memref<4x384xf32, #tpu.memory_space<vmem>>, vector<4x256xf32>
    %143 = arith.mulf %89, %142 : vector<4x256xf32>
    %cst_64 = arith.constant dense<0.000000e+00> : vector<256xf32>
    %144 = vector.multi_reduction <add>, %143, %cst_64 [0] : vector<4x256xf32> to vector<256xf32>
    %145 = vector.shape_cast %144 : vector<256xf32> to vector<1x256xf32>
    %cst_65 = arith.constant 0.000000e+00 : f32
    %146 = vector.broadcast %cst_65 : f32 to vector<1x256xf32>
    %147 = arith.select %42, %145, %146 : vector<1x256xi1>, vector<1x256xf32>
    %c0_66 = arith.constant 0 : index
    %c31 = arith.constant 31 : index
    %148 = vector.load %arg4[%c0_66, %c31] : memref<4x384xf32, #tpu.memory_space<vmem>>, vector<4x256xf32>
    %149 = arith.mulf %89, %148 : vector<4x256xf32>
    %cst_67 = arith.constant dense<0.000000e+00> : vector<256xf32>
    %150 = vector.multi_reduction <add>, %149, %cst_67 [0] : vector<4x256xf32> to vector<256xf32>
    %151 = vector.shape_cast %150 : vector<256xf32> to vector<1x256xf32>
    %cst_68 = arith.constant 0.000000e+00 : f32
    %152 = vector.broadcast %cst_68 : f32 to vector<1x256xf32>
    %153 = arith.select %51, %151, %152 : vector<1x256xi1>, vector<1x256xf32>
    %c0_69 = arith.constant 0 : index
    %c32 = arith.constant 32 : index
    %154 = vector.load %arg4[%c0_69, %c32] : memref<4x384xf32, #tpu.memory_space<vmem>>, vector<4x256xf32>
    %155 = arith.mulf %89, %154 : vector<4x256xf32>
    %cst_70 = arith.constant dense<0.000000e+00> : vector<256xf32>
    %156 = vector.multi_reduction <add>, %155, %cst_70 [0] : vector<4x256xf32> to vector<256xf32>
    %157 = vector.shape_cast %156 : vector<256xf32> to vector<1x256xf32>
    %cst_71 = arith.constant 0.000000e+00 : f32
    %158 = vector.broadcast %cst_71 : f32 to vector<1x256xf32>
    %159 = arith.select %60, %157, %158 : vector<1x256xi1>, vector<1x256xf32>
    %c0_72 = arith.constant 0 : index
    %c33 = arith.constant 33 : index
    %160 = vector.load %arg4[%c0_72, %c33] : memref<4x384xf32, #tpu.memory_space<vmem>>, vector<4x256xf32>
    %161 = arith.mulf %89, %160 : vector<4x256xf32>
    %cst_73 = arith.constant dense<0.000000e+00> : vector<256xf32>
    %162 = vector.multi_reduction <add>, %161, %cst_73 [0] : vector<4x256xf32> to vector<256xf32>
    %163 = vector.shape_cast %162 : vector<256xf32> to vector<1x256xf32>
    %cst_74 = arith.constant 0.000000e+00 : f32
    %164 = vector.broadcast %cst_74 : f32 to vector<1x256xf32>
    %165 = arith.select %69, %163, %164 : vector<1x256xi1>, vector<1x256xf32>
    %c0_75 = arith.constant 0 : index
    %c34 = arith.constant 34 : index
    %166 = vector.load %arg4[%c0_75, %c34] : memref<4x384xf32, #tpu.memory_space<vmem>>, vector<4x256xf32>
    %167 = arith.mulf %89, %166 : vector<4x256xf32>
    %cst_76 = arith.constant dense<0.000000e+00> : vector<256xf32>
    %168 = vector.multi_reduction <add>, %167, %cst_76 [0] : vector<4x256xf32> to vector<256xf32>
    %169 = vector.shape_cast %168 : vector<256xf32> to vector<1x256xf32>
    %cst_77 = arith.constant 0.000000e+00 : f32
    %170 = vector.broadcast %cst_77 : f32 to vector<1x256xf32>
    %171 = arith.select %78, %169, %170 : vector<1x256xi1>, vector<1x256xf32>
    %c0_78 = arith.constant 0 : index
    %c35 = arith.constant 35 : index
    %172 = vector.load %arg4[%c0_78, %c35] : memref<4x384xf32, #tpu.memory_space<vmem>>, vector<4x256xf32>
    %173 = arith.mulf %89, %172 : vector<4x256xf32>
    %cst_79 = arith.constant dense<0.000000e+00> : vector<256xf32>
    %174 = vector.multi_reduction <add>, %173, %cst_79 [0] : vector<4x256xf32> to vector<256xf32>
    %175 = vector.shape_cast %174 : vector<256xf32> to vector<1x256xf32>
    %cst_80 = arith.constant 0.000000e+00 : f32
    %176 = vector.broadcast %cst_80 : f32 to vector<1x256xf32>
    %177 = arith.select %87, %175, %176 : vector<1x256xi1>, vector<1x256xf32>
    %c0_81 = arith.constant 0 : index
    %c45 = arith.constant 45 : index
    %178 = vector.load %arg4[%c0_81, %c45] : memref<4x384xf32, #tpu.memory_space<vmem>>, vector<4x256xf32>
    %179 = arith.mulf %89, %178 : vector<4x256xf32>
    %cst_82 = arith.constant dense<0.000000e+00> : vector<256xf32>
    %180 = vector.multi_reduction <add>, %179, %cst_82 [0] : vector<4x256xf32> to vector<256xf32>
    %181 = vector.shape_cast %180 : vector<256xf32> to vector<1x256xf32>
    %cst_83 = arith.constant 0.000000e+00 : f32
    %182 = vector.broadcast %cst_83 : f32 to vector<1x256xf32>
    %183 = arith.select %33, %181, %182 : vector<1x256xi1>, vector<1x256xf32>
    %c0_84 = arith.constant 0 : index
    %c46 = arith.constant 46 : index
    %184 = vector.load %arg4[%c0_84, %c46] : memref<4x384xf32, #tpu.memory_space<vmem>>, vector<4x256xf32>
    %185 = arith.mulf %89, %184 : vector<4x256xf32>
    %cst_85 = arith.constant dense<0.000000e+00> : vector<256xf32>
    %186 = vector.multi_reduction <add>, %185, %cst_85 [0] : vector<4x256xf32> to vector<256xf32>
    %187 = vector.shape_cast %186 : vector<256xf32> to vector<1x256xf32>
    %cst_86 = arith.constant 0.000000e+00 : f32
    %188 = vector.broadcast %cst_86 : f32 to vector<1x256xf32>
    %189 = arith.select %42, %187, %188 : vector<1x256xi1>, vector<1x256xf32>
    %190 = tpu.concatenate %147, %153, %159, %165, %171, %177, %183, %189 in 0 : vector<1x256xf32>, vector<1x256xf32>, vector<1x256xf32>, vector<1x256xf32>, vector<1x256xf32>, vector<1x256xf32>, vector<1x256xf32>, vector<1x256xf32> -> vector<8x256xf32>
    %c0_87 = arith.constant 0 : index
    %c8 = arith.constant 8 : index
    %c0_88 = arith.constant 0 : index
    %191 = vector.load %arg3[%c0_87, %c8, %c0_88] : memref<1x49x256xf32, #tpu.memory_space<vmem>>, vector<1x8x256xf32>
    %192 = vector.shape_cast %191 : vector<1x8x256xf32> to vector<8x256xf32>
    %193 = vector.shape_cast %190 : vector<8x256xf32> to vector<1x8x256xf32>
    tpu.vector_store %arg3[%c0_87, %c8, %c0_88], %193 {strides = array<i32>} : memref<1x49x256xf32, #tpu.memory_space<vmem>>, vector<1x8x256xf32>,
    %c0_89 = arith.constant 0 : index
    %c47 = arith.constant 47 : index
    %194 = vector.load %arg4[%c0_89, %c47] : memref<4x384xf32, #tpu.memory_space<vmem>>, vector<4x256xf32>
    %195 = arith.mulf %89, %194 : vector<4x256xf32>
    %cst_90 = arith.constant dense<0.000000e+00> : vector<256xf32>
    %196 = vector.multi_reduction <add>, %195, %cst_90 [0] : vector<4x256xf32> to vector<256xf32>
    %197 = vector.shape_cast %196 : vector<256xf32> to vector<1x256xf32>
    %cst_91 = arith.constant 0.000000e+00 : f32
    %198 = vector.broadcast %cst_91 : f32 to vector<1x256xf32>
    %199 = arith.select %51, %197, %198 : vector<1x256xi1>, vector<1x256xf32>
    %c0_92 = arith.constant 0 : index
    %c48 = arith.constant 48 : index
    %200 = vector.load %arg4[%c0_92, %c48] : memref<4x384xf32, #tpu.memory_space<vmem>>, vector<4x256xf32>
    %201 = arith.mulf %89, %200 : vector<4x256xf32>
    %cst_93 = arith.constant dense<0.000000e+00> : vector<256xf32>
    %202 = vector.multi_reduction <add>, %201, %cst_93 [0] : vector<4x256xf32> to vector<256xf32>
    %203 = vector.shape_cast %202 : vector<256xf32> to vector<1x256xf32>
    %cst_94 = arith.constant 0.000000e+00 : f32
    %204 = vector.broadcast %cst_94 : f32 to vector<1x256xf32>
    %205 = arith.select %60, %203, %204 : vector<1x256xi1>, vector<1x256xf32>
    %c0_95 = arith.constant 0 : index
    %c49 = arith.constant 49 : index
    %206 = vector.load %arg4[%c0_95, %c49] : memref<4x384xf32, #tpu.memory_space<vmem>>, vector<4x256xf32>
    %207 = arith.mulf %89, %206 : vector<4x256xf32>
    %cst_96 = arith.constant dense<0.000000e+00> : vector<256xf32>
    %208 = vector.multi_reduction <add>, %207, %cst_96 [0] : vector<4x256xf32> to vector<256xf32>
    %209 = vector.shape_cast %208 : vector<256xf32> to vector<1x256xf32>
    %cst_97 = arith.constant 0.000000e+00 : f32
    %210 = vector.broadcast %cst_97 : f32 to vector<1x256xf32>
    %211 = arith.select %69, %209, %210 : vector<1x256xi1>, vector<1x256xf32>
    %c0_98 = arith.constant 0 : index
    %c50 = arith.constant 50 : index
    %212 = vector.load %arg4[%c0_98, %c50] : memref<4x384xf32, #tpu.memory_space<vmem>>, vector<4x256xf32>
    %213 = arith.mulf %89, %212 : vector<4x256xf32>
    %cst_99 = arith.constant dense<0.000000e+00> : vector<256xf32>
    %214 = vector.multi_reduction <add>, %213, %cst_99 [0] : vector<4x256xf32> to vector<256xf32>
    %215 = vector.shape_cast %214 : vector<256xf32> to vector<1x256xf32>
    %cst_100 = arith.constant 0.000000e+00 : f32
    %216 = vector.broadcast %cst_100 : f32 to vector<1x256xf32>
    %217 = arith.select %78, %215, %216 : vector<1x256xi1>, vector<1x256xf32>
    %c0_101 = arith.constant 0 : index
    %c51 = arith.constant 51 : index
    %218 = vector.load %arg4[%c0_101, %c51] : memref<4x384xf32, #tpu.memory_space<vmem>>, vector<4x256xf32>
    %219 = arith.mulf %89, %218 : vector<4x256xf32>
    %cst_102 = arith.constant dense<0.000000e+00> : vector<256xf32>
    %220 = vector.multi_reduction <add>, %219, %cst_102 [0] : vector<4x256xf32> to vector<256xf32>
    %221 = vector.shape_cast %220 : vector<256xf32> to vector<1x256xf32>
    %cst_103 = arith.constant 0.000000e+00 : f32
    %222 = vector.broadcast %cst_103 : f32 to vector<1x256xf32>
    %223 = arith.select %87, %221, %222 : vector<1x256xi1>, vector<1x256xf32>
    %c0_104 = arith.constant 0 : index
    %c61 = arith.constant 61 : index
    %224 = vector.load %arg4[%c0_104, %c61] : memref<4x384xf32, #tpu.memory_space<vmem>>, vector<4x256xf32>
    %225 = arith.mulf %89, %224 : vector<4x256xf32>
    %cst_105 = arith.constant dense<0.000000e+00> : vector<256xf32>
    %226 = vector.multi_reduction <add>, %225, %cst_105 [0] : vector<4x256xf32> to vector<256xf32>
    %227 = vector.shape_cast %226 : vector<256xf32> to vector<1x256xf32>
    %cst_106 = arith.constant 0.000000e+00 : f32
    %228 = vector.broadcast %cst_106 : f32 to vector<1x256xf32>
    %229 = arith.select %33, %227, %228 : vector<1x256xi1>, vector<1x256xf32>
    %c0_107 = arith.constant 0 : index
    %c62 = arith.constant 62 : index
    %230 = vector.load %arg4[%c0_107, %c62] : memref<4x384xf32, #tpu.memory_space<vmem>>, vector<4x256xf32>
    %231 = arith.mulf %89, %230 : vector<4x256xf32>
    %cst_108 = arith.constant dense<0.000000e+00> : vector<256xf32>
    %232 = vector.multi_reduction <add>, %231, %cst_108 [0] : vector<4x256xf32> to vector<256xf32>
    %233 = vector.shape_cast %232 : vector<256xf32> to vector<1x256xf32>
    %cst_109 = arith.constant 0.000000e+00 : f32
    %234 = vector.broadcast %cst_109 : f32 to vector<1x256xf32>
    %235 = arith.select %42, %233, %234 : vector<1x256xi1>, vector<1x256xf32>
    %c0_110 = arith.constant 0 : index
    %c63 = arith.constant 63 : index
    %236 = vector.load %arg4[%c0_110, %c63] : memref<4x384xf32, #tpu.memory_space<vmem>>, vector<4x256xf32>
    %237 = arith.mulf %89, %236 : vector<4x256xf32>
    %cst_111 = arith.constant dense<0.000000e+00> : vector<256xf32>
    %238 = vector.multi_reduction <add>, %237, %cst_111 [0] : vector<4x256xf32> to vector<256xf32>
    %239 = vector.shape_cast %238 : vector<256xf32> to vector<1x256xf32>
    %cst_112 = arith.constant 0.000000e+00 : f32
    %240 = vector.broadcast %cst_112 : f32 to vector<1x256xf32>
    %241 = arith.select %51, %239, %240 : vector<1x256xi1>, vector<1x256xf32>
    %242 = tpu.concatenate %199, %205, %211, %217, %223, %229, %235, %241 in 0 : vector<1x256xf32>, vector<1x256xf32>, vector<1x256xf32>, vector<1x256xf32>, vector<1x256xf32>, vector<1x256xf32>, vector<1x256xf32>, vector<1x256xf32> -> vector<8x256xf32>
    %c0_113 = arith.constant 0 : index
    %c16_114 = arith.constant 16 : index
    %c0_115 = arith.constant 0 : index
    %243 = vector.load %arg3[%c0_113, %c16_114, %c0_115] : memref<1x49x256xf32, #tpu.memory_space<vmem>>, vector<1x8x256xf32>
    %244 = vector.shape_cast %243 : vector<1x8x256xf32> to vector<8x256xf32>
    %245 = vector.shape_cast %242 : vector<8x256xf32> to vector<1x8x256xf32>
    tpu.vector_store %arg3[%c0_113, %c16_114, %c0_115], %245 {strides = array<i32>} : memref<1x49x256xf32, #tpu.memory_space<vmem>>, vector<1x8x256xf32>,
    %c0_116 = arith.constant 0 : index
    %c64_117 = arith.constant 64 : index
    %246 = vector.load %arg4[%c0_116, %c64_117] : memref<4x384xf32, #tpu.memory_space<vmem>>, vector<4x256xf32>
    %247 = arith.mulf %89, %246 : vector<4x256xf32>
    %cst_118 = arith.constant dense<0.000000e+00> : vector<256xf32>
    %248 = vector.multi_reduction <add>, %247, %cst_118 [0] : vector<4x256xf32> to vector<256xf32>
    %249 = vector.shape_cast %248 : vector<256xf32> to vector<1x256xf32>
    %cst_119 = arith.constant 0.000000e+00 : f32
    %250 = vector.broadcast %cst_119 : f32 to vector<1x256xf32>
    %251 = arith.select %60, %249, %250 : vector<1x256xi1>, vector<1x256xf32>
    %c0_120 = arith.constant 0 : index
    %c65 = arith.constant 65 : index
    %252 = vector.load %arg4[%c0_120, %c65] : memref<4x384xf32, #tpu.memory_space<vmem>>, vector<4x256xf32>
    %253 = arith.mulf %89, %252 : vector<4x256xf32>
    %cst_121 = arith.constant dense<0.000000e+00> : vector<256xf32>
    %254 = vector.multi_reduction <add>, %253, %cst_121 [0] : vector<4x256xf32> to vector<256xf32>
    %255 = vector.shape_cast %254 : vector<256xf32> to vector<1x256xf32>
    %cst_122 = arith.constant 0.000000e+00 : f32
    %256 = vector.broadcast %cst_122 : f32 to vector<1x256xf32>
    %257 = arith.select %69, %255, %256 : vector<1x256xi1>, vector<1x256xf32>
    %c0_123 = arith.constant 0 : index
    %c66 = arith.constant 66 : index
    %258 = vector.load %arg4[%c0_123, %c66] : memref<4x384xf32, #tpu.memory_space<vmem>>, vector<4x256xf32>
    %259 = arith.mulf %89, %258 : vector<4x256xf32>
    %cst_124 = arith.constant dense<0.000000e+00> : vector<256xf32>
    %260 = vector.multi_reduction <add>, %259, %cst_124 [0] : vector<4x256xf32> to vector<256xf32>
    %261 = vector.shape_cast %260 : vector<256xf32> to vector<1x256xf32>
    %cst_125 = arith.constant 0.000000e+00 : f32
    %262 = vector.broadcast %cst_125 : f32 to vector<1x256xf32>
    %263 = arith.select %78, %261, %262 : vector<1x256xi1>, vector<1x256xf32>
    %c0_126 = arith.constant 0 : index
    %c67 = arith.constant 67 : index
    %264 = vector.load %arg4[%c0_126, %c67] : memref<4x384xf32, #tpu.memory_space<vmem>>, vector<4x256xf32>
    %265 = arith.mulf %89, %264 : vector<4x256xf32>
    %cst_127 = arith.constant dense<0.000000e+00> : vector<256xf32>
    %266 = vector.multi_reduction <add>, %265, %cst_127 [0] : vector<4x256xf32> to vector<256xf32>
    %267 = vector.shape_cast %266 : vector<256xf32> to vector<1x256xf32>
    %cst_128 = arith.constant 0.000000e+00 : f32
    %268 = vector.broadcast %cst_128 : f32 to vector<1x256xf32>
    %269 = arith.select %87, %267, %268 : vector<1x256xi1>, vector<1x256xf32>
    %c0_129 = arith.constant 0 : index
    %c77 = arith.constant 77 : index
    %270 = vector.load %arg4[%c0_129, %c77] : memref<4x384xf32, #tpu.memory_space<vmem>>, vector<4x256xf32>
    %271 = arith.mulf %89, %270 : vector<4x256xf32>
    %cst_130 = arith.constant dense<0.000000e+00> : vector<256xf32>
    %272 = vector.multi_reduction <add>, %271, %cst_130 [0] : vector<4x256xf32> to vector<256xf32>
    %273 = vector.shape_cast %272 : vector<256xf32> to vector<1x256xf32>
    %cst_131 = arith.constant 0.000000e+00 : f32
    %274 = vector.broadcast %cst_131 : f32 to vector<1x256xf32>
    %275 = arith.select %33, %273, %274 : vector<1x256xi1>, vector<1x256xf32>
    %c0_132 = arith.constant 0 : index
    %c78 = arith.constant 78 : index
    %276 = vector.load %arg4[%c0_132, %c78] : memref<4x384xf32, #tpu.memory_space<vmem>>, vector<4x256xf32>
    %277 = arith.mulf %89, %276 : vector<4x256xf32>
    %cst_133 = arith.constant dense<0.000000e+00> : vector<256xf32>
    %278 = vector.multi_reduction <add>, %277, %cst_133 [0] : vector<4x256xf32> to vector<256xf32>
    %279 = vector.shape_cast %278 : vector<256xf32> to vector<1x256xf32>
    %cst_134 = arith.constant 0.000000e+00 : f32
    %280 = vector.broadcast %cst_134 : f32 to vector<1x256xf32>
    %281 = arith.select %42, %279, %280 : vector<1x256xi1>, vector<1x256xf32>
    %c0_135 = arith.constant 0 : index
    %c79 = arith.constant 79 : index
    %282 = vector.load %arg4[%c0_135, %c79] : memref<4x384xf32, #tpu.memory_space<vmem>>, vector<4x256xf32>
    %283 = arith.mulf %89, %282 : vector<4x256xf32>
    %cst_136 = arith.constant dense<0.000000e+00> : vector<256xf32>
    %284 = vector.multi_reduction <add>, %283, %cst_136 [0] : vector<4x256xf32> to vector<256xf32>
    %285 = vector.shape_cast %284 : vector<256xf32> to vector<1x256xf32>
    %cst_137 = arith.constant 0.000000e+00 : f32
    %286 = vector.broadcast %cst_137 : f32 to vector<1x256xf32>
    %287 = arith.select %51, %285, %286 : vector<1x256xi1>, vector<1x256xf32>
    %c0_138 = arith.constant 0 : index
    %c80 = arith.constant 80 : index
    %288 = vector.load %arg4[%c0_138, %c80] : memref<4x384xf32, #tpu.memory_space<vmem>>, vector<4x256xf32>
    %289 = arith.mulf %89, %288 : vector<4x256xf32>
    %cst_139 = arith.constant dense<0.000000e+00> : vector<256xf32>
    %290 = vector.multi_reduction <add>, %289, %cst_139 [0] : vector<4x256xf32> to vector<256xf32>
    %291 = vector.shape_cast %290 : vector<256xf32> to vector<1x256xf32>
    %cst_140 = arith.constant 0.000000e+00 : f32
    %292 = vector.broadcast %cst_140 : f32 to vector<1x256xf32>
    %293 = arith.select %60, %291, %292 : vector<1x256xi1>, vector<1x256xf32>
    %294 = tpu.concatenate %251, %257, %263, %269, %275, %281, %287, %293 in 0 : vector<1x256xf32>, vector<1x256xf32>, vector<1x256xf32>, vector<1x256xf32>, vector<1x256xf32>, vector<1x256xf32>, vector<1x256xf32>, vector<1x256xf32> -> vector<8x256xf32>
    %c0_141 = arith.constant 0 : index
    %c24 = arith.constant 24 : index
    %c0_142 = arith.constant 0 : index
    %295 = vector.load %arg3[%c0_141, %c24, %c0_142] : memref<1x49x256xf32, #tpu.memory_space<vmem>>, vector<1x8x256xf32>
    %296 = vector.shape_cast %295 : vector<1x8x256xf32> to vector<8x256xf32>
    %297 = vector.shape_cast %294 : vector<8x256xf32> to vector<1x8x256xf32>
    tpu.vector_store %arg3[%c0_141, %c24, %c0_142], %297 {strides = array<i32>} : memref<1x49x256xf32, #tpu.memory_space<vmem>>, vector<1x8x256xf32>,
    %c0_143 = arith.constant 0 : index
    %c81 = arith.constant 81 : index
    %298 = vector.load %arg4[%c0_143, %c81] : memref<4x384xf32, #tpu.memory_space<vmem>>, vector<4x256xf32>
    %299 = arith.mulf %89, %298 : vector<4x256xf32>
    %cst_144 = arith.constant dense<0.000000e+00> : vector<256xf32>
    %300 = vector.multi_reduction <add>, %299, %cst_144 [0] : vector<4x256xf32> to vector<256xf32>
    %301 = vector.shape_cast %300 : vector<256xf32> to vector<1x256xf32>
    %cst_145 = arith.constant 0.000000e+00 : f32
    %302 = vector.broadcast %cst_145 : f32 to vector<1x256xf32>
    %303 = arith.select %69, %301, %302 : vector<1x256xi1>, vector<1x256xf32>
    %c0_146 = arith.constant 0 : index
    %c82 = arith.constant 82 : index
    %304 = vector.load %arg4[%c0_146, %c82] : memref<4x384xf32, #tpu.memory_space<vmem>>, vector<4x256xf32>
    %305 = arith.mulf %89, %304 : vector<4x256xf32>
    %cst_147 = arith.constant dense<0.000000e+00> : vector<256xf32>
    %306 = vector.multi_reduction <add>, %305, %cst_147 [0] : vector<4x256xf32> to vector<256xf32>
    %307 = vector.shape_cast %306 : vector<256xf32> to vector<1x256xf32>
    %cst_148 = arith.constant 0.000000e+00 : f32
    %308 = vector.broadcast %cst_148 : f32 to vector<1x256xf32>
    %309 = arith.select %78, %307, %308 : vector<1x256xi1>, vector<1x256xf32>
    %c0_149 = arith.constant 0 : index
    %c83 = arith.constant 83 : index
    %310 = vector.load %arg4[%c0_149, %c83] : memref<4x384xf32, #tpu.memory_space<vmem>>, vector<4x256xf32>
    %311 = arith.mulf %89, %310 : vector<4x256xf32>
    %cst_150 = arith.constant dense<0.000000e+00> : vector<256xf32>
    %312 = vector.multi_reduction <add>, %311, %cst_150 [0] : vector<4x256xf32> to vector<256xf32>
    %313 = vector.shape_cast %312 : vector<256xf32> to vector<1x256xf32>
    %cst_151 = arith.constant 0.000000e+00 : f32
    %314 = vector.broadcast %cst_151 : f32 to vector<1x256xf32>
    %315 = arith.select %87, %313, %314 : vector<1x256xi1>, vector<1x256xf32>
    %c0_152 = arith.constant 0 : index
    %c93 = arith.constant 93 : index
    %316 = vector.load %arg4[%c0_152, %c93] : memref<4x384xf32, #tpu.memory_space<vmem>>, vector<4x256xf32>
    %317 = arith.mulf %89, %316 : vector<4x256xf32>
    %cst_153 = arith.constant dense<0.000000e+00> : vector<256xf32>
    %318 = vector.multi_reduction <add>, %317, %cst_153 [0] : vector<4x256xf32> to vector<256xf32>
    %319 = vector.shape_cast %318 : vector<256xf32> to vector<1x256xf32>
    %cst_154 = arith.constant 0.000000e+00 : f32
    %320 = vector.broadcast %cst_154 : f32 to vector<1x256xf32>
    %321 = arith.select %33, %319, %320 : vector<1x256xi1>, vector<1x256xf32>
    %c0_155 = arith.constant 0 : index
    %c94 = arith.constant 94 : index
    %322 = vector.load %arg4[%c0_155, %c94] : memref<4x384xf32, #tpu.memory_space<vmem>>, vector<4x256xf32>
    %323 = arith.mulf %89, %322 : vector<4x256xf32>
    %cst_156 = arith.constant dense<0.000000e+00> : vector<256xf32>
    %324 = vector.multi_reduction <add>, %323, %cst_156 [0] : vector<4x256xf32> to vector<256xf32>
    %325 = vector.shape_cast %324 : vector<256xf32> to vector<1x256xf32>
    %cst_157 = arith.constant 0.000000e+00 : f32
    %326 = vector.broadcast %cst_157 : f32 to vector<1x256xf32>
    %327 = arith.select %42, %325, %326 : vector<1x256xi1>, vector<1x256xf32>
    %c0_158 = arith.constant 0 : index
    %c95 = arith.constant 95 : index
    %328 = vector.load %arg4[%c0_158, %c95] : memref<4x384xf32, #tpu.memory_space<vmem>>, vector<4x256xf32>
    %329 = arith.mulf %89, %328 : vector<4x256xf32>
    %cst_159 = arith.constant dense<0.000000e+00> : vector<256xf32>
    %330 = vector.multi_reduction <add>, %329, %cst_159 [0] : vector<4x256xf32> to vector<256xf32>
    %331 = vector.shape_cast %330 : vector<256xf32> to vector<1x256xf32>
    %cst_160 = arith.constant 0.000000e+00 : f32
    %332 = vector.broadcast %cst_160 : f32 to vector<1x256xf32>
    %333 = arith.select %51, %331, %332 : vector<1x256xi1>, vector<1x256xf32>
    %c0_161 = arith.constant 0 : index
    %c96 = arith.constant 96 : index
    %334 = vector.load %arg4[%c0_161, %c96] : memref<4x384xf32, #tpu.memory_space<vmem>>, vector<4x256xf32>
    %335 = arith.mulf %89, %334 : vector<4x256xf32>
    %cst_162 = arith.constant dense<0.000000e+00> : vector<256xf32>
    %336 = vector.multi_reduction <add>, %335, %cst_162 [0] : vector<4x256xf32> to vector<256xf32>
    %337 = vector.shape_cast %336 : vector<256xf32> to vector<1x256xf32>
    %cst_163 = arith.constant 0.000000e+00 : f32
    %338 = vector.broadcast %cst_163 : f32 to vector<1x256xf32>
    %339 = arith.select %60, %337, %338 : vector<1x256xi1>, vector<1x256xf32>
    %c0_164 = arith.constant 0 : index
    %c97 = arith.constant 97 : index
    %340 = vector.load %arg4[%c0_164, %c97] : memref<4x384xf32, #tpu.memory_space<vmem>>, vector<4x256xf32>
    %341 = arith.mulf %89, %340 : vector<4x256xf32>
    %cst_165 = arith.constant dense<0.000000e+00> : vector<256xf32>
    %342 = vector.multi_reduction <add>, %341, %cst_165 [0] : vector<4x256xf32> to vector<256xf32>
    %343 = vector.shape_cast %342 : vector<256xf32> to vector<1x256xf32>
    %cst_166 = arith.constant 0.000000e+00 : f32
    %344 = vector.broadcast %cst_166 : f32 to vector<1x256xf32>
    %345 = arith.select %69, %343, %344 : vector<1x256xi1>, vector<1x256xf32>
    %346 = tpu.concatenate %303, %309, %315, %321, %327, %333, %339, %345 in 0 : vector<1x256xf32>, vector<1x256xf32>, vector<1x256xf32>, vector<1x256xf32>, vector<1x256xf32>, vector<1x256xf32>, vector<1x256xf32>, vector<1x256xf32> -> vector<8x256xf32>
    %c0_167 = arith.constant 0 : index
    %c32_168 = arith.constant 32 : index
    %c0_169 = arith.constant 0 : index
    %347 = vector.load %arg3[%c0_167, %c32_168, %c0_169] : memref<1x49x256xf32, #tpu.memory_space<vmem>>, vector<1x8x256xf32>
    %348 = vector.shape_cast %347 : vector<1x8x256xf32> to vector<8x256xf32>
    %349 = vector.shape_cast %346 : vector<8x256xf32> to vector<1x8x256xf32>
    tpu.vector_store %arg3[%c0_167, %c32_168, %c0_169], %349 {strides = array<i32>} : memref<1x49x256xf32, #tpu.memory_space<vmem>>, vector<1x8x256xf32>,
    %c0_170 = arith.constant 0 : index
    %c98 = arith.constant 98 : index
    %350 = vector.load %arg4[%c0_170, %c98] : memref<4x384xf32, #tpu.memory_space<vmem>>, vector<4x256xf32>
    %351 = arith.mulf %89, %350 : vector<4x256xf32>
    %cst_171 = arith.constant dense<0.000000e+00> : vector<256xf32>
    %352 = vector.multi_reduction <add>, %351, %cst_171 [0] : vector<4x256xf32> to vector<256xf32>
    %353 = vector.shape_cast %352 : vector<256xf32> to vector<1x256xf32>
    %cst_172 = arith.constant 0.000000e+00 : f32
    %354 = vector.broadcast %cst_172 : f32 to vector<1x256xf32>
    %355 = arith.select %78, %353, %354 : vector<1x256xi1>, vector<1x256xf32>
    %c0_173 = arith.constant 0 : index
    %c99 = arith.constant 99 : index
    %356 = vector.load %arg4[%c0_173, %c99] : memref<4x384xf32, #tpu.memory_space<vmem>>, vector<4x256xf32>
    %357 = arith.mulf %89, %356 : vector<4x256xf32>
    %cst_174 = arith.constant dense<0.000000e+00> : vector<256xf32>
    %358 = vector.multi_reduction <add>, %357, %cst_174 [0] : vector<4x256xf32> to vector<256xf32>
    %359 = vector.shape_cast %358 : vector<256xf32> to vector<1x256xf32>
    %cst_175 = arith.constant 0.000000e+00 : f32
    %360 = vector.broadcast %cst_175 : f32 to vector<1x256xf32>
    %361 = arith.select %87, %359, %360 : vector<1x256xi1>, vector<1x256xf32>
    %c0_176 = arith.constant 0 : index
    %c109 = arith.constant 109 : index
    %362 = vector.load %arg4[%c0_176, %c109] : memref<4x384xf32, #tpu.memory_space<vmem>>, vector<4x256xf32>
    %363 = arith.mulf %89, %362 : vector<4x256xf32>
    %cst_177 = arith.constant dense<0.000000e+00> : vector<256xf32>
    %364 = vector.multi_reduction <add>, %363, %cst_177 [0] : vector<4x256xf32> to vector<256xf32>
    %365 = vector.shape_cast %364 : vector<256xf32> to vector<1x256xf32>
    %cst_178 = arith.constant 0.000000e+00 : f32
    %366 = vector.broadcast %cst_178 : f32 to vector<1x256xf32>
    %367 = arith.select %33, %365, %366 : vector<1x256xi1>, vector<1x256xf32>
    %c0_179 = arith.constant 0 : index
    %c110 = arith.constant 110 : index
    %368 = vector.load %arg4[%c0_179, %c110] : memref<4x384xf32, #tpu.memory_space<vmem>>, vector<4x256xf32>
    %369 = arith.mulf %89, %368 : vector<4x256xf32>
    %cst_180 = arith.constant dense<0.000000e+00> : vector<256xf32>
    %370 = vector.multi_reduction <add>, %369, %cst_180 [0] : vector<4x256xf32> to vector<256xf32>
    %371 = vector.shape_cast %370 : vector<256xf32> to vector<1x256xf32>
    %cst_181 = arith.constant 0.000000e+00 : f32
    %372 = vector.broadcast %cst_181 : f32 to vector<1x256xf32>
    %373 = arith.select %42, %371, %372 : vector<1x256xi1>, vector<1x256xf32>
    %c0_182 = arith.constant 0 : index
    %c111 = arith.constant 111 : index
    %374 = vector.load %arg4[%c0_182, %c111] : memref<4x384xf32, #tpu.memory_space<vmem>>, vector<4x256xf32>
    %375 = arith.mulf %89, %374 : vector<4x256xf32>
    %cst_183 = arith.constant dense<0.000000e+00> : vector<256xf32>
    %376 = vector.multi_reduction <add>, %375, %cst_183 [0] : vector<4x256xf32> to vector<256xf32>
    %377 = vector.shape_cast %376 : vector<256xf32> to vector<1x256xf32>
    %cst_184 = arith.constant 0.000000e+00 : f32
    %378 = vector.broadcast %cst_184 : f32 to vector<1x256xf32>
    %379 = arith.select %51, %377, %378 : vector<1x256xi1>, vector<1x256xf32>
    %c0_185 = arith.constant 0 : index
    %c112 = arith.constant 112 : index
    %380 = vector.load %arg4[%c0_185, %c112] : memref<4x384xf32, #tpu.memory_space<vmem>>, vector<4x256xf32>
    %381 = arith.mulf %89, %380 : vector<4x256xf32>
    %cst_186 = arith.constant dense<0.000000e+00> : vector<256xf32>
    %382 = vector.multi_reduction <add>, %381, %cst_186 [0] : vector<4x256xf32> to vector<256xf32>
    %383 = vector.shape_cast %382 : vector<256xf32> to vector<1x256xf32>
    %cst_187 = arith.constant 0.000000e+00 : f32
    %384 = vector.broadcast %cst_187 : f32 to vector<1x256xf32>
    %385 = arith.select %60, %383, %384 : vector<1x256xi1>, vector<1x256xf32>
    %c0_188 = arith.constant 0 : index
    %c113 = arith.constant 113 : index
    %386 = vector.load %arg4[%c0_188, %c113] : memref<4x384xf32, #tpu.memory_space<vmem>>, vector<4x256xf32>
    %387 = arith.mulf %89, %386 : vector<4x256xf32>
    %cst_189 = arith.constant dense<0.000000e+00> : vector<256xf32>
    %388 = vector.multi_reduction <add>, %387, %cst_189 [0] : vector<4x256xf32> to vector<256xf32>
    %389 = vector.shape_cast %388 : vector<256xf32> to vector<1x256xf32>
    %cst_190 = arith.constant 0.000000e+00 : f32
    %390 = vector.broadcast %cst_190 : f32 to vector<1x256xf32>
    %391 = arith.select %69, %389, %390 : vector<1x256xi1>, vector<1x256xf32>
    %c0_191 = arith.constant 0 : index
    %c114 = arith.constant 114 : index
    %392 = vector.load %arg4[%c0_191, %c114] : memref<4x384xf32, #tpu.memory_space<vmem>>, vector<4x256xf32>
    %393 = arith.mulf %89, %392 : vector<4x256xf32>
    %cst_192 = arith.constant dense<0.000000e+00> : vector<256xf32>
    %394 = vector.multi_reduction <add>, %393, %cst_192 [0] : vector<4x256xf32> to vector<256xf32>
    %395 = vector.shape_cast %394 : vector<256xf32> to vector<1x256xf32>
    %cst_193 = arith.constant 0.000000e+00 : f32
    %396 = vector.broadcast %cst_193 : f32 to vector<1x256xf32>
    %397 = arith.select %78, %395, %396 : vector<1x256xi1>, vector<1x256xf32>
    %398 = tpu.concatenate %355, %361, %367, %373, %379, %385, %391, %397 in 0 : vector<1x256xf32>, vector<1x256xf32>, vector<1x256xf32>, vector<1x256xf32>, vector<1x256xf32>, vector<1x256xf32>, vector<1x256xf32>, vector<1x256xf32> -> vector<8x256xf32>
    %c0_194 = arith.constant 0 : index
    %c40 = arith.constant 40 : index
    %c0_195 = arith.constant 0 : index
    %399 = vector.load %arg3[%c0_194, %c40, %c0_195] : memref<1x49x256xf32, #tpu.memory_space<vmem>>, vector<1x8x256xf32>
    %400 = vector.shape_cast %399 : vector<1x8x256xf32> to vector<8x256xf32>
    %401 = vector.shape_cast %398 : vector<8x256xf32> to vector<1x8x256xf32>
    tpu.vector_store %arg3[%c0_194, %c40, %c0_195], %401 {strides = array<i32>} : memref<1x49x256xf32, #tpu.memory_space<vmem>>, vector<1x8x256xf32>,
    %c0_196 = arith.constant 0 : index
    %c115 = arith.constant 115 : index
    %402 = vector.load %arg4[%c0_196, %c115] : memref<4x384xf32, #tpu.memory_space<vmem>>, vector<4x256xf32>
    %403 = arith.mulf %89, %402 : vector<4x256xf32>
    %cst_197 = arith.constant dense<0.000000e+00> : vector<256xf32>
    %404 = vector.multi_reduction <add>, %403, %cst_197 [0] : vector<4x256xf32> to vector<256xf32>
    %405 = vector.shape_cast %404 : vector<256xf32> to vector<1x256xf32>
    %cst_198 = arith.constant 0.000000e+00 : f32
    %406 = vector.broadcast %cst_198 : f32 to vector<1x256xf32>
    %407 = arith.select %87, %405, %406 : vector<1x256xi1>, vector<1x256xf32>
    %c0_199 = arith.constant 0 : index
    %c48_200 = arith.constant 48 : index
    %c0_201 = arith.constant 0 : index
    %408 = vector.load %arg3[%c0_199, %c48_200, %c0_201] : memref<1x49x256xf32, #tpu.memory_space<vmem>>, vector<1x1x256xf32>
    %409 = vector.shape_cast %408 : vector<1x1x256xf32> to vector<1x256xf32>
    %410 = vector.shape_cast %407 : vector<1x256xf32> to vector<1x1x256xf32>
    tpu.vector_store %arg3[%c0_199, %c48_200, %c0_201], %410 {strides = array<i32>} : memref<1x49x256xf32, #tpu.memory_space<vmem>>, vector<1x1x256xf32>,
    return
  }
  func.func @transform_0(%arg0: i32) -> (i32, i32, i32) {
    %c0_i32 = arith.constant 0 : i32
    %c0_i32_0 = arith.constant 0 : i32
    %c0_i32_1 = arith.constant 0 : i32
    return %arg0, %c0_i32, %c0_i32_0 : i32, i32, i32
  }
  func.func @transform_1(%arg0: i32) -> (i32, i32, i32) {
    %c0_i32 = arith.constant 0 : i32
    %c0_i32_0 = arith.constant 0 : i32
    %c0_i32_1 = arith.constant 0 : i32
    return %arg0, %c0_i32, %c0_i32_0 : i32, i32, i32
  }
  func.func @transform_2(%arg0: i32) -> (i32, i32, i32) {
    %c0_i32 = arith.constant 0 : i32
    %c0_i32_0 = arith.constant 0 : i32
    %c0_i32_1 = arith.constant 0 : i32
    return %arg0, %c0_i32, %c0_i32_0 : i32, i32, i32
  }
}

</mosaic_0001>

<bundles_post_ra>
// kernel: correlation_layer.1
= control target key start
LH: loop header
LB: loop body
LE: loop exit
PB: predicated region body
PF: predicated region fallthrough
CT: control target
= control target key end

     0   :  { %s2106_s9 = smov 0   ;;  %s3118_s0 = inlined_call_operand.vmem [shape: f32[2,4,256], index: 0, kind: input, shape index: {}]   ;;  %s3119_s1 = inlined_call_operand.vmem [shape: f32[2,4,256], index: 1, kind: input, shape index: {}]   ;;  %s3120_s2 = inlined_call_operand.vmem [shape: f32[2,49,256], index: 2, kind: output, shape index: {}]  }
   0x1 LB: > { %s1955_s10 = sadd.s32 4294967295, %s2038_s9   ;;  %p1959_p0 = scmp.ge.s32.totalorder %s2038_s9, 1  ;;  %s2038_s9 = sphi %s2106_s9, %s12_s9  }
   0x2   : > { %p122_p1 = scmp.lt.s32.totalorder %s2038_s9, 3 }
   0x4   : > { %p123_p2 = pnand %p1959_p0, %p122_p1 }
   0x6   : > { %126 = sbr.rel (%p123_p2) target bundleno = 604 (0x25c), region = 28 }
   0xb   : > { %p149_p3 = scmp.lt.s32.totalorder %s1955_s10, 1  ;;  %vm164_vm0 = vcmask 519168   ;;  %vm166_vm1 = vcmask 1043968   ;;  %v2040_v0 = vmov 0.0   ;;  %s2041_s15 = smov 64   ;;  %vm177_vm2 = vcmask 1047556  }
   0xc   : > { %165 = vst.msk [vmem:[#allocation2] sm:$0xf] %vm164_vm0, %v2040_v0  ;;  %vm3124_vm3 = vcmask 523264   ;;  %vm178_vm4 = vmor %vm177_vm2, %vm166_vm1  ;;  %s2042_s16 = smov 114   ;;  %s2043_s17 = smov 115   ;;  %v3121_v20 = vlaneseq  ;;  %vm273_vm5 = vcmask 1043456  }
   0xd   : > { %167 = vst.msk [vmem:[#allocation2 + $0x8] sm:$0xf] %vm166_vm1, %v2040_v0  ;;  %s3231_s10 = smov (!%p149_p3, %s1955_s10), 1  ;;  %s2044_s18 = smov 113   ;;  %vm305_vm6 = vcmask 932864   ;;  %vm335_vm7 = vcmask 924672  }
   0xe   : > { %s1968_s11 = sshll.u32 %s3231_s10, 3  ;;  %s2045_s19 = smov 47   ;;  %v182_v23 = vand.u32 127, %v3121_v20  ;;  %vm365_vm8 = vcmask 916480   ;;  %vm395_vm9 = vcmask 908288   ;;  %vm425_vm13 = vcmask 900096  }
   0xf   : > { %s158_s14 = scalar_lea.vmem %s3119_s1, %s1968_s11  ;;  %s2046_s20 = smov 112   ;;  %vm455_vm15 = vcmask 891904   ;;  %vm541_vm2 = vcmask 801792  }
  0x10   : > { %v168_v1 = vld [vmem:[%s158_s14] sm:$0xff]  ;;  %s2047_s21 = smov 46   ;;  %s2048_s22 = smov 111   ;;  %v183_v26 = vadd.s32 128, %v182_v23  ;;  %v188_v30 = vand.u32 15, %v182_v23 }
  0x11   : > { %170 = vrot.lane.b32.xlu0 %v168_v1, %s2041_s15  ;;  %s2049_s23 = smov 30   ;;  %s2050_s24 = smov 110  }
  0x12   : > { %s2051_s25 = smov 29   ;;  %s2052_s26 = smov 109   ;;  %v195_v31 = vand.u32 15, %v183_v26  ;;  %v2239_v33 = vadd.s32 4294967294, %v188_v30  ;;  %v2243_v38 = vadd.s32 4294967295, %v188_v30  ;;  %v2252_v41 = vadd.s32 1, %v188_v30 }
  0x13   : > { %s2053_s27 = smov 45   ;;  %s2054_s28 = smov 99   ;;  %v2256_v43 = vadd.s32 2, %v188_v30  ;;  %v2261_v46 = vadd.s32 3, %v188_v30  ;;  %v2269_v52 = vadd.s32 4294967293, %v188_v30 }
  0x14   : > { %s2055_s29 = smov 19   ;;  %s2056_s30 = smov 98   ;;  %v2241_v34 = vadd.s32 4294967294, %v195_v31  ;;  %v2250_v40 = vadd.s32 4294967295, %v195_v31  ;;  %v2254_v42 = vadd.s32 1, %v195_v31  ;;  %v2259_v45 = vadd.s32 2, %v195_v31 }
  0x15   : > { %s2057_s3 = smov 97   ;;  %s2058_s4 = smov 96   ;;  %v2263_v47 = vadd.s32 3, %v195_v31  ;;  %v2271_v53 = vadd.s32 4294967293, %v195_v31  ;;  %vm3130_vm10 = vcmp.ge.s32.totalorder %v2239_v33, 0  ;;  %vm226_vm12 = vcmp.ge.s32.totalorder %v2243_v38, 0 }
  0x16   : > { %s2059_s5 = smov 95   ;;  %s2060_s6 = smov 94   ;;  %vm219_vm11 = vcmp.ge.s32.totalorder %v2241_v34, 0  ;;  %vm227_vm14 = vcmp.ge.s32.totalorder %v2250_v40, 0  ;;  %vm242_vm1 = vcmp.lt.s32.totalorder %v2252_v41, 16 }
  0x17   : > { %s2061_s7 = smov 93   ;;  %s2062_s8 = smov 83  }
  0x18   : > { %s2063_s12 = smov 82   ;;  %s2064_s13 = smov 81  }
  0x19   : > { %s2065_s14 = smov 80  }
  0x83   : > { %v171_v2 = vpop.permute.xlu0 %170 }
  0x84   : > { %v172_v3 = vrot.slane %v171_v2, 4 }
  0x86   : > { %v174_v4 = vsel %vm3124_vm3, %v172_v3, %v171_v2  ;;  %180 = vst.msk [vmem:[#allocation2 + $0x8] sm:$0xf] %vm164_vm0, %v172_v3  ;;  %vm485_vm0 = vcmask 809984   ;;  %vm631_vm3 = vcmask 777216  }
  0x87   : > { %179 = vst.msk [vmem:[#allocation2] sm:$0xff] %vm178_vm4, %v174_v4  ;;  %vm3132_vm4 = vcmp.lt.s32.totalorder %v2254_v42, 16 }
  0x8d   : > { %v264_v5 = vld [vmem:[#allocation2 + $0x8] sm:$0xf] }
  0x8e   : > { %300 = vrot.lane.b32.xlu0 %v264_v5, %s2042_s16  ;;  %269 = vrot.lane.b32.xlu1 %v264_v5, %s2043_s17  ;;  %v2128_v6 = vld [vmem:[#allocation2 + $0x8] sm:$0xf]  ;;  %v2146_v9 = vld [vmem:[#allocation2] sm:$0xff] }
  0x8f   : > { %v2136_v7 = vld [vmem:[#allocation2 + $0x8] sm:$0xf] }
  0x90   : > { %v531_v8 = vld [vmem:[#allocation2 + $0x8] sm:$0xf] }
  0x91   : > { %v791_v10 = vld [vmem:[#allocation2 + $0x8] sm:$0xf] }
  0x92   : > { %330 = vrot.lane.b32.xlu0 %v264_v5, %s2044_s18  ;;  %1315 = vrot.lane.b32.xlu1 %v2128_v6, %s2045_s19  ;;  %v2167_v11 = vld [vmem:[#allocation2 + $0x8] sm:$0xf] }
  0x93   : > { %v1830_v27 = vld [vmem:[#allocation2 + $0x8] sm:$0xf] }
  0x96   : > { %360 = vrot.lane.b32.xlu0 %v264_v5, %s2046_s20  ;;  %1345 = vrot.lane.b32.xlu1 %v2128_v6, %s2047_s21 }
  0x9a   : > { %390 = vrot.lane.b32.xlu0 %v264_v5, %s2048_s22  ;;  %1575 = vrot.lane.b32.xlu1 %v2136_v7, %s2049_s23 }
  0x9e   : > { %420 = vrot.lane.b32.xlu0 %v264_v5, %s2050_s24  ;;  %1605 = vrot.lane.b32.xlu1 %v2136_v7, %s2051_s25 }
  0xa2   : > { %450 = vrot.lane.b32.xlu0 %v264_v5, %s2052_s26  ;;  %1375 = vrot.lane.b32.xlu1 %v2128_v6, %s2053_s27 }
  0xa6   : > { %480 = vrot.lane.b32.xlu0 %v264_v5, %s2054_s28  ;;  %1635 = vrot.lane.b32.xlu1 %v2136_v7, %s2055_s29 }
  0xaa   : > { %536 = vrot.lane.b32.xlu0 %v531_v8, %s2056_s30  ;;  %298 = vrot.lane.b32.xlu1 %v2146_v9, %s2042_s16  ;;  %s2066_s16 = smov 79  }
  0xae   : > { %566 = vrot.lane.b32.xlu0 %v531_v8, %s2057_s3  ;;  %328 = vrot.lane.b32.xlu1 %v2146_v9, %s2044_s18  ;;  %s2067_s18 = smov 78  }
  0xb2   : > { %596 = vrot.lane.b32.xlu0 %v531_v8, %s2058_s4  ;;  %358 = vrot.lane.b32.xlu1 %v2146_v9, %s2046_s20  ;;  %s2068_s20 = smov 77  }
  0xb6   : > { %626 = vrot.lane.b32.xlu0 %v531_v8, %s2059_s5  ;;  %388 = vrot.lane.b32.xlu1 %v2146_v9, %s2048_s22  ;;  %s2069_s22 = smov 67  }
  0xba   : > { %656 = vrot.lane.b32.xlu0 %v531_v8, %s2060_s6  ;;  %418 = vrot.lane.b32.xlu1 %v2146_v9, %s2050_s24  ;;  %s2070_s24 = smov 66  }
  0xbe   : > { %686 = vrot.lane.b32.xlu0 %v531_v8, %s2061_s7  ;;  %448 = vrot.lane.b32.xlu1 %v2146_v9, %s2052_s26  ;;  %s2071_s26 = smov 65  }
  0xc2   : > { %716 = vrot.lane.b32.xlu0 %v531_v8, %s2062_s8  ;;  %478 = vrot.lane.b32.xlu1 %v2146_v9, %s2054_s28  ;;  %s2072_s28 = smov 63  }
  0xc6   : > { %746 = vrot.lane.b32.xlu0 %v531_v8, %s2063_s12  ;;  %534 = vrot.lane.b32.xlu1 %v2146_v9, %s2056_s30  ;;  %s2073_s30 = smov 62  }
  0xca   : > { %796 = vrot.lane.b32.xlu0 %v791_v10, %s2064_s13  ;;  %564 = vrot.lane.b32.xlu1 %v2146_v9, %s2057_s3  ;;  %s2080_s3 = smov 17  }
  0xce   : > { %826 = vrot.lane.b32.xlu0 %v791_v10, %s2065_s14  ;;  %594 = vrot.lane.b32.xlu1 %v2146_v9, %s2058_s4  ;;  %s2081_s4 = smov 50  }
  0xd2   : > { %856 = vrot.lane.b32.xlu0 %v791_v10, %s2066_s16  ;;  %624 = vrot.lane.b32.xlu1 %v2146_v9, %s2059_s5  ;;  %s2082_s5 = smov 33  }
  0xd6   : > { %886 = vrot.lane.b32.xlu0 %v791_v10, %s2067_s18  ;;  %654 = vrot.lane.b32.xlu1 %v2146_v9, %s2060_s6  ;;  %s2083_s6 = smov 49  }
  0xda   : > { %916 = vrot.lane.b32.xlu0 %v791_v10, %s2068_s20  ;;  %684 = vrot.lane.b32.xlu1 %v2146_v9, %s2061_s7  ;;  %s2084_s7 = smov 16  }
  0xde   : > { %946 = vrot.lane.b32.xlu0 %v791_v10, %s2069_s22  ;;  %714 = vrot.lane.b32.xlu1 %v2146_v9, %s2062_s8  ;;  %s2085_s8 = smov 15  }
  0xe2   : > { %976 = vrot.lane.b32.xlu0 %v791_v10, %s2070_s24  ;;  %744 = vrot.lane.b32.xlu1 %v2146_v9, %s2063_s12  ;;  %s2086_s12 = smov 32  }
  0xe6   : > { %1006 = vrot.lane.b32.xlu0 %v791_v10, %s2071_s26  ;;  %794 = vrot.lane.b32.xlu1 %v2146_v9, %s2064_s13  ;;  %s2087_s13 = smov 31  }
  0xea   : > { %1056 = vrot.lane.b32.xlu0 %v2167_v11, %s2041_s15  ;;  %824 = vrot.lane.b32.xlu1 %v2146_v9, %s2065_s14  ;;  %s2088_s14 = smov 14  }
  0xee   : > { %1085 = vrot.lane.b32.xlu0 %v2167_v11, %s2072_s28  ;;  %854 = vrot.lane.b32.xlu1 %v2146_v9, %s2066_s16  ;;  %s2089_s16 = smov 48  }
  0xf2   : > { %1115 = vrot.lane.b32.xlu0 %v2167_v11, %s2073_s30  ;;  %884 = vrot.lane.b32.xlu1 %v2146_v9, %s2067_s18  ;;  %s1970_s18 = smul.u32 112, %s3231_s10 }
  0xf6   : > { %914 = vrot.lane.b32.xlu1 %v2146_v9, %s2068_s20  ;;  %267 = vrot.lane.b32.xlu0 %v2146_v9, %s2043_s17  ;;  %s2075_s17 = smov 13  }
  0xfa   : > { %944 = vrot.lane.b32.xlu1 %v2146_v9, %s2069_s22  ;;  %1313 = vrot.lane.b32.xlu0 %v2146_v9, %s2045_s19  ;;  %s2076_s19 = smov 35   ;;  %s2593_s22 = scalar_lea.vmem %s3120_s2, %s1970_s18 }
  0xfe   : > { %974 = vrot.lane.b32.xlu1 %v2146_v9, %s2070_s24  ;;  %1343 = vrot.lane.b32.xlu0 %v2146_v9, %s2047_s21 }
 0x100   : > { %v301_v12 = vpop.permute.xlu0 %300  ;;  %v2185_v13 = vpop.permute.xlu1 %269 }
 0x101   : > { %v303_v36 = vrot.slane %v301_v12, 4 }
 0x102   : > { %1004 = vrot.lane.b32.xlu1 %v2146_v9, %s2071_s26  ;;  %1573 = vrot.lane.b32.xlu0 %v2146_v9, %s2049_s23 }
 0x104   : > { %v2190_v14 = vpop.permute.xlu0 %330  ;;  %v2192_v15 = vpop.permute.xlu1 %1315 }
 0x105   : > { %v333_v54 = vrot.slane %v2190_v14, 4 }
 0x106   : > { %1054 = vrot.lane.b32.xlu1 %v2146_v9, %s2041_s15  ;;  %1603 = vrot.lane.b32.xlu0 %v2146_v9, %s2051_s25  ;;  %s2074_s15 = smov 61   ;;  %s2235_s25 = scalar_lea.vmem %s3118_s0, %s1968_s11 }
 0x107   : > { %v2246_v39 = vld [vmem:[%s2235_s25] sm:$0xff]  ;;  %s2077_s11 = smov 18  }
 0x108   : > { %v2198_v16 = vpop.permute.xlu0 %360  ;;  %v2200_v17 = vpop.permute.xlu1 %1345 }
 0x109   : > { %3137 = vst [vmem:[#allocation3_spill] sm:$0xff] %v2200_v17  ;;  %v363_v58 = vrot.slane %v2198_v16, 4 }
 0x10a   : > { %1083 = vrot.lane.b32.xlu1 %v2146_v9, %s2072_s28  ;;  %1373 = vrot.lane.b32.xlu0 %v2146_v9, %s2053_s27  ;;  %s2078_s27 = smov 51  }
 0x10c   : > { %v2205_v18 = vpop.permute.xlu0 %390  ;;  %v2207_v19 = vpop.permute.xlu1 %1575 }
 0x10d   : > { %3138 = vst [vmem:[#allocation4_spill] sm:$0xff] %v2207_v19  ;;  %v393_v60 = vrot.slane %v2205_v18, 4 }
 0x10e   : > { %1113 = vrot.lane.b32.xlu1 %v2146_v9, %s2073_s30  ;;  %1633 = vrot.lane.b32.xlu0 %v2146_v9, %s2055_s29  ;;  %s2079_s29 = smov 34  }
 0x110   : > { %v2212_v21 = vpop.permute.xlu0 %420  ;;  %v2214_v22 = vpop.permute.xlu1 %1605 }
 0x111   : > { %3139 = vst [vmem:[#allocation5_spill] sm:$0xff] %v2214_v22  ;;  %v423_v62 = vrot.slane %v2212_v21, 4 }
 0x112   : > { %1143 = vrot.lane.b32.xlu1 %v2146_v9, %s2074_s15  ;;  %1833 = vrot.lane.b32.xlu0 %v2146_v9, %s2075_s17 }
 0x114   : > { %v2219_v24 = vpop.permute.xlu0 %450  ;;  %v2221_v25 = vpop.permute.xlu1 %1375 }
 0x115   : > { %3140 = vst [vmem:[#allocation6_spill] sm:$0xff] %v2221_v25  ;;  %v453_v3 = vrot.slane %v2219_v24, 4 }
 0x116   : > { %1835 = vrot.lane.b32.xlu1 %v1830_v27, %s2075_s17  ;;  %1145 = vrot.lane.b32.xlu0 %v2167_v11, %s2074_s15 }
 0x118   : > { %v2224_v28 = vpop.permute.xlu0 %480  ;;  %v2226_v29 = vpop.permute.xlu1 %1635 }
 0x119   : > { %3141 = vst [vmem:[#allocation7_spill] sm:$0xff] %v2226_v29  ;;  %v483_v23 = vrot.slane %v2224_v28, 4 }
 0x11a   : > { %1403 = vrot.lane.b32.xlu1 %v2146_v9, %s2076_s19  ;;  %1405 = vrot.lane.b32.xlu0 %v2128_v6, %s2076_s19 }
 0x11c   : > { %v2237_v32 = vpop.permute.xlu0 %536  ;;  %v299_v35 = vpop.permute.xlu1 %298 }
 0x11d   : > { %v302_v37 = vrot.slane %v299_v35, 4  ;;  %v539_v31 = vrot.slane %v2237_v32, 4 }
 0x11e   : > { %1663 = vrot.lane.b32.xlu1 %v2146_v9, %s2077_s11  ;;  %1665 = vrot.lane.b32.xlu0 %v2136_v7, %s2077_s11 }
 0x11f   : > { %v304_v44 = vsel %vm273_vm5, %v302_v37, %v303_v36 }
 0x120   : > { %v306_v49 = vsel %vm305_vm6, %v299_v35, %v304_v44  ;;  %v2267_v50 = vpop.permute.xlu0 %566  ;;  %v329_v51 = vpop.permute.xlu1 %328  ;;  %vm250_vm6 = vcmp.lt.s32.totalorder %v2256_v43, 16 }
 0x121   : > { %v308_v56 = vmul.f32 %v306_v49, %v2246_v39  ;;  %v332_v57 = vrot.slane %v329_v51, 4 }
 0x122   : > { %1173 = vrot.lane.b32.xlu1 %v2146_v9, %s2078_s27  ;;  %1175 = vrot.lane.b32.xlu0 %v2167_v11, %s2078_s27 }
 0x123   : > { %v310_v63 = vcombine.high %v308_v56, %v308_v56  ;;  %v312_v0 = vsel %vm273_vm5, %v308_v56, 0.0  ;;  %v334_v1 = vsel %vm273_vm5, %v332_v57, %v333_v54 }
 0x124   : > { %v313_v4 = vrot.slane %v312_v0, 4  ;;  %v336_v5 = vsel %vm335_vm7, %v329_v51, %v334_v1  ;;  %v2288_v8 = vpop.permute.xlu0 %596  ;;  %v359_v10 = vpop.permute.xlu1 %358  ;;  %vm3134_vm7 = vcmp.lt.s32.totalorder %v2259_v45, 16 }
 0x125   : > { %v319_v14 = vsel %vm273_vm5, %v310_v63, 0.0  ;;  %v338_v16 = vmul.f32 %v336_v5, %v2246_v39  ;;  %v362_v18 = vrot.slane %v359_v10, 4 }
 0x126   : > { %v314_v27 = vadd.f32 %v313_v4, %v312_v0  ;;  %v320_v30 = vrot.slane %v319_v14, 4  ;;  %1433 = vrot.lane.b32.xlu1 %v2146_v9, %s2079_s29  ;;  %1435 = vrot.lane.b32.xlu0 %v2128_v6, %s2079_s29 }
 0x127   : > { %v340_v35 = vcombine.high %v338_v16, %v338_v16  ;;  %v342_v36 = vsel %vm273_vm5, %v338_v16, 0.0  ;;  %v364_v37 = vsel %vm273_vm5, %v362_v18, %v363_v58 }
 0x128   : > { %v315_v44 = vrot.slane %v314_v27, 2  ;;  %v321_v49 = vadd.f32 %v320_v30, %v319_v14  ;;  %v343_v51 = vrot.slane %v342_v36, 4  ;;  %v366_v54 = vsel %vm365_vm8, %v359_v10, %v364_v37  ;;  %v2302_v56 = vpop.permute.xlu0 %626  ;;  %v389_v57 = vpop.permute.xlu1 %388 }
 0x129   : > { %v349_v0 = vsel %vm273_vm5, %v340_v35, 0.0  ;;  %v368_v1 = vmul.f32 %v366_v54, %v2246_v39  ;;  %v392_v4 = vrot.slane %v389_v57, 4  ;;  %vm571_vm8 = vcmask 793600  }
 0x12a   : > { %v316_v5 = vadd.f32 %v315_v44, %v314_v27  ;;  %v322_v16 = vrot.slane %v321_v49, 2  ;;  %v344_v58 = vadd.f32 %v343_v51, %v342_v36  ;;  %v350_v14 = vrot.slane %v349_v0, 4  ;;  %1693 = vrot.lane.b32.xlu1 %v2146_v9, %s2080_s3  ;;  %1695 = vrot.lane.b32.xlu0 %v2136_v7, %s2080_s3 }
 0x12b   : > { %v370_v18 = vcombine.high %v368_v1, %v368_v1  ;;  %v372_v30 = vsel %vm273_vm5, %v368_v1, 0.0  ;;  %v394_v35 = vsel %vm273_vm5, %v392_v4, %v393_v60 }
 0x12c   : > { %v317_v37 = vrot.slane %v316_v5, 1  ;;  %v323_v27 = vadd.f32 %v322_v16, %v321_v49  ;;  %v345_v44 = vrot.slane %v344_v58, 2  ;;  %v351_v36 = vadd.f32 %v350_v14, %v349_v0  ;;  %v2315_v51 = vpop.permute.xlu0 %656  ;;  %v419_v54 = vpop.permute.xlu1 %418 }
 0x12d   : > { %v373_v20 = vrot.slane %v372_v30, 4  ;;  %v379_v26 = vsel %vm273_vm5, %v370_v18, 0.0  ;;  %v396_v2 = vsel %vm395_vm9, %v389_v57, %v394_v35  ;;  %v422_v16 = vrot.slane %v419_v54, 4 }
 0x12e   : > { %v318_v61 = vadd.f32 %v317_v37, %v316_v5  ;;  %v324_v1 = vrot.slane %v323_v27, 1  ;;  %v346_v59 = vadd.f32 %v345_v44, %v344_v58  ;;  %v352_v60 = vrot.slane %v351_v36, 2  ;;  %1203 = vrot.lane.b32.xlu1 %v2146_v9, %s2081_s4  ;;  %1205 = vrot.lane.b32.xlu0 %v2167_v11, %s2081_s4 }
 0x12f   : > { %v374_v49 = vadd.f32 %v373_v20, %v372_v30  ;;  %v380_v0 = vrot.slane %v379_v26, 4  ;;  %v398_v4 = vmul.f32 %v396_v2, %v2246_v39  ;;  %vm258_vm9 = vcmp.lt.s32.totalorder %v2261_v46, 16 }
 0x130   : > { %v325_v14 = vadd.f32 %v324_v1, %v323_v27  ;;  %v347_v18 = vrot.slane %v346_v59, 1  ;;  %v353_v55 = vadd.f32 %v352_v60, %v351_v36  ;;  %v2324_v5 = vpop.permute.xlu0 %686  ;;  %v449_v58 = vpop.permute.xlu1 %448  ;;  %v2329_v20 = vsel %vm3130_vm10, %v318_v61, 0.0 }
 0x131   : > { %v375_v35 = vrot.slane %v374_v49, 2  ;;  %v381_v37 = vadd.f32 %v380_v0, %v379_v26  ;;  %v400_v44 = vcombine.high %v398_v4, %v398_v4  ;;  %v402_v48 = vsel %vm273_vm5, %v398_v4, 0.0 }
 0x132   : > { %v348_v2 = vadd.f32 %v347_v18, %v346_v59  ;;  %v354_v30 = vrot.slane %v353_v55, 1  ;;  %v403_v27 = vrot.slane %v402_v48, 4  ;;  %1463 = vrot.lane.b32.xlu1 %v2146_v9, %s2082_s5  ;;  %1465 = vrot.lane.b32.xlu0 %v2128_v6, %s2082_s5  ;;  %v424_v60 = vsel %vm273_vm5, %v422_v16, %v423_v62 }
 0x133   : > { %v376_v36 = vadd.f32 %v375_v35, %v374_v49  ;;  %v382_v1 = vrot.slane %v381_v37, 2  ;;  %v409_v26 = vsel %vm273_vm5, %v400_v44, 0.0  ;;  %v2339_v61 = vsel %vm219_vm11, %v325_v14, 0.0 }
 0x134   : > { %v355_v59 = vadd.f32 %v354_v30, %v353_v55  ;;  %v404_v0 = vadd.f32 %v403_v27, %v402_v48  ;;  %v410_v4 = vrot.slane %v409_v26, 4  ;;  %v2341_v18 = vpop.permute.xlu0 %716  ;;  %v479_v57 = vpop.permute.xlu1 %478  ;;  %v2345_v49 = vsel %vm226_vm12, %v348_v2, 0.0 }
 0x135   : > { %v377_v35 = vrot.slane %v376_v36, 1  ;;  %v383_v44 = vadd.f32 %v382_v1, %v381_v37  ;;  %v426_v21 = vsel %vm425_vm13, %v419_v54, %v424_v60  ;;  %v452_v30 = vrot.slane %v449_v58, 4 }
 0x136   : > { %v405_v62 = vrot.slane %v404_v0, 2  ;;  %v411_v16 = vadd.f32 %v410_v4, %v409_v26  ;;  %v428_v14 = vmul.f32 %v426_v21, %v2246_v39  ;;  %1233 = vrot.lane.b32.xlu1 %v2146_v9, %s2083_s6  ;;  %1235 = vrot.lane.b32.xlu0 %v2167_v11, %s2083_s6  ;;  %v2355_v55 = vsel %vm227_vm14, %v355_v59, 0.0 }
 0x137   : > { %v2357_v37 = vadd.f32 %v377_v35, %v376_v36  ;;  %v384_v2 = vrot.slane %v383_v44, 1  ;;  %v454_v59 = vsel %vm273_vm5, %v452_v30, %v453_v3  ;;  %v482_v35 = vrot.slane %v479_v57, 4 }
 0x138   : > { %v406_v54 = vadd.f32 %v405_v62, %v404_v0  ;;  %v412_v27 = vrot.slane %v411_v16, 2  ;;  %v430_v1 = vcombine.high %v428_v14, %v428_v14  ;;  %v432_v26 = vsel %vm273_vm5, %v428_v14, 0.0  ;;  %v2360_v60 = vpop.permute.xlu0 %746  ;;  %v2362_v4 = vpop.permute.xlu1 %534 }
 0x139   : > { %v433_v21 = vrot.slane %v432_v26, 4  ;;  %v456_v48 = vsel %vm455_vm15, %v449_v58, %v454_v59  ;;  %v484_v36 = vsel %vm273_vm5, %v482_v35, %v483_v23  ;;  %vm3136_vm13 = vcmp.lt.s32.totalorder %v2263_v47, 16 }
 0x13a   : > { %v407_v0 = vrot.slane %v406_v54, 1  ;;  %v413_v62 = vadd.f32 %v412_v27, %v411_v16  ;;  %v439_v14 = vsel %vm273_vm5, %v430_v1, 0.0  ;;  %1723 = vrot.lane.b32.xlu1 %v2146_v9, %s2084_s7  ;;  %1725 = vrot.lane.b32.xlu0 %v2136_v7, %s2084_s7  ;;  %v458_v30 = vmul.f32 %v456_v48, %v2246_v39 }
 0x13b   : > { %v434_v24 = vadd.f32 %v433_v21, %v432_v26  ;;  %v440_v3 = vrot.slane %v439_v14, 4  ;;  %v2378_v16 = vadd.f32 %v384_v2, %v383_v44  ;;  %v486_v1 = vsel %vm485_vm0, %v479_v57, %v484_v36 }
 0x13c   : > { %v408_v27 = vadd.f32 %v407_v0, %v406_v54  ;;  %v414_v12 = vrot.slane %v413_v62, 1  ;;  %v2381_v58 = vpop.permute.xlu0 %796  ;;  %v2383_v59 = vpop.permute.xlu1 %564  ;;  %v460_v26 = vcombine.high %v458_v30, %v458_v30  ;;  %v462_v21 = vsel %vm273_vm5, %v458_v30, 0.0 }
 0x13d   : > { %v435_v10 = vrot.slane %v434_v24, 2  ;;  %v441_v63 = vadd.f32 %v440_v3, %v439_v14  ;;  %v463_v28 = vrot.slane %v462_v21, 4  ;;  %v488_v23 = vmul.f32 %v486_v1, %v2246_v39 }
 0x13e   : > { %v415_v48 = vadd.f32 %v414_v12, %v413_v62  ;;  %1753 = vrot.lane.b32.xlu1 %v2146_v9, %s2085_s8  ;;  %1755 = vrot.lane.b32.xlu0 %v2136_v7, %s2085_s8  ;;  %v469_v54 = vsel %vm273_vm5, %v460_v26, 0.0  ;;  %v538_v36 = vrot.slane %v2362_v4, 4  ;;  %v2395_v12 = vsel %vm242_vm1, %v408_v27, 0.0 }
 0x13f   : > { %v436_v57 = vadd.f32 %v435_v10, %v434_v24  ;;  %v442_v2 = vrot.slane %v441_v63, 2  ;;  %v464_v35 = vadd.f32 %v463_v28, %v462_v21  ;;  %v470_v0 = vrot.slane %v469_v54, 4 }
 0x140   : > { %v490_v62 = vcombine.high %v488_v23, %v488_v23  ;;  %v492_v30 = vsel %vm273_vm5, %v488_v23, 0.0  ;;  %v540_v10 = vsel %vm273_vm5, %v538_v36, %v539_v31  ;;  %v2404_v21 = vpop.permute.xlu0 %826  ;;  %v2406_v28 = vpop.permute.xlu1 %594  ;;  %vm210_vm15 = vcmp.ge.s32.totalorder %v2269_v52, 0 }
 0x141   : > { %v437_v14 = vrot.slane %v436_v57, 1  ;;  %v443_v3 = vadd.f32 %v442_v2, %v441_v63  ;;  %v465_v24 = vrot.slane %v464_v35, 2  ;;  %v471_v1 = vadd.f32 %v470_v0, %v469_v54 }
 0x142   : > { %v493_v27 = vrot.slane %v492_v30, 4  ;;  %v499_v26 = vsel %vm273_vm5, %v490_v62, 0.0  ;;  %1493 = vrot.lane.b32.xlu1 %v2146_v9, %s2086_s12  ;;  %1495 = vrot.lane.b32.xlu0 %v2128_v6, %s2086_s12  ;;  %v542_v31 = vsel %vm541_vm2, %v2362_v4, %v540_v10  ;;  %vm601_vm0 = vcmask 785408  }
 0x143   : > { %v438_v63 = vadd.f32 %v437_v14, %v436_v57  ;;  %v444_v32 = vrot.slane %v443_v3, 1  ;;  %v500_v23 = vrot.slane %v499_v26, 4  ;;  %v466_v2 = vadd.f32 %v465_v24, %v464_v35 }
 0x144   : > { %v472_v54 = vrot.slane %v471_v1, 2  ;;  %v494_v36 = vadd.f32 %v493_v27, %v492_v30  ;;  %v544_v0 = vmul.f32 %v542_v31, %v2246_v39  ;;  %v2416_v62 = vsel %vm3132_vm4, %v415_v48, 0.0 }
 0x145   : > { %v445_v44 = vadd.f32 %v444_v32, %v443_v3  ;;  %v2420_v57 = vsel %vm250_vm6, %v438_v63, 0.0  ;;  %v501_v14 = vadd.f32 %v500_v23, %v499_v26  ;;  %v467_v29 = vrot.slane %v466_v2, 1  ;;  %v2428_v32 = vpop.permute.xlu0 %856  ;;  %v625_v23 = vpop.permute.xlu1 %624 }
 0x146   : > { %v473_v4 = vadd.f32 %v472_v54, %v471_v1  ;;  %vm3128_vm2 = vcmp.ge.s32.totalorder %v2271_v53, 0  ;;  %v495_v35 = vrot.slane %v494_v36, 2  ;;  %v546_v10 = vcombine.high %v544_v0, %v544_v0  ;;  %1523 = vrot.lane.b32.xlu1 %v2146_v9, %s2087_s13  ;;  %1525 = vrot.lane.b32.xlu0 %v2128_v6, %s2087_s13 }
 0x147   : > { %v502_v30 = vrot.slane %v501_v14, 2  ;;  %v548_v48 = vsel %vm273_vm5, %v544_v0, 0.0  ;;  %v568_v24 = vrot.slane %v2383_v59, 4  ;;  %v468_v27 = vadd.f32 %v467_v29, %v466_v2 }
 0x148   : > { %v474_v26 = vrot.slane %v473_v4, 1  ;;  %v496_v63 = vadd.f32 %v495_v35, %v494_v36  ;;  %v549_v1 = vrot.slane %v548_v48, 4  ;;  %v2432_v31 = vsel %vm3134_vm7, %v445_v44, 0.0 }
 0x149   : > { %3142 = vst [vmem:[#allocation8_spill] sm:$0xff] %v2432_v31  ;;  %v503_v54 = vadd.f32 %v502_v30, %v501_v14  ;;  %v555_v6 = vsel %vm273_vm5, %v546_v10, 0.0  ;;  %v3143_v0 = vrot.slane %v2267_v50, 4  ;;  %v598_v50 = vrot.slane %v2406_v28, 4 }
 0x14a   : > { %v475_v25 = vadd.f32 %v474_v26, %v473_v4  ;;  %v497_v29 = vrot.slane %v496_v63, 1  ;;  %v550_v2 = vadd.f32 %v549_v1, %v548_v48  ;;  %1783 = vrot.lane.b32.xlu1 %v2146_v9, %s2088_s14  ;;  %1785 = vrot.lane.b32.xlu0 %v2136_v7, %s2088_s14  ;;  %v556_v35 = vrot.slane %v555_v6, 4 }
 0x14b   : > { %v570_v3 = vsel %vm273_vm5, %v568_v24, %v3143_v0  ;;  %v504_v44 = vrot.slane %v503_v54, 1  ;;  %v2446_v10 = vsel %vm258_vm9, %v468_v27, 0.0  ;;  %v3145_v1 = vrot.slane %v2288_v8, 4 }
 0x14c   : > { %v572_v14 = vsel %vm571_vm8, %v2383_v59, %v570_v3  ;;  %v498_v4 = vadd.f32 %v497_v29, %v496_v63  ;;  %v551_v30 = vrot.slane %v550_v2, 2  ;;  %v2451_v24 = vsel %vm3136_vm13, %v475_v25, 0.0  ;;  %v2458_v29 = vpop.permute.xlu0 %886 }
 0x14d   : > { %v574_v48 = vmul.f32 %v572_v14, %v2246_v39  ;;  %3144 = vst [vmem:[#allocation9_spill] sm:$0xff] %v2451_v24  ;;  %v505_v7 = vadd.f32 %v504_v44, %v503_v54  ;;  %v557_v26 = vadd.f32 %v556_v35, %v555_v6  ;;  %v600_v59 = vsel %vm273_vm5, %v598_v50, %v3145_v1  ;;  %v655_v14 = vpop.permute.xlu1 %654 }
 0x14e   : > { %vm661_vm8 = vcmask 769024   ;;  %v552_v3 = vadd.f32 %v551_v30, %v550_v2  ;;  %1263 = vrot.lane.b32.xlu1 %v2146_v9, %s2089_s16  ;;  %1265 = vrot.lane.b32.xlu0 %v2167_v11, %s2089_s16  ;;  %v2464_v25 = vsel %vm210_vm15, %v498_v4, 0.0  ;;  %v602_v6 = vsel %vm601_vm0, %v2406_v28, %v600_v59 }
 0x14f   : > { %v576_v0 = vcombine.high %v574_v48, %v574_v48  ;;  %v578_v27 = vsel %vm273_vm5, %v574_v48, 0.0  ;;  %v558_v8 = vrot.slane %v557_v26, 2  ;;  %v604_v35 = vmul.f32 %v602_v6, %v2246_v39 }
 0x150   : > { %v579_v54 = vrot.slane %v578_v27, 4  ;;  %v553_v2 = vrot.slane %v552_v3, 1  ;;  %v628_v50 = vrot.slane %v625_v23, 4  ;;  %v2472_v9 = vsel %vm3128_vm2, %v505_v7, 0.0 }
 0x151   : > { %v585_v44 = vsel %vm273_vm5, %v576_v0, 0.0  ;;  %3146 = vst [vmem:[#allocation10_spill] sm:$0xff] %v2472_v9  ;;  %v559_v11 = vadd.f32 %v558_v8, %v557_v26  ;;  %v606_v1 = vcombine.high %v604_v35, %v604_v35  ;;  %v608_v63 = vsel %vm273_vm5, %v604_v35, 0.0  ;;  %v685_v8 = vpop.permute.xlu1 %684 }
 0x152   : > { %v580_v30 = vadd.f32 %v579_v54, %v578_v27  ;;  %v586_v48 = vrot.slane %v585_v44, 4  ;;  %v554_v4 = vadd.f32 %v553_v2, %v552_v3  ;;  %v3147_v36 = vrot.slane %v2302_v56, 4  ;;  %v2481_v3 = vpop.permute.xlu0 %916 }
 0x153   : > { %v560_v59 = vrot.slane %v559_v11, 1  ;;  %vm3131_vm0 = vcmask 1040384   ;;  %v609_v22 = vrot.slane %v608_v63, 4  ;;  %v615_v19 = vsel %vm273_vm5, %v606_v1, 0.0 }
 0x154   : > { %v630_v28 = vsel %vm273_vm5, %v628_v50, %v3147_v36  ;;  %v581_v0 = vrot.slane %v580_v30, 2  ;;  %v587_v6 = vadd.f32 %v586_v48, %v585_v44  ;;  %v658_v27 = vrot.slane %v655_v14, 4 }
 0x155   : > { %v632_v7 = vsel %vm631_vm3, %v625_v23, %v630_v28  ;;  %v562_v56 = vsel %vm3130_vm10, %v554_v4, 0.0  ;;  %v610_v2 = vadd.f32 %v609_v22, %v608_v63  ;;  %v561_v35 = vadd.f32 %v560_v59, %v559_v11 }
 0x156   : > { %v582_v54 = vadd.f32 %v581_v0, %v580_v30  ;;  %v588_v36 = vrot.slane %v587_v6, 2  ;;  %vm511_vm2 = vcmask 1041408   ;;  %v616_v44 = vrot.slane %v615_v19, 4  ;;  %v2496_v17 = vpop.permute.xlu0 %946 }
 0x157   : > { %v634_v50 = vmul.f32 %v632_v7, %v2246_v39  ;;  %v3148_v48 = vrot.slane %v2315_v51, 4  ;;  %vm691_vm3 = vcmask 760832   ;;  %v611_v26 = vrot.slane %v610_v2, 2 }
 0x158   : > { %v583_v1 = vrot.slane %v582_v54, 1  ;;  %v589_v28 = vadd.f32 %v588_v36, %v587_v6  ;;  %v617_v9 = vadd.f32 %v616_v44, %v615_v19  ;;  %vm721_vm10 = vcmask 678912   ;;  %v715_v36 = vpop.permute.xlu1 %714 }
 0x159   : > { %v660_v23 = vsel %vm273_vm5, %v658_v27, %v3148_v48  ;;  %v636_v4 = vcombine.high %v634_v50, %v634_v50  ;;  %v638_v30 = vsel %vm273_vm5, %v634_v50, 0.0  ;;  %v612_v59 = vadd.f32 %v611_v26, %v610_v2 }
 0x15a   : > { %v662_v22 = vsel %vm661_vm8, %v655_v14, %v660_v23  ;;  %v584_v63 = vadd.f32 %v583_v1, %v582_v54  ;;  %v590_v11 = vrot.slane %v589_v28, 1  ;;  %v639_v0 = vrot.slane %v638_v30, 4 }
 0x15b   : > { %v618_v51 = vrot.slane %v617_v9, 2  ;;  %v645_v7 = vsel %vm273_vm5, %v636_v4, 0.0  ;;  %v664_v27 = vmul.f32 %v662_v22, %v2246_v39  ;;  %v688_v6 = vrot.slane %v685_v8, 4 }
 0x15c   : > { %v591_v48 = vadd.f32 %v590_v11, %v589_v28  ;;  %v592_v19 = vsel %vm226_vm12, %v584_v63, 0.0  ;;  %v613_v44 = vrot.slane %v612_v59, 1  ;;  %v640_v50 = vadd.f32 %v639_v0, %v638_v30 }
 0x15d   : > { %v563_v14 = vsel %vm219_vm11, %v561_v35, 0.0  ;;  %v619_v26 = vadd.f32 %v618_v51, %v617_v9  ;;  %v646_v54 = vrot.slane %v645_v7, 4  ;;  %v666_v2 = vcombine.high %v664_v27, %v664_v27 }
 0x15e   : > { %v593_v23 = vsel %vm227_vm14, %v591_v48, 0.0  ;;  %v614_v1 = vadd.f32 %v613_v44, %v612_v59  ;;  %v641_v4 = vrot.slane %v640_v50, 2  ;;  %v668_v28 = vsel %vm273_vm5, %v664_v27, 0.0  ;;  %v2509_v27 = vpop.permute.xlu1 %744 }
 0x15f   : > { %v774_v22 = vsel %vm3131_vm0, %v562_v56, %v592_v19  ;;  %v620_v63 = vrot.slane %v619_v26, 1  ;;  %vm3133_vm8 = vcmask 1042432   ;;  %v647_v30 = vadd.f32 %v646_v54, %v645_v7 }
 0x160   : > { %v669_v11 = vrot.slane %v668_v28, 4  ;;  %v775_v0 = vsel %vm3131_vm0, %v563_v14, %v593_v23  ;;  %v642_v24 = vadd.f32 %v641_v4, %v640_v50  ;;  %v675_v9 = vsel %vm273_vm5, %v666_v2, 0.0  ;;  %v2513_v14 = vpop.permute.xlu0 %976 }
 0x161   : > { %v3149_v35 = vrot.slane %v2324_v5, 4  ;;  %v621_v48 = vadd.f32 %v620_v63, %v619_v26  ;;  %v648_v59 = vrot.slane %v647_v30, 2  ;;  %v676_v31 = vrot.slane %v675_v9, 4 }
 0x162   : > { %v670_v44 = vadd.f32 %v669_v11, %v668_v28  ;;  %v776_v56 = vsel %vm511_vm2, %v774_v22, %v614_v1  ;;  %v643_v19 = vrot.slane %v642_v24, 1  ;;  %v718_v54 = vrot.slane %v715_v36, 4 }
 0x163   : > { %v690_v51 = vsel %vm273_vm5, %v688_v6, %v3149_v35  ;;  %v649_v50 = vadd.f32 %v648_v59, %v647_v30  ;;  %v677_v23 = vadd.f32 %v676_v31, %v675_v9  ;;  %v949_v5 = vrot.slane %v2496_v17, 4 }
 0x164   : > { %v692_v7 = vsel %vm691_vm3, %v685_v8, %v690_v51  ;;  %v671_v2 = vrot.slane %v670_v44, 2  ;;  %v777_v6 = vsel %vm511_vm2, %v775_v0, %v621_v48  ;;  %v644_v26 = vadd.f32 %v643_v19, %v642_v24  ;;  %v795_v48 = vpop.permute.xlu1 %794 }
 0x165   : > { %v694_v4 = vmul.f32 %v692_v7, %v2246_v39  ;;  %v3150_v28 = vrot.slane %v2341_v18, 4  ;;  %vm751_vm0 = vcmask 670720   ;;  %v650_v22 = vrot.slane %v649_v50, 1  ;;  %v2529_v7 = vpop.permute.xlu0 %1006 }
 0x166   : > { %v672_v8 = vadd.f32 %v671_v2, %v670_v44  ;;  %v678_v63 = vrot.slane %v677_v23, 2  ;;  %v652_v35 = vsel %vm242_vm1, %v644_v26, 0.0  ;;  %vm519_vm3 = vcmask 1044480  }
 0x167   : > { %v720_v1 = vsel %vm273_vm5, %v718_v54, %v3150_v28  ;;  %v696_v30 = vcombine.high %v694_v4, %v694_v4  ;;  %v698_v31 = vsel %vm273_vm5, %v694_v4, 0.0  ;;  %v651_v24 = vadd.f32 %v650_v22, %v649_v50 }
 0x168   : > { %v722_v11 = vsel %vm721_vm10, %v715_v36, %v720_v1  ;;  %v673_v18 = vrot.slane %v672_v8, 1  ;;  %v679_v51 = vadd.f32 %v678_v63, %v677_v23  ;;  %v699_v59 = vrot.slane %v698_v31, 4 }
 0x169   : > { %v724_v9 = vmul.f32 %v722_v11, %v2246_v39  ;;  %v705_v44 = vsel %vm273_vm5, %v696_v30, 0.0  ;;  %vm801_vm10 = vcmask 662528   ;;  %v653_v54 = vsel %vm3132_vm4, %v651_v24, 0.0 }
 0x16a   : > { %v674_v2 = vadd.f32 %v673_v18, %v672_v8  ;;  %v680_v50 = vrot.slane %v679_v51, 1  ;;  %v706_v4 = vrot.slane %v705_v44, 4  ;;  %v778_v26 = vsel %vm3133_vm8, %v776_v56, %v652_v35 }
 0x16b   : > { %v726_v19 = vcombine.high %v724_v9, %v724_v9  ;;  %v728_v36 = vsel %vm273_vm5, %v724_v9, 0.0  ;;  %v700_v28 = vadd.f32 %v699_v59, %v698_v31  ;;  %v779_v9 = vsel %vm3133_vm8, %v777_v6, %v653_v54 }
 0x16c   : > { %v729_v23 = vrot.slane %v728_v36, 4  ;;  %v681_v22 = vadd.f32 %v680_v50, %v679_v51  ;;  %v682_v63 = vsel %vm250_vm6, %v674_v2, 0.0  ;;  %v707_v11 = vadd.f32 %v706_v4, %v705_v44  ;;  %v825_v51 = vpop.permute.xlu1 %824 }
 0x16d   : > { %v735_v1 = vsel %vm273_vm5, %v726_v19, 0.0  ;;  %v701_v0 = vrot.slane %v700_v28, 2  ;;  %v748_v8 = vrot.slane %v2509_v27, 4  ;;  %v780_v31 = vsel %vm273_vm5, %v778_v26, %v682_v63 }
 0x16e   : > { %v736_v30 = vrot.slane %v735_v1, 4  ;;  %v730_v24 = vadd.f32 %v729_v23, %v728_v36  ;;  %v683_v56 = vsel %vm3134_vm7, %v681_v22, 0.0  ;;  %v708_v35 = vrot.slane %v707_v11, 2  ;;  %v2546_v36 = vpop.permute.xlu0 %1056 }
 0x16f   : > { %vm3135_vm4 = vcmask 1045504   ;;  %v702_v59 = vadd.f32 %v701_v0, %v700_v28  ;;  %v3151_v44 = vrot.slane %v2360_v60, 4  ;;  %v798_v26 = vrot.slane %v795_v48, 4 }
 0x170   : > { %v737_v18 = vadd.f32 %v736_v30, %v735_v1  ;;  %v731_v19 = vrot.slane %v730_v24, 2  ;;  %v709_v54 = vadd.f32 %v708_v35, %v707_v11  ;;  %vm831_vm8 = vcmask 654336  }
 0x171   : > { %v750_v2 = vsel %vm273_vm5, %v748_v8, %v3151_v44  ;;  %v781_v23 = vsel %vm273_vm5, %v779_v9, %v683_v56  ;;  %v703_v1 = vrot.slane %v702_v59, 1  ;;  %v3152_v63 = vrot.slane %v2381_v58, 4  ;;  %v855_v56 = vpop.permute.xlu1 %854 }
 0x172   : > { %v738_v50 = vrot.slane %v737_v18, 2  ;;  %v752_v4 = vsel %vm751_vm0, %v2509_v27, %v750_v2  ;;  %v732_v0 = vadd.f32 %v731_v19, %v730_v24  ;;  %v710_v60 = vrot.slane %v709_v54, 1 }
 0x173   : > { %v754_v28 = vmul.f32 %v752_v4, %v2246_v39  ;;  %v800_v30 = vsel %vm273_vm5, %v798_v26, %v3152_v63  ;;  %v1059_v11 = vrot.slane %v2546_v36, 4  ;;  %v704_v8 = vadd.f32 %v703_v1, %v702_v59 }
 0x174   : > { %v739_v22 = vadd.f32 %v738_v50, %v737_v18  ;;  %v733_v35 = vrot.slane %v732_v0, 1  ;;  %v711_v2 = vadd.f32 %v710_v60, %v709_v54  ;;  %v802_v24 = vsel %vm801_vm10, %v795_v48, %v800_v30 }
 0x175   : > { %v756_v44 = vcombine.high %v754_v28, %v754_v28  ;;  %v758_v27 = vsel %vm273_vm5, %v754_v28, 0.0  ;;  %vm861_vm0 = vcmask 646144   ;;  %v712_v18 = vsel %vm258_vm9, %v704_v8, 0.0 }
 0x176   : > { %v740_v6 = vrot.slane %v739_v22, 1  ;;  %v759_v9 = vrot.slane %v758_v27, 4  ;;  %v734_v58 = vadd.f32 %v733_v35, %v732_v0  ;;  %v804_v50 = vmul.f32 %v802_v24, %v2246_v39 }
 0x177   : > { %v765_v19 = vsel %vm273_vm5, %v756_v44, 0.0  ;;  %v713_v59 = vsel %vm3136_vm13, %v711_v2, 0.0  ;;  %vm525_vm7 = vcmask 1046528   ;;  %v828_v26 = vrot.slane %v825_v51, 4  ;;  %v2573_v44 = vpop.permute.xlu0 %1085 }
 0x178   : > { %v741_v4 = vadd.f32 %v740_v6, %v739_v22  ;;  %v760_v54 = vadd.f32 %v759_v9, %v758_v27  ;;  %v782_v1 = vsel %vm519_vm3, %v780_v31, %v712_v18  ;;  %v742_v48 = vsel %vm210_vm15, %v734_v58, 0.0  ;;  %v2579_v18 = vpop.permute.xlu1 %884 }
 0x179   : > { %v766_v28 = vrot.slane %v765_v19, 4  ;;  %v806_v60 = vcombine.high %v804_v50, %v804_v50  ;;  %v783_v0 = vsel %vm519_vm3, %v781_v23, %v713_v59  ;;  %vm3153_vm10 = vcmp.ge.s32.totalorder %v2271_v53, 0 }
 0x17a   : > { %v743_v63 = vsel %vm3153_vm10, %v741_v4, 0.0  ;;  %v761_v30 = vrot.slane %v760_v54, 2  ;;  %v808_v8 = vsel %vm273_vm5, %v804_v50, 0.0  ;;  %v784_v6 = vsel %vm3135_vm4, %v782_v1, %v742_v48 }
 0x17b   : > { %v767_v22 = vadd.f32 %v766_v28, %v765_v19  ;;  %v809_v35 = vrot.slane %v808_v8, 4  ;;  %v815_v31 = vsel %vm273_vm5, %v806_v60, 0.0  ;;  %v785_v27 = vsel %vm3135_vm4, %v783_v0, %v743_v63 }
 0x17c   : > { %v762_v2 = vadd.f32 %v761_v30, %v760_v54  ;;  %v816_v9 = vrot.slane %v815_v31, 4  ;;  %v3154_v23 = vrot.slane %v2404_v21, 4  ;;  %v858_v59 = vrot.slane %v855_v56, 4 }
 0x17d   : > { %v768_v58 = vrot.slane %v767_v22, 2  ;;  %v810_v50 = vadd.f32 %v809_v35, %v808_v8  ;;  %v1088_v28 = vrot.slane %v2573_v44, 4  ;;  %vm891_vm10 = vcmask 637952  }
 0x17e   : > { %v830_v24 = vsel %vm273_vm5, %v828_v26, %v3154_v23  ;;  %v763_v4 = vrot.slane %v762_v2, 1  ;;  %v817_v1 = vadd.f32 %v816_v9, %v815_v31  ;;  %v3155_v21 = vrot.slane %v2428_v32, 4  ;;  %v2596_v9 = vpop.permute.xlu0 %1115 }
 0x17f   : > { %v832_v19 = vsel %vm831_vm8, %v825_v51, %v830_v24  ;;  %v769_v54 = vadd.f32 %v768_v58, %v767_v22  ;;  %v811_v60 = vrot.slane %v810_v50, 2  ;;  %v888_v0 = vrot.slane %v2579_v18, 4 }
 0x180   : > { %v834_v48 = vmul.f32 %v832_v19, %v2246_v39  ;;  %v860_v26 = vsel %vm273_vm5, %v858_v59, %v3155_v21  ;;  %v764_v63 = vadd.f32 %v763_v4, %v762_v2  ;;  %v818_v30 = vrot.slane %v817_v1, 2 }
 0x181   : > { %vm921_vm8 = vcmask 629760   ;;  %v770_v22 = vrot.slane %v769_v54, 1  ;;  %v812_v35 = vadd.f32 %v811_v60, %v810_v50  ;;  %v862_v32 = vsel %vm861_vm0, %v855_v56, %v860_v26 }
 0x182   : > { %v836_v8 = vcombine.high %v834_v48, %v834_v48  ;;  %v838_v51 = vsel %vm273_vm5, %v834_v48, 0.0  ;;  %vm3156_vm4 = vcmp.ge.s32.totalorder %v2239_v33, 0  ;;  %v819_v23 = vadd.f32 %v818_v30, %v817_v1 }
 0x183   : > { %v839_v31 = vrot.slane %v838_v51, 4  ;;  %v772_v2 = vsel %vm3156_vm4, %v764_v63, 0.0  ;;  %v864_v58 = vmul.f32 %v862_v32, %v2246_v39  ;;  %v771_v19 = vadd.f32 %v770_v22, %v769_v54 }
 0x184   : > { %v845_v24 = vsel %vm273_vm5, %v836_v8, 0.0  ;;  %v786_v59 = vsel %vm525_vm7, %v784_v6, %v772_v2  ;;  %v813_v4 = vrot.slane %v812_v35, 1  ;;  %v820_v50 = vrot.slane %v819_v23, 1  ;;  %v915_v8 = vpop.permute.xlu1 %914 }
 0x185   : > { %v840_v48 = vadd.f32 %v839_v31, %v838_v51  ;;  %788 = vst [vmem:[%s2593_s22 + $0x10] sm:$0xff] %v786_v59  ;;  %v846_v60 = vrot.slane %v845_v24, 4  ;;  %v866_v56 = vcombine.high %v864_v58, %v864_v58  ;;  %v868_v21 = vsel %vm273_vm5, %v864_v58, 0.0  ;;  %v268_v58 = vpop.permute.xlu0 %267 }
 0x186   : > { %v773_v26 = vsel %vm219_vm11, %v771_v19, 0.0  ;;  %v814_v1 = vadd.f32 %v813_v4, %v812_v35  ;;  %v869_v30 = vrot.slane %v868_v21, 4  ;;  %v821_v54 = vadd.f32 %v820_v50, %v819_v23 }
 0x187   : > { %v841_v63 = vrot.slane %v840_v48, 2  ;;  %v787_v39 = vsel %vm525_vm7, %v785_v27, %v773_v26  ;;  %v847_v6 = vadd.f32 %v846_v60, %v845_v24  ;;  %v875_v22 = vsel %vm273_vm5, %v866_v56, 0.0  ;;  %v2620_v56 = vld [vmem:[%s2235_s25] sm:$0xff] }
 0x188   : > { %789 = vst [vmem:[%s2593_s22 + $0x18] sm:$0xff] %v787_v39  ;;  %v822_v51 = vsel %vm226_vm12, %v814_v1, 0.0  ;;  %v870_v32 = vadd.f32 %v869_v30, %v868_v21  ;;  %v876_v2 = vrot.slane %v875_v22, 4  ;;  %vm275_vm4 = vcmask 941056  }
 0x189   : > { %v842_v31 = vadd.f32 %v841_v63, %v840_v48  ;;  %v823_v35 = vsel %vm227_vm14, %v821_v54, 0.0  ;;  %v848_v19 = vrot.slane %v847_v6, 2  ;;  %v3157_v27 = vrot.slane %v2458_v29, 4 }
 0x18a   : > { %v918_v24 = vrot.slane %v915_v8, 4  ;;  %v871_v4 = vrot.slane %v870_v32, 2  ;;  %v877_v50 = vadd.f32 %v876_v2, %v875_v22  ;;  %v3158_v26 = vrot.slane %v2481_v3, 4 }
 0x18b   : > { %v890_v23 = vsel %vm273_vm5, %v888_v0, %v3157_v27  ;;  %v843_v59 = vrot.slane %v842_v31, 1  ;;  %v849_v48 = vadd.f32 %v848_v19, %v847_v6  ;;  %v271_v63 = vrot.slane %v268_v58, 4 }
 0x18c   : > { %v892_v60 = vsel %vm891_vm10, %v2579_v18, %v890_v23  ;;  %v920_v1 = vsel %vm273_vm5, %v918_v24, %v3158_v26  ;;  %v872_v30 = vadd.f32 %v871_v4, %v870_v32  ;;  %v878_v0 = vrot.slane %v877_v50, 2 }
 0x18d   : > { %v894_v21 = vmul.f32 %v2620_v56, %v892_v60  ;;  %v844_v29 = vadd.f32 %v843_v59, %v842_v31  ;;  %v922_v39 = vsel %vm921_vm8, %v915_v8, %v920_v1  ;;  %v850_v54 = vrot.slane %v849_v48, 1 }
 0x18e   : > { %v924_v18 = vmul.f32 %v2620_v56, %v922_v39  ;;  %vm951_vm0 = vcmask 547840   ;;  %vm3159_vm10 = vcmask 1040384   ;;  %v873_v19 = vrot.slane %v872_v30, 1 }
 0x18f   : > { %v896_v22 = vcombine.high %v894_v21, %v894_v21  ;;  %v898_v2 = vsel %vm273_vm5, %v894_v21, 0.0  ;;  %v1034_v6 = vsel %vm3159_vm10, %v822_v51, %v844_v29  ;;  %v879_v27 = vadd.f32 %v878_v0, %v877_v50  ;;  %vm3160_vm8 = vmmov %vm3159_vm10 }
 0x190   : > { %v899_v3 = vrot.slane %v898_v2, 4  ;;  %v851_v23 = vadd.f32 %v850_v54, %v849_v48  ;;  %v926_v31 = vcombine.high %v924_v18, %v924_v18  ;;  %v928_v32 = vsel %vm273_vm5, %v924_v18, 0.0  ;;  %v945_v54 = vpop.permute.xlu1 %944 }
 0x191   : > { %v905_v24 = vsel %vm273_vm5, %v896_v22, 0.0  ;;  %v874_v59 = vadd.f32 %v873_v19, %v872_v30  ;;  %v880_v8 = vrot.slane %v879_v27, 1  ;;  %v929_v26 = vrot.slane %v928_v32, 4 }
 0x192   : > { %v900_v4 = vadd.f32 %v899_v3, %v898_v2  ;;  %v906_v60 = vrot.slane %v905_v24, 4  ;;  %v1035_v21 = vsel %vm3160_vm8, %v823_v35, %v851_v23  ;;  %v935_v1 = vsel %vm273_vm5, %v926_v31, 0.0 }
 0x193   : > { %v3161_v51 = vrot.slane %v2185_v13, 4  ;;  %v881_v29 = vadd.f32 %v880_v8, %v879_v27  ;;  %v882_v48 = vsel %vm242_vm1, %v874_v59, 0.0  ;;  %v1118_v30 = vrot.slane %v2596_v9, 4 }
 0x194   : > { %v901_v0 = vrot.slane %v900_v4, 2  ;;  %v907_v39 = vadd.f32 %v906_v60, %v905_v24  ;;  %v930_v22 = vadd.f32 %v929_v26, %v928_v32  ;;  %v936_v2 = vrot.slane %v935_v1, 4 }
 0x195   : > { %v274_v50 = vsel %vm273_vm5, %v271_v63, %v3161_v51  ;;  %v1036_v18 = vsel %vm511_vm2, %v1034_v6, %v882_v48  ;;  %vm3162_vm10 = vcmp.lt.s32.totalorder %v2254_v42, 16  ;;  %v948_v31 = vrot.slane %v945_v54, 4 }
 0x196   : > { %v276_v35 = vsel %vm275_vm4, %v268_v58, %v274_v50  ;;  %v902_v19 = vadd.f32 %v901_v0, %v900_v4  ;;  %v908_v3 = vrot.slane %v907_v39, 2  ;;  %v883_v63 = vsel %vm3162_vm10, %v881_v29, 0.0  ;;  %v1314_v29 = vpop.permute.xlu0 %1313 }
 0x197   : > { %v278_v13 = vmul.f32 %v2620_v56, %v276_v35  ;;  %v931_v27 = vrot.slane %v930_v22, 2  ;;  %v937_v23 = vadd.f32 %v936_v2, %v935_v1  ;;  %vm1320_vm8 = vcmask 384000  }
 0x198   : > { %v903_v24 = vrot.slane %v902_v19, 1  ;;  %v909_v59 = vadd.f32 %v908_v3, %v907_v39  ;;  %v950_v6 = vsel %vm273_vm5, %v948_v31, %v949_v5  ;;  %v1037_v35 = vsel %vm511_vm2, %v1035_v21, %v883_v63 }
 0x199   : > { %v280_v8 = vcombine.high %v278_v13, %v278_v13  ;;  %v282_v32 = vsel %vm273_vm5, %v278_v13, 0.0  ;;  %v932_v60 = vadd.f32 %v931_v27, %v930_v22  ;;  %v938_v58 = vrot.slane %v937_v23, 2 }
 0x19a   : > { %v283_v26 = vrot.slane %v282_v32, 4  ;;  %v904_v4 = vadd.f32 %v903_v24, %v902_v19  ;;  %v910_v51 = vrot.slane %v909_v59, 1  ;;  %v952_v1 = vsel %vm951_vm0, %v945_v54, %v950_v6  ;;  %v975_v6 = vpop.permute.xlu1 %974 }
 0x19b   : > { %v289_v50 = vsel %vm273_vm5, %v280_v8, 0.0  ;;  %v933_v48 = vrot.slane %v932_v60, 1  ;;  %v939_v0 = vadd.f32 %v938_v58, %v937_v23  ;;  %v954_v17 = vmul.f32 %v2620_v56, %v952_v1 }
 0x19c   : > { %v284_v39 = vadd.f32 %v283_v26, %v282_v32  ;;  %v290_v2 = vrot.slane %v289_v50, 4  ;;  %v911_v22 = vadd.f32 %v910_v51, %v909_v59  ;;  %v912_v3 = vsel %vm250_vm6, %v904_v4, 0.0 }
 0x19d   : > { %v934_v5 = vadd.f32 %v933_v48, %v932_v60  ;;  %v940_v19 = vrot.slane %v939_v0, 1  ;;  %v1317_v27 = vrot.slane %v1314_v29, 4  ;;  %vm3163_vm4 = vcmp.lt.s32.totalorder %v2259_v45, 16  ;;  %v2668_v48 = vpop.permute.xlu0 %1343 }
 0x19e   : > { %v285_v13 = vrot.slane %v284_v39, 2  ;;  %v913_v54 = vsel %vm3163_vm4, %v911_v22, 0.0  ;;  %v291_v31 = vadd.f32 %v290_v2, %v289_v50  ;;  %v956_v24 = vcombine.high %v954_v17, %v954_v17 }
 0x19f   : > { %v958_v23 = vsel %vm273_vm5, %v954_v17, 0.0  ;;  %vm3164_vm0 = vcmask 1042432   ;;  %v941_v21 = vadd.f32 %v940_v19, %v939_v0  ;;  %v942_v63 = vsel %vm258_vm9, %v934_v5, 0.0 }
 0x1a0   : > { %v1038_v8 = vsel %vm3164_vm0, %v1036_v18, %v912_v3  ;;  %v286_v59 = vadd.f32 %v285_v13, %v284_v39  ;;  %vm3165_vm10 = vmmov %vm3164_vm0  ;;  %v292_v60 = vrot.slane %v291_v31, 2  ;;  %v959_v58 = vrot.slane %v958_v23, 4 }
 0x1a1   : > { %v1039_v32 = vsel %vm3165_vm10, %v1037_v35, %v913_v54  ;;  %v965_v26 = vsel %vm273_vm5, %v956_v24, 0.0  ;;  %v943_v4 = vsel %vm3136_vm13, %v941_v21, 0.0  ;;  %v3166_v1 = vrot.slane %v2192_v15, 4 }
 0x1a2   : > { %v287_v51 = vrot.slane %v286_v59, 1  ;;  %v966_v50 = vrot.slane %v965_v26, 4  ;;  %v1040_v0 = vsel %vm273_vm5, %v1038_v8, %v942_v63  ;;  %v293_v39 = vadd.f32 %v292_v60, %v291_v31 }
 0x1a3   : > { %v1319_v18 = vsel %vm273_vm5, %v1317_v27, %v3166_v1  ;;  %v960_v2 = vadd.f32 %v959_v58, %v958_v23  ;;  %vm981_vm4 = vcmask 539648   ;;  %v978_v5 = vrot.slane %v975_v6, 4 }
 0x1a4   : > { %v1321_v35 = vsel %vm1320_vm8, %v1314_v29, %v1319_v18  ;;  %v288_v22 = vadd.f32 %v287_v51, %v286_v59  ;;  %v967_v3 = vadd.f32 %v966_v50, %v965_v26  ;;  %v1041_v19 = vsel %vm273_vm5, %v1039_v32, %v943_v4 }
 0x1a5   : > { %v1323_v17 = vmul.f32 %v2620_v56, %v1321_v35  ;;  %v294_v13 = vrot.slane %v293_v39, 1  ;;  %v961_v15 = vrot.slane %v960_v2, 2  ;;  %v1347_v27 = vrot.slane %v2668_v48, 4 }
 0x1a6   : > { %v296_v54 = vsel %vm210_vm15, %v288_v22, 0.0  ;;  %v968_v24 = vrot.slane %v967_v3, 2  ;;  %vm1350_vm8 = vcmask 375808   ;;  %vm3167_vm0 = vcmask 1040384  }
 0x1a7   : > { %v1325_v31 = vcombine.high %v1323_v17, %v1323_v17  ;;  %v1327_v23 = vsel %vm273_vm5, %v1323_v17, 0.0  ;;  %v295_v29 = vadd.f32 %v294_v13, %v293_v39  ;;  %v509_v8 = vsel %vm3167_vm0, %v296_v54, %v2329_v20  ;;  %v3172_v13 = vld [vmem:[#allocation8_spill] sm:$0xff]  ;;  %v1005_v54 = vpop.permute.xlu1 %1004 }
 0x1a8   : > { %v962_v21 = vadd.f32 %v961_v15, %v960_v2  ;;  %v1328_v63 = vrot.slane %v1327_v23, 4  ;;  %v512_v59 = vsel %vm511_vm2, %v509_v8, %v2345_v49  ;;  %v969_v32 = vadd.f32 %v968_v24, %v967_v3  ;;  %v3174_v24 = vld [vmem:[#allocation9_spill] sm:$0xff] }
 0x1a9   : > { %v1334_v60 = vsel %vm273_vm5, %v1325_v31, 0.0  ;;  %v3168_v58 = vrot.slane %v2513_v14, 4  ;;  %vm3169_vm10 = vcmp.ge.s32.totalorder %v2271_v53, 0  ;;  %vm3170_vm13 = vcmask 1042432  }
 0x1aa   : > { %v297_v4 = vsel %vm3169_vm10, %v295_v29, 0.0  ;;  %v515_v51 = vsel %vm3170_vm13, %v512_v59, %v2357_v37  ;;  %v963_v50 = vrot.slane %v962_v21, 1  ;;  %v1329_v20 = vadd.f32 %v1328_v63, %v1327_v23  ;;  %v3175_v29 = vld [vmem:[#allocation10_spill] sm:$0xff]  ;;  %v3176_v59 = vld [vmem:[#allocation3_spill] sm:$0xff] }
 0x1ab   : > { %v980_v26 = vsel %vm273_vm5, %v978_v5, %v3168_v58  ;;  %v510_v1 = vsel %vm3167_vm0, %v297_v4, %v2339_v61  ;;  %v517_v49 = vsel %vm273_vm5, %v515_v51, %v2395_v12  ;;  %v970_v18 = vrot.slane %v969_v32, 1  ;;  %v1574_v58 = vpop.permute.xlu0 %1573 }
 0x1ac   : > { %v1335_v39 = vrot.slane %v1334_v60, 4  ;;  %v513_v14 = vsel %vm511_vm2, %v510_v1, %v2355_v55  ;;  %v520_v2 = vsel %vm519_vm3, %v517_v49, %v2420_v57  ;;  %v964_v35 = vadd.f32 %v963_v50, %v962_v21 }
 0x1ad   : > { %v1330_v22 = vrot.slane %v1329_v20, 2  ;;  %v516_v37 = vsel %vm3170_vm13, %v513_v14, %v2378_v16  ;;  %vm3171_vm10 = vcmask 1045504   ;;  %v971_v3 = vadd.f32 %v970_v18, %v969_v32 }
 0x1ae   : > { %v523_v61 = vsel %vm3171_vm10, %v520_v2, %v2446_v10  ;;  %v1336_v17 = vadd.f32 %v1335_v39, %v1334_v60  ;;  %v518_v12 = vsel %vm273_vm5, %v516_v37, %v2416_v62  ;;  %v972_v55 = vsel %vm210_vm15, %v964_v35, 0.0 }
 0x1af   : > { %v526_v5 = vsel %vm525_vm7, %v523_v61, %v2464_v25  ;;  %v1331_v57 = vadd.f32 %v1330_v22, %v1329_v20  ;;  %v521_v15 = vsel %vm519_vm3, %v518_v12, %v3172_v13  ;;  %vm3173_vm0 = vcmp.ge.s32.totalorder %v2271_v53, 0 }
 0x1b0   : > { %528 = vst [vmem:[%s2593_s22] sm:$0xff] %v526_v5  ;;  %v973_v16 = vsel %vm3173_vm0, %v971_v3, 0.0  ;;  %v1337_v10 = vrot.slane %v1336_v17, 2  ;;  %vm1011_vm13 = vcmask 531456   ;;  %v524_v62 = vsel %vm3171_vm10, %v521_v15, %v3174_v24  ;;  %v1055_v3 = vpop.permute.xlu1 %1054  ;;  %v3179_v5 = vld [vmem:[#allocation4_spill] sm:$0xff] }
 0x1b1   : > { %v2716_v25 = vsel %vm519_vm3, %v1040_v0, %v972_v55  ;;  %v1332_v31 = vrot.slane %v1331_v57, 1  ;;  %v982_v23 = vsel %vm981_vm4, %v975_v6, %v980_v26  ;;  %v527_v8 = vsel %vm525_vm7, %v524_v62, %v3175_v29 }
 0x1b2   : > { %v1338_v21 = vadd.f32 %v1337_v10, %v1336_v17  ;;  %v984_v63 = vmul.f32 %v2620_v56, %v982_v23  ;;  %v3177_v32 = vrot.slane %v3176_v59, 4  ;;  %529 = vst [vmem:[%s2593_s22 + $0x8] sm:$0xff] %v527_v8  ;;  %v2727_v4 = vsel %vm519_vm3, %v1041_v19, %v973_v16 }
 0x1b3   : > { %v1333_v0 = vadd.f32 %v1332_v31, %v1331_v57  ;;  %v1008_v6 = vrot.slane %v1005_v54, 4  ;;  %v3178_v18 = vrot.slane %v2529_v7, 4  ;;  %vm1580_vm4 = vcmask 244736  }
 0x1b4   : > { %v1349_v60 = vsel %vm273_vm5, %v1347_v27, %v3177_v32  ;;  %v1339_v26 = vrot.slane %v1338_v21, 1  ;;  %v986_v50 = vcombine.high %v984_v63, %v984_v63  ;;  %v988_v20 = vsel %vm273_vm5, %v984_v63, 0.0 }
 0x1b5   : > { %v1351_v51 = vsel %vm1350_vm8, %v2668_v48, %v1349_v60  ;;  %v989_v49 = vrot.slane %v988_v20, 4  ;;  %v1010_v27 = vsel %vm273_vm5, %v1008_v6, %v3178_v18  ;;  %v1577_v39 = vrot.slane %v1574_v58, 4 }
 0x1b6   : > { %v1353_v1 = vmul.f32 %v2620_v56, %v1351_v51  ;;  %v1341_v19 = vsel %vm242_vm1, %v1333_v0, 0.0  ;;  %v995_v14 = vsel %vm273_vm5, %v986_v50, 0.0  ;;  %v1012_v61 = vsel %vm1011_vm13, %v1005_v54, %v1010_v27  ;;  %vm3183_vm13 = vmmov %vm3171_vm10 }
 0x1b7   : > { %v990_v35 = vadd.f32 %v989_v49, %v988_v20  ;;  %v996_v22 = vrot.slane %v995_v14, 4  ;;  %v1340_v17 = vadd.f32 %v1339_v26, %v1338_v21  ;;  %v1014_v12 = vmul.f32 %v2620_v56, %v1012_v61 }
 0x1b8   : > { %v1355_v48 = vcombine.high %v1353_v1, %v1353_v1  ;;  %v1357_v2 = vsel %vm273_vm5, %v1353_v1, 0.0  ;;  %v3180_v55 = vrot.slane %v3179_v5, 4  ;;  %v1058_v54 = vrot.slane %v1055_v3, 4 }
 0x1b9   : > { %v1358_v37 = vrot.slane %v1357_v2, 4  ;;  %v991_v13 = vrot.slane %v990_v35, 2  ;;  %v997_v15 = vadd.f32 %v996_v22, %v995_v14  ;;  %v1016_v24 = vcombine.high %v1014_v12, %v1014_v12 }
 0x1ba   : > { %v1364_v7 = vsel %vm273_vm5, %v1355_v48, 0.0  ;;  %v1579_v57 = vsel %vm273_vm5, %v1577_v39, %v3180_v55  ;;  %v1018_v62 = vsel %vm273_vm5, %v1014_v12, 0.0  ;;  %v1060_v60 = vsel %vm273_vm5, %v1058_v54, %v1059_v11 }
 0x1bb   : > { %v1359_v16 = vadd.f32 %v1358_v37, %v1357_v2  ;;  %v1365_v10 = vrot.slane %v1364_v7, 4  ;;  %v1581_v31 = vsel %vm1580_vm4, %v1574_v58, %v1579_v57  ;;  %v992_v23 = vadd.f32 %v991_v13, %v990_v35 }
 0x1bc   : > { %v998_v29 = vrot.slane %v997_v15, 2  ;;  %v1019_v63 = vrot.slane %v1018_v62, 4  ;;  %v1025_v59 = vsel %vm273_vm5, %v1016_v24, 0.0  ;;  %v1583_v32 = vmul.f32 %v2620_v56, %v1581_v31 }
 0x1bd   : > { %v1360_v8 = vrot.slane %v1359_v16, 2  ;;  %v1366_v21 = vadd.f32 %v1365_v10, %v1364_v7  ;;  %v993_v0 = vrot.slane %v992_v23, 1  ;;  %v1026_v58 = vrot.slane %v1025_v59, 4 }
 0x1be   : > { %v999_v51 = vadd.f32 %v998_v29, %v997_v15  ;;  %v1020_v50 = vadd.f32 %v1019_v63, %v1018_v62  ;;  %v1585_v20 = vcombine.high %v1583_v32, %v1583_v32  ;;  %v1587_v1 = vsel %vm273_vm5, %v1583_v32, 0.0 }
 0x1bf   : > { %v1361_v6 = vadd.f32 %v1360_v8, %v1359_v16  ;;  %v1367_v26 = vrot.slane %v1366_v21, 2  ;;  %v994_v49 = vadd.f32 %v993_v0, %v992_v23  ;;  %v1027_v48 = vadd.f32 %v1026_v58, %v1025_v59 }
 0x1c0   : > { %v1000_v18 = vrot.slane %v999_v51, 1  ;;  %v1021_v14 = vrot.slane %v1020_v50, 2  ;;  %v1588_v2 = vrot.slane %v1587_v1, 4  ;;  %v1594_v36 = vsel %vm273_vm5, %v1585_v20, 0.0  ;;  %v1084_v20 = vpop.permute.xlu1 %1083 }
 0x1c1   : > { %v1362_v27 = vrot.slane %v1361_v6, 1  ;;  %v1368_v39 = vadd.f32 %v1367_v26, %v1366_v21  ;;  %vm3181_vm8 = vcmp.ge.s32.totalorder %v2239_v33, 0  ;;  %vm3182_vm0 = vcmp.lt.s32.totalorder %v2254_v42, 16 }
 0x1c2   : > { %v1001_v35 = vadd.f32 %v1000_v18, %v999_v51  ;;  %v1002_v11 = vsel %vm3181_vm8, %v994_v49, 0.0  ;;  %v1342_v61 = vsel %vm3182_vm0, %v1340_v17, 0.0  ;;  %v1022_v7 = vadd.f32 %v1021_v14, %v1020_v50  ;;  %v1604_v17 = vpop.permute.xlu0 %1603 }
 0x1c3   : > { %v1363_v22 = vadd.f32 %v1362_v27, %v1361_v6  ;;  %v1369_v37 = vrot.slane %v1368_v39, 1  ;;  %v1028_v12 = vrot.slane %v1027_v48, 2  ;;  %v1589_v5 = vadd.f32 %v1588_v2, %v1587_v1  ;;  %v3189_v27 = vld [vmem:[#allocation5_spill] sm:$0xff] }
 0x1c4   : > { %v1044_v55 = vsel %vm3183_vm13, %v2716_v25, %v1002_v11  ;;  %v1595_v15 = vrot.slane %v1594_v36, 4  ;;  %v1003_v16 = vsel %vm219_vm11, %v1001_v35, 0.0  ;;  %vm3184_vm10 = vcmask 1040384  }
 0x1c5   : > { %v1370_v57 = vadd.f32 %v1369_v37, %v1368_v39  ;;  %v1371_v13 = vsel %vm250_vm6, %v1363_v22, 0.0  ;;  %v1023_v24 = vrot.slane %v1022_v7, 1  ;;  %v1029_v62 = vadd.f32 %v1028_v12, %v1027_v48  ;;  %vm3187_vm0 = vmmov %vm3184_vm10 }
 0x1c6   : > { %v2766_v10 = vsel %vm3184_vm10, %v1341_v19, %v1371_v13  ;;  %vm3185_vm4 = vcmp.lt.s32.totalorder %v2259_v45, 16  ;;  %v1590_v54 = vrot.slane %v1589_v5, 2  ;;  %v1596_v23 = vadd.f32 %v1595_v15, %v1594_v36  ;;  %v1374_v11 = vpop.permute.xlu0 %1373 }
 0x1c7   : > { %v1372_v31 = vsel %vm3185_vm4, %v1370_v57, 0.0  ;;  %vm3186_vm8 = vcmask 523264   ;;  %v1024_v8 = vadd.f32 %v1023_v24, %v1022_v7  ;;  %v1030_v21 = vrot.slane %v1029_v62, 1 }
 0x1c8   : > { %v1061_v25 = vsel %vm3186_vm8, %v1055_v3, %v1060_v60  ;;  %v2772_v29 = vsel %vm3187_vm0, %v1342_v61, %v1372_v31  ;;  %v1591_v19 = vadd.f32 %v1590_v54, %v1589_v5  ;;  %v1597_v59 = vrot.slane %v1596_v23, 2  ;;  %v3191_v54 = vld [vmem:[#allocation6_spill] sm:$0xff] }
 0x1c9   : > { %v1063_v63 = vmul.f32 %v2620_v56, %v1061_v25  ;;  %vm1610_vm13 = vcmask 236544   ;;  %v1607_v32 = vrot.slane %v1604_v17, 4  ;;  %v1031_v0 = vadd.f32 %v1030_v21, %v1029_v62 }
 0x1ca   : > { %v1032_v51 = vsel %vm226_vm12, %v1024_v8, 0.0  ;;  %v1592_v60 = vrot.slane %v1591_v19, 1  ;;  %v1598_v50 = vadd.f32 %v1597_v59, %v1596_v23  ;;  %vm3188_vm10 = vcmask 1045504   ;;  %v1114_v8 = vpop.permute.xlu1 %1113 }
 0x1cb   : > { %v1065_v6 = vcombine.high %v1063_v63, %v1063_v63  ;;  %v1067_v26 = vsel %vm273_vm5, %v1063_v63, 0.0  ;;  %v1046_v3 = vsel %vm525_vm7, %v1044_v55, %v1032_v51  ;;  %v1045_v1 = vsel %vm3188_vm10, %v2727_v4, %v1003_v16 }
 0x1cc   : > { %v1068_v58 = vrot.slane %v1067_v26, 4  ;;  %v1033_v49 = vsel %vm227_vm14, %v1031_v0, 0.0  ;;  %1048 = vst [vmem:[%s2593_s22 + $0x20] sm:$0xff] %v1046_v3  ;;  %v3190_v39 = vrot.slane %v3189_v27, 4  ;;  %v1593_v2 = vadd.f32 %v1592_v60, %v1591_v19 }
 0x1cd   : > { %v1074_v18 = vsel %vm273_vm5, %v1065_v6, 0.0  ;;  %v1047_v48 = vsel %vm525_vm7, %v1045_v1, %v1033_v49  ;;  %v1599_v36 = vrot.slane %v1598_v50, 1  ;;  %vm1090_vm4 = vcmask 515072  }
 0x1ce   : > { %v1609_v14 = vsel %vm273_vm5, %v1607_v32, %v3190_v39  ;;  %v1069_v35 = vadd.f32 %v1068_v58, %v1067_v26  ;;  %1049 = vst [vmem:[%s2593_s22 + $0x28] sm:$0xff] %v1047_v48  ;;  %v1075_v22 = vrot.slane %v1074_v18, 4  ;;  %v1087_v37 = vrot.slane %v1084_v20, 4 }
 0x1cf   : > { %v1611_v4 = vsel %vm1610_vm13, %v1604_v17, %v1609_v14  ;;  %v1600_v61 = vadd.f32 %v1599_v36, %v1598_v50  ;;  %vm1380_vm8 = vcmask 367616   ;;  %v2794_v5 = vsel %vm250_vm6, %v1593_v2, 0.0 }
 0x1d0   : > { %v1070_v7 = vrot.slane %v1069_v35, 2  ;;  %v1613_v12 = vmul.f32 %v2620_v56, %v1611_v4  ;;  %v1076_v55 = vadd.f32 %v1075_v22, %v1074_v18  ;;  %v1089_v57 = vsel %vm273_vm5, %v1087_v37, %v1088_v28 }
 0x1d1   : > { %v1377_v13 = vrot.slane %v1374_v11, 4  ;;  %vm1120_vm0 = vcmask 506880   ;;  %v1091_v31 = vsel %vm1090_vm4, %v1084_v20, %v1089_v57  ;;  %v3192_v23 = vrot.slane %v3191_v54, 4 }
 0x1d2   : > { %v1071_v15 = vadd.f32 %v1070_v7, %v1069_v35  ;;  %v1615_v16 = vcombine.high %v1613_v12, %v1613_v12  ;;  %v1617_v24 = vsel %vm273_vm5, %v1613_v12, 0.0  ;;  %v1077_v62 = vrot.slane %v1076_v55, 2 }
 0x1d3   : > { %v1618_v17 = vrot.slane %v1617_v24, 4  ;;  %v1379_v25 = vsel %vm273_vm5, %v1377_v13, %v3192_v23  ;;  %v1093_v28 = vmul.f32 %v2620_v56, %v1091_v31  ;;  %vm3193_vm13 = vcmp.lt.s32.totalorder %v2259_v45, 16 }
 0x1d4   : > { %v1072_v21 = vrot.slane %v1071_v15, 1  ;;  %v1624_v44 = vsel %vm273_vm5, %v1615_v16, 0.0  ;;  %v1381_v63 = vsel %vm1380_vm8, %v1374_v11, %v1379_v25  ;;  %v2807_v19 = vadd.f32 %v1077_v62, %v1076_v55 }
 0x1d5   : > { %v1619_v59 = vadd.f32 %v1618_v17, %v1617_v24  ;;  %v1625_v32 = vrot.slane %v1624_v44, 4  ;;  %v1383_v0 = vmul.f32 %v2620_v56, %v1381_v63  ;;  %v1602_v51 = vsel %vm3193_vm13, %v1600_v61, 0.0 }
 0x1d6   : > { %v1095_v6 = vcombine.high %v1093_v28, %v1093_v28  ;;  %v1097_v26 = vsel %vm273_vm5, %v1093_v28, 0.0  ;;  %v1117_v3 = vrot.slane %v1114_v8, 4  ;;  %v1073_v60 = vadd.f32 %v1072_v21, %v1071_v15  ;;  %v2825_v21 = vpop.permute.xlu1 %1143 }
 0x1d7   : > { %v1620_v50 = vrot.slane %v1619_v59, 2  ;;  %v1626_v58 = vadd.f32 %v1625_v32, %v1624_v44  ;;  %v1098_v20 = vrot.slane %v1097_v26, 4  ;;  %v1385_v49 = vcombine.high %v1383_v0, %v1383_v0 }
 0x1d8   : > { %v1104_v1 = vsel %vm273_vm5, %v1095_v6, 0.0  ;;  %v1387_v18 = vsel %vm273_vm5, %v1383_v0, 0.0  ;;  %v1119_v27 = vsel %vm273_vm5, %v1117_v3, %v1118_v30  ;;  %v1079_v39 = vrot.slane %v2807_v19, 1  ;;  %v1634_v30 = vpop.permute.xlu0 %1633 }
 0x1d9   : > { %v1621_v14 = vadd.f32 %v1620_v50, %v1619_v59  ;;  %v1627_v48 = vrot.slane %v1626_v58, 2  ;;  %v1099_v2 = vadd.f32 %v1098_v20, %v1097_v26  ;;  %v1105_v36 = vrot.slane %v1104_v1, 4 }
 0x1da   : > { %v1388_v35 = vrot.slane %v1387_v18, 4  ;;  %v1394_v11 = vsel %vm273_vm5, %v1385_v49, 0.0  ;;  %v1121_v22 = vsel %vm1120_vm0, %v1114_v8, %v1119_v27  ;;  %vm1640_vm10 = vcmask 154624  }
 0x1db   : > { %v1622_v4 = vrot.slane %v1621_v14, 1  ;;  %v1628_v37 = vadd.f32 %v1627_v48, %v1626_v58  ;;  %v1100_v61 = vrot.slane %v1099_v2, 2  ;;  %v1395_v7 = vrot.slane %v1394_v11, 4 }
 0x1dc   : > { %v1106_v12 = vadd.f32 %v1105_v36, %v1104_v1  ;;  %v1389_v55 = vadd.f32 %v1388_v35, %v1387_v18  ;;  %v1123_v9 = vmul.f32 %v2620_v56, %v1121_v22  ;;  %vm3194_vm4 = vcmask 1040384   ;;  %v1834_v1 = vpop.permute.xlu0 %1833  ;;  %v3198_v22 = vld [vmem:[#allocation7_spill] sm:$0xff] }
 0x1dd   : > { %v1623_v57 = vadd.f32 %v1622_v4, %v1621_v14  ;;  %v1629_v13 = vrot.slane %v1628_v37, 1  ;;  %v1101_v15 = vadd.f32 %v1100_v61, %v1099_v2  ;;  %v1396_v16 = vadd.f32 %v1395_v7, %v1394_v11  ;;  %vm3196_vm0 = vmmov %vm3194_vm4  ;;  %v1836_v61 = vpop.permute.xlu1 %1835 }
 0x1de   : > { %v1107_v24 = vrot.slane %v1106_v12, 2  ;;  %v1390_v62 = vrot.slane %v1389_v55, 2  ;;  %v1125_v17 = vcombine.high %v1123_v9, %v1123_v9  ;;  %v1127_v31 = vsel %vm273_vm5, %v1123_v9, 0.0  ;;  %vm3197_vm13 = vmmov %vm3196_vm0 }
 0x1df   : > { %v1630_v54 = vadd.f32 %v1629_v13, %v1628_v37  ;;  %v1631_v23 = vsel %vm258_vm9, %v1623_v57, 0.0  ;;  %v1102_v25 = vrot.slane %v1101_v15, 1  ;;  %v1397_v8 = vrot.slane %v1396_v16, 2 }
 0x1e0   : > { %v2829_v44 = vsel %vm3194_vm4, %v2794_v5, %v1631_v23  ;;  %v1108_v28 = vadd.f32 %v1107_v24, %v1106_v12  ;;  %v1391_v63 = vadd.f32 %v1390_v62, %v1389_v55  ;;  %v1128_v59 = vrot.slane %v1127_v31, 4  ;;  %v1146_v24 = vpop.permute.xlu0 %1145 }
 0x1e1   : > { %vm3195_vm8 = vcmp.lt.s32.totalorder %v2263_v47, 16  ;;  %v1103_v0 = vadd.f32 %v1102_v25, %v1101_v15  ;;  %v1398_v6 = vadd.f32 %v1397_v8, %v1396_v16  ;;  %v1134_v26 = vsel %vm273_vm5, %v1125_v17, 0.0  ;;  %v1404_v8 = vpop.permute.xlu1 %1403 }
 0x1e2   : > { %v1632_v32 = vsel %vm3195_vm8, %v1630_v54, 0.0  ;;  %v1109_v50 = vrot.slane %v1108_v28, 1  ;;  %v1392_v58 = vrot.slane %v1391_v63, 1  ;;  %v1129_v20 = vadd.f32 %v1128_v59, %v1127_v31  ;;  %vm3201_vm8 = vmmov %vm3196_vm0 }
 0x1e3   : > { %v2835_v3 = vsel %vm3196_vm0, %v1602_v51, %v1632_v32  ;;  %v1111_v5 = vsel %vm242_vm1, %v1103_v0, 0.0  ;;  %v1399_v49 = vrot.slane %v1398_v6, 1  ;;  %v1135_v18 = vrot.slane %v1134_v26, 4 }
 0x1e4   : > { %v1637_v27 = vrot.slane %v1634_v30, 4  ;;  %v1110_v14 = vadd.f32 %v1109_v50, %v1108_v28  ;;  %v1293_v48 = vsel %vm3197_vm13, %v1073_v60, %v1111_v5  ;;  %v1393_v2 = vadd.f32 %v1392_v58, %v1391_v63 }
 0x1e5   : > { %v1130_v36 = vrot.slane %v1129_v20, 2  ;;  %v1080_v35 = vadd.f32 %v1079_v39, %v2807_v19  ;;  %v1400_v11 = vadd.f32 %v1399_v49, %v1398_v6  ;;  %v1136_v51 = vadd.f32 %v1135_v18, %v1134_v26 }
 0x1e6   : > { %v3199_v4 = vrot.slane %v3198_v22, 4  ;;  %vm3200_vm4 = vcmp.lt.s32.totalorder %v2254_v42, 16  ;;  %v1401_v12 = vsel %vm258_vm9, %v1393_v2, 0.0  ;;  %vm3202_vm0 = vcmp.lt.s32.totalorder %v2263_v47, 16 }
 0x1e7   : > { %v1112_v7 = vsel %vm3200_vm4, %v1110_v14, 0.0  ;;  %v1131_v55 = vadd.f32 %v1130_v36, %v1129_v20  ;;  %v1402_v19 = vsel %vm3202_vm0, %v1400_v11, 0.0  ;;  %v2854_v39 = vsel %vm511_vm2, %v2766_v10, %v1401_v12  ;;  %v1406_v20 = vpop.permute.xlu0 %1405 }
 0x1e8   : > { %v1639_v37 = vsel %vm273_vm5, %v1637_v27, %v3199_v4  ;;  %v1294_v9 = vsel %vm3201_vm8, %v1080_v35, %v1112_v7  ;;  %v1137_v57 = vrot.slane %v1136_v51, 2  ;;  %v2858_v13 = vsel %vm511_vm2, %v2772_v29, %v1402_v19 }
 0x1e9   : > { %v1641_v60 = vsel %vm1640_vm10, %v1634_v30, %v1639_v37  ;;  %v1132_v15 = vrot.slane %v1131_v55, 1  ;;  %v1147_v25 = vrot.slane %v2825_v21, 4  ;;  %v1838_v10 = vrot.slane %v1836_v61, 4 }
 0x1ea   : > { %v1643_v16 = vmul.f32 %v2620_v56, %v1641_v60  ;;  %v1138_v62 = vadd.f32 %v1137_v57, %v1136_v51  ;;  %v1837_v63 = vrot.slane %v1834_v1, 4  ;;  %vm1840_vm10 = vcmask 105472  }
 0x1eb   : > { %v1133_v30 = vadd.f32 %v1132_v15, %v1131_v55  ;;  %vm1150_vm13 = vcmask 498688   ;;  %v1148_v50 = vrot.slane %v1146_v24, 4  ;;  %v1407_v58 = vrot.slane %v1404_v8, 4  ;;  %v1666_v19 = vpop.permute.xlu0 %1665 }
 0x1ec   : > { %v1645_v17 = vcombine.high %v1643_v16, %v1643_v16  ;;  %v1647_v31 = vsel %vm273_vm5, %v1643_v16, 0.0  ;;  %v1139_v54 = vrot.slane %v1138_v62, 1  ;;  %v1839_v26 = vsel %vm273_vm5, %v1837_v63, %v1838_v10 }
 0x1ed   : > { %v1648_v23 = vrot.slane %v1647_v31, 4  ;;  %v1141_v28 = vsel %vm250_vm6, %v1133_v30, 0.0  ;;  %vm3203_vm4 = vcmp.lt.s32.totalorder %v2259_v45, 16  ;;  %v1841_v27 = vsel %vm1840_vm10, %v1834_v1, %v1839_v26 }
 0x1ee   : > { %v1654_v29 = vsel %vm273_vm5, %v1645_v17, 0.0  ;;  %v1140_v59 = vadd.f32 %v1139_v54, %v1138_v62  ;;  %v2867_v32 = vsel %vm511_vm2, %v1293_v48, %v1141_v28  ;;  %v1843_v48 = vmul.f32 %v2620_v56, %v1841_v27 }
 0x1ef   : > { %v1649_v0 = vadd.f32 %v1648_v23, %v1647_v31  ;;  %v1655_v6 = vrot.slane %v1654_v29, 4  ;;  %v1149_v2 = vsel %vm273_vm5, %v1147_v25, %v1148_v50  ;;  %vm1410_vm8 = vcmask 285696  }
 0x1f0   : > { %v1142_v5 = vsel %vm3203_vm4, %v1140_v59, 0.0  ;;  %v1151_v11 = vsel %vm1150_vm13, %v2825_v21, %v1149_v2  ;;  %v1408_v51 = vrot.slane %v1406_v20, 4  ;;  %v1845_v22 = vcombine.high %v1843_v48, %v1843_v48 }
 0x1f1   : > { %v1650_v49 = vrot.slane %v1649_v0, 2  ;;  %v1656_v18 = vadd.f32 %v1655_v6, %v1654_v29  ;;  %v2873_v14 = vsel %vm511_vm2, %v1294_v9, %v1142_v5  ;;  %v1847_v4 = vsel %vm273_vm5, %v1843_v48, 0.0  ;;  %v1664_v9 = vpop.permute.xlu1 %1663 }
 0x1f2   : > { %v1848_v7 = vrot.slane %v1847_v4, 4  ;;  %v1409_v1 = vsel %vm273_vm5, %v1407_v58, %v1408_v51  ;;  %v1854_v12 = vsel %vm273_vm5, %v1845_v22, 0.0  ;;  %v1153_v55 = vmul.f32 %v2620_v56, %v1151_v11  ;;  %v1176_v58 = vpop.permute.xlu0 %1175 }
 0x1f3   : > { %v1651_v36 = vadd.f32 %v1650_v49, %v1649_v0  ;;  %v1657_v35 = vrot.slane %v1656_v18, 2  ;;  %v1411_v60 = vsel %vm1410_vm8, %v1404_v8, %v1409_v1  ;;  %v1855_v21 = vrot.slane %v1854_v12, 4 }
 0x1f4   : > { %v1849_v16 = vadd.f32 %v1848_v7, %v1847_v4  ;;  %v2090_v24 = vmov 1966171168   ;;  %v1413_v30 = vmul.f32 %v2620_v56, %v1411_v60  ;;  %v1667_v10 = vrot.slane %v1664_v9, 4 }
 0x1f5   : > { %v1652_v37 = vrot.slane %v1651_v36, 1  ;;  %v1658_v61 = vadd.f32 %v1657_v35, %v1656_v18  ;;  %v1867_v62 = vunpack.c.l.s4 %v2090_v24  ;;  %v1856_v23 = vadd.f32 %v1855_v21, %v1854_v12  ;;  %v1174_v50 = vpop.permute.xlu1 %1173 }
 0x1f6   : > { %v1850_v54 = vrot.slane %v1849_v16, 2  ;;  %vm3204_vm0 = vcmp.ge.s32.totalorder %v2271_v53, 0  ;;  %v1157_v63 = vsel %vm273_vm5, %v1153_v55, 0.0  ;;  %v3205_v6 = vlaneseq  ;;  %v1436_v12 = vpop.permute.xlu0 %1435 }
 0x1f7   : > { %v1653_v57 = vadd.f32 %v1652_v37, %v1651_v36  ;;  %v1659_v15 = vrot.slane %v1658_v61, 1  ;;  %v1857_v29 = vrot.slane %v1856_v23, 2  ;;  %v1868_v0 = vunpack.c.0.s8 %v1867_v62 }
 0x1f8   : > { %v1851_v28 = vadd.f32 %v1850_v54, %v1849_v16  ;;  %v1870_v26 = vshrl.u32 %v3205_v6, 7  ;;  %v1415_v5 = vcombine.high %v1413_v30, %v1413_v30  ;;  %v1668_v49 = vrot.slane %v1666_v19, 4 }
 0x1f9   : > { %v1660_v17 = vadd.f32 %v1659_v15, %v1658_v61  ;;  %v1661_v31 = vsel %vm210_vm15, %v1653_v57, 0.0  ;;  %v1155_v18 = vcombine.high %v1153_v55, %v1153_v55  ;;  %v1158_v27 = vrot.slane %v1157_v63, 4  ;;  %v1434_v1 = vpop.permute.xlu1 %1433 }
 0x1fa   : > { %v2887_v25 = vsel %vm511_vm2, %v2829_v44, %v1661_v31  ;;  %v1852_v20 = vrot.slane %v1851_v28, 1  ;;  %v1858_v44 = vadd.f32 %v1857_v29, %v1856_v23  ;;  %vm1670_vm10 = vcmask 146432  }
 0x1fb   : > { %v1662_v8 = vsel %vm3204_vm0, %v1660_v17, 0.0  ;;  %v1417_v36 = vsel %vm273_vm5, %v1413_v30, 0.0  ;;  %v1669_v35 = vsel %vm273_vm5, %v1667_v10, %v1668_v49  ;;  %v1424_v51 = vsel %vm273_vm5, %v1415_v5, 0.0 }
 0x1fc   : > { %v2894_v59 = vsel %vm511_vm2, %v2835_v3, %v1662_v8  ;;  %v1853_v48 = vadd.f32 %v1852_v20, %v1851_v28  ;;  %v1859_v2 = vrot.slane %v1858_v44, 1  ;;  %v1871_v3 = vsub.s32 %v1868_v0, %v1870_v26  ;;  %v1696_v0 = vpop.permute.xlu0 %1695 }
 0x1fd   : > { %v1671_v22 = vsel %vm1670_vm10, %v1664_v9, %v1669_v35  ;;  %v1159_v4 = vadd.f32 %v1158_v27, %v1157_v63  ;;  %v1164_v37 = vsel %vm273_vm5, %v1155_v18, 0.0  ;;  %v1418_v61 = vrot.slane %v1417_v36, 4  ;;  %v1694_v63 = vpop.permute.xlu1 %1693 }
 0x1fe   : > { %v1860_v11 = vadd.f32 %v1859_v2, %v1858_v44  ;;  %v1177_v7 = vrot.slane %v1174_v50, 4  ;;  %v1861_v55 = vsel %vm258_vm9, %v1853_v48, 0.0  ;;  %vm3206_vm2 = vcmp.lt.s32.totalorder %v2263_v47, 16 }
 0x1ff   : > { %v1673_v19 = vmul.f32 %v2620_v56, %v1671_v22  ;;  %v1178_v57 = vrot.slane %v1176_v58, 4  ;;  %v1425_v16 = vrot.slane %v1424_v51, 4  ;;  %vm2907_vm13 = vcmp.lt.s32.totalorder %v3205_v6, 256 }
 0x200   : > { %v1862_v60 = vsel %vm3206_vm2, %v1860_v11, 0.0  ;;  %v1165_v30 = vrot.slane %v1164_v37, 4  ;;  %vm1180_vm4 = vcmask 416768   ;;  %v1160_v31 = vrot.slane %v1159_v4, 2 }
 0x201   : > { %v1865_v15 = vcombine.low %v1861_v55, %v1862_v60  ;;  %v1675_v21 = vcombine.high %v1673_v19, %v1673_v19  ;;  %v1677_v24 = vsel %vm273_vm5, %v1673_v19, 0.0  ;;  %v1419_v54 = vadd.f32 %v1418_v61, %v1417_v36  ;;  %v1204_v55 = vpop.permute.xlu1 %1203  ;;  %v1206_v60 = vpop.permute.xlu0 %1205 }
 0x202   : > { %v1678_v17 = vrot.slane %v1677_v24, 4  ;;  %v1179_v10 = vsel %vm273_vm5, %v1177_v7, %v1178_v57  ;;  %v1426_v28 = vadd.f32 %v1425_v16, %v1424_v51  ;;  %v1437_v58 = vrot.slane %v1434_v1, 4 }
 0x203   : > { %v1872_v62 = vrot.slane %v1865_v15, %v1871_v3  ;;  %v1684_v23 = vsel %vm273_vm5, %v1675_v21, 0.0  ;;  %v1181_v26 = vsel %vm1180_vm4, %v1174_v50, %v1179_v10  ;;  %v1166_v20 = vadd.f32 %v1165_v30, %v1164_v37 }
 0x204   : > { %v1685_v29 = vrot.slane %v1684_v23, 4  ;;  %v1679_v6 = vadd.f32 %v1678_v17, %v1677_v24  ;;  %v1183_v5 = vmul.f32 %v2620_v56, %v1181_v26  ;;  %v1438_v49 = vrot.slane %v1436_v12, 4 }
 0x205   : > { %v1879_v8 = vrot.slane %v1872_v62, %v1871_v3  ;;  %v1161_v18 = vadd.f32 %v1160_v31, %v1159_v4  ;;  %v1420_v27 = vrot.slane %v1419_v54, 2  ;;  %v1697_v48 = vrot.slane %v1694_v63, 4 }
 0x206   : > { %v1686_v44 = vadd.f32 %v1685_v29, %v1684_v23  ;;  %v1698_v2 = vrot.slane %v1696_v0, 4  ;;  %v1427_v36 = vrot.slane %v1426_v28, 2  ;;  %v1185_v35 = vcombine.high %v1183_v5, %v1183_v5 }
 0x207   : > { %1965 = vst.msk [vmem:[%s2593_s22 + $0x60] ss:$8 sm:$0x3] %vm2907_vm13, %v1879_v8  ;;  %vm1440_vm8 = vcmask 277504   ;;  %vm1700_vm0 = vcmask 138240   ;;  %v1680_v3 = vrot.slane %v1679_v6, 2  ;;  %v1439_v11 = vsel %vm273_vm5, %v1437_v58, %v1438_v49 }
 0x208   : > { %v1187_v50 = vsel %vm273_vm5, %v1183_v5, 0.0  ;;  %v1699_v51 = vsel %vm273_vm5, %v1697_v48, %v1698_v2  ;;  %v1687_v22 = vrot.slane %v1686_v44, 2  ;;  %v1194_v61 = vsel %vm273_vm5, %v1185_v35, 0.0 }
 0x209   : > { %v1188_v37 = vrot.slane %v1187_v50, 4  ;;  %v1195_v7 = vrot.slane %v1194_v61, 4  ;;  %v1441_v4 = vsel %vm1440_vm8, %v1434_v1, %v1439_v11  ;;  %v1701_v12 = vsel %vm1700_vm0, %v1694_v63, %v1699_v51 }
 0x20a   : > { %v1167_v19 = vrot.slane %v1166_v20, 2  ;;  %v1421_v57 = vadd.f32 %v1420_v27, %v1419_v54  ;;  %v1443_v15 = vmul.f32 %v2620_v56, %v1441_v4  ;;  %v1162_v16 = vrot.slane %v1161_v18, 1 }
 0x20b   : > { %v1428_v9 = vadd.f32 %v1427_v36, %v1426_v28  ;;  %v1681_v21 = vadd.f32 %v1680_v3, %v1679_v6  ;;  %v1703_v24 = vmul.f32 %v2620_v56, %v1701_v12  ;;  %v1688_v62 = vadd.f32 %v1687_v22, %v1686_v44  ;;  %v1464_v56 = vpop.permute.xlu1 %1463  ;;  %v1466_v44 = vpop.permute.xlu0 %1465 }
 0x20c   : > { %v1189_v30 = vadd.f32 %v1188_v37, %v1187_v50  ;;  %v1445_v17 = vcombine.high %v1443_v15, %v1443_v15  ;;  %v1207_v31 = vrot.slane %v1204_v55, 4  ;;  %v1196_v23 = vadd.f32 %v1195_v7, %v1194_v61 }
 0x20d   : > { %v1447_v10 = vsel %vm273_vm5, %v1443_v15, 0.0  ;;  %v1705_v1 = vcombine.high %v1703_v24, %v1703_v24  ;;  %v1208_v8 = vrot.slane %v1206_v60, 4  ;;  %v1168_v29 = vadd.f32 %v1167_v19, %v1166_v20 }
 0x20e   : > { %v1422_v63 = vrot.slane %v1421_v57, 1  ;;  %v1448_v0 = vrot.slane %v1447_v10, 4  ;;  %v1454_v54 = vsel %vm273_vm5, %v1445_v17, 0.0  ;;  %v1163_v26 = vadd.f32 %v1162_v16, %v1161_v18 }
 0x20f   : > { %v1429_v58 = vrot.slane %v1428_v9, 1  ;;  %v1682_v28 = vrot.slane %v1681_v21, 1  ;;  %v1707_v6 = vsel %vm273_vm5, %v1703_v24, 0.0  ;;  %v1689_v5 = vrot.slane %v1688_v62, 1  ;;  %v1234_v15 = vpop.permute.xlu1 %1233  ;;  %v1236_v16 = vpop.permute.xlu0 %1235 }
 0x210   : > { %v1190_v49 = vrot.slane %v1189_v30, 2  ;;  %v1455_v27 = vrot.slane %v1454_v54, 4  ;;  %vm1210_vm10 = vcmask 408576   ;;  %v1197_v48 = vrot.slane %v1196_v23, 2 }
 0x211   : > { %v1449_v2 = vadd.f32 %v1448_v0, %v1447_v10  ;;  %v1714_v36 = vsel %vm273_vm5, %v1705_v1, 0.0  ;;  %v1209_v20 = vsel %vm273_vm5, %v1207_v31, %v1208_v8  ;;  %v1169_v35 = vrot.slane %v1168_v29, 1 }
 0x212   : > { %v1423_v3 = vadd.f32 %v1422_v63, %v1421_v57  ;;  %v1708_v50 = vrot.slane %v1707_v6, 4  ;;  %v1171_v18 = vsel %vm258_vm9, %v1163_v26, 0.0  ;;  %v1430_v11 = vadd.f32 %v1429_v58, %v1428_v9 }
 0x213   : > { %v1683_v51 = vadd.f32 %v1682_v28, %v1681_v21  ;;  %v1690_v22 = vadd.f32 %v1689_v5, %v1688_v62  ;;  %v1456_v37 = vadd.f32 %v1455_v27, %v1454_v54  ;;  %v1715_v61 = vrot.slane %v1714_v36, 4  ;;  %v2940_v62 = vld [vmem:[%s2235_s25] sm:$0xff]  ;;  %v1726_v5 = vpop.permute.xlu0 %1725 }
 0x214   : > { %v1211_v7 = vsel %vm1210_vm10, %v1204_v55, %v1209_v20  ;;  %v1191_v4 = vadd.f32 %v1190_v49, %v1189_v30  ;;  %v1198_v12 = vadd.f32 %v1197_v48, %v1196_v23  ;;  %v1450_v60 = vrot.slane %v1449_v2, 2 }
 0x215   : > { %v1467_v19 = vrot.slane %v1464_v56, 4  ;;  %v1170_v24 = vadd.f32 %v1169_v35, %v1168_v29  ;;  %vm3209_vm2 = vcmask 1042432   ;;  %v1431_v46 = vsel %vm210_vm15, %v1423_v3, 0.0 }
 0x216   : > { %v2933_v57 = vsel %vm3209_vm2, %v2867_v32, %v1171_v18  ;;  %v1709_v9 = vadd.f32 %v1708_v50, %v1707_v6  ;;  %vm3210_vm9 = vcmp.ge.s32.totalorder %v2271_v53, 0  ;;  %v1213_v55 = vmul.f32 %v2940_v62, %v1211_v7  ;;  %vm3213_vm0 = vmmov %vm3209_vm2 }
 0x217   : > { %v1432_v21 = vsel %vm3210_vm9, %v1430_v11, 0.0  ;;  %vm1470_vm13 = vcmask 269312   ;;  %v1468_v30 = vrot.slane %v1466_v44, 4  ;;  %vm3211_vm4 = vcmp.ge.s32.totalorder %v2239_v33, 0  ;;  %vm3214_vm10 = vmmov %vm3213_vm0 }
 0x218   : > { %v1691_v17 = vsel %vm3211_vm4, %v1683_v51, 0.0  ;;  %v1692_v32 = vsel %vm219_vm11, %v1690_v22, 0.0  ;;  %v1457_v31 = vrot.slane %v1456_v37, 2  ;;  %v1716_v23 = vadd.f32 %v1715_v61, %v1714_v36  ;;  %vm3215_vm2 = vmmov %vm3213_vm0 }
 0x219   : > { %v1192_v10 = vrot.slane %v1191_v4, 1  ;;  %v1199_v1 = vrot.slane %v1198_v12, 1  ;;  %v1451_v8 = vadd.f32 %v1450_v60, %v1449_v2  ;;  %v1469_v29 = vsel %vm273_vm5, %v1467_v19, %v1468_v30  ;;  %vm3216_vm9 = vmmov %vm3213_vm0  ;;  %v1756_v19 = vpop.permute.xlu0 %1755 }
 0x21a   : > { %vm3212_vm8 = vcmp.lt.s32.totalorder %v2263_v47, 16  ;;  %v2954_v0 = vsel %vm3213_vm0, %v2854_v39, %v1431_v46  ;;  %v1710_v54 = vrot.slane %v1709_v9, 2  ;;  %v1471_v26 = vsel %vm1470_vm13, %v1464_v56, %v1469_v29  ;;  %v1724_v47 = vpop.permute.xlu1 %1723 }
 0x21b   : > { %v2950_v63 = vsel %vm3212_vm8, %v1170_v24, 0.0  ;;  %v2958_v58 = vsel %vm3214_vm10, %v2858_v13, %v1432_v21  ;;  %v2962_v28 = vsel %vm3215_vm2, %v2887_v25, %v1691_v17  ;;  %v1215_v6 = vcombine.high %v1213_v55, %v1213_v55 }
 0x21c   : > { %v1217_v44 = vsel %vm273_vm5, %v1213_v55, 0.0  ;;  %v2967_v49 = vsel %vm3216_vm9, %v2894_v59, %v1692_v32  ;;  %v1458_v39 = vadd.f32 %v1457_v31, %v1456_v37  ;;  %v1717_v27 = vrot.slane %v1716_v23, 2 }
 0x21d   : > { %v1473_v56 = vmul.f32 %v2940_v62, %v1471_v26  ;;  %v1193_v48 = vadd.f32 %v1192_v10, %v1191_v4  ;;  %v2970_v13 = vadd.f32 %v1199_v1, %v1198_v12  ;;  %v1452_v2 = vrot.slane %v1451_v8, 1 }
 0x21e   : > { %v1237_v36 = vrot.slane %v1234_v15, 4  ;;  %v1711_v25 = vadd.f32 %v1710_v54, %v1709_v9  ;;  %v1218_v20 = vrot.slane %v1217_v44, 4  ;;  %v1224_v50 = vsel %vm273_vm5, %v1215_v6, 0.0  ;;  %v1754_v60 = vpop.permute.xlu1 %1753 }
 0x21f   : > { %v1475_v35 = vcombine.high %v1473_v56, %v1473_v56  ;;  %v1477_v3 = vsel %vm273_vm5, %v1473_v56, 0.0  ;;  %vm1240_vm13 = vcmask 400384   ;;  %v1238_v59 = vrot.slane %v1236_v16, 4 }
 0x220   : > { %v1478_v18 = vrot.slane %v1477_v3, 4  ;;  %v1459_v11 = vrot.slane %v1458_v39, 1  ;;  %v1718_v51 = vadd.f32 %v1717_v27, %v1716_v23  ;;  %v1727_v37 = vrot.slane %v1724_v47, 4 }
 0x221   : > { %v1484_v22 = vsel %vm273_vm5, %v1475_v35, 0.0  ;;  %v1453_v61 = vadd.f32 %v1452_v2, %v1451_v8  ;;  %v1239_v12 = vsel %vm273_vm5, %v1237_v36, %v1238_v59  ;;  %v1219_v24 = vadd.f32 %v1218_v20, %v1217_v44 }
 0x222   : > { %v1479_v7 = vadd.f32 %v1478_v18, %v1477_v3  ;;  %v1485_v4 = vrot.slane %v1484_v22, 4  ;;  %v1225_v46 = vrot.slane %v1224_v50, 4  ;;  %v1241_v9 = vsel %vm1240_vm13, %v1234_v15, %v1239_v12  ;;  %v1496_v3 = vpop.permute.xlu0 %1495 }
 0x223   : > { %v1728_v21 = vrot.slane %v1726_v5, 4  ;;  %v1243_v16 = vmul.f32 %v2940_v62, %v1241_v9  ;;  %vm1730_vm4 = vcmask 130048   ;;  %v1712_v17 = vrot.slane %v1711_v25, 1 }
 0x224   : > { %v1480_v55 = vrot.slane %v1479_v7, 2  ;;  %v1486_v30 = vadd.f32 %v1485_v4, %v1484_v22  ;;  %v1757_v31 = vrot.slane %v1754_v60, 4  ;;  %v1758_v23 = vrot.slane %v1756_v19, 4 }
 0x225   : > { %v1729_v32 = vsel %vm273_vm5, %v1727_v37, %v1728_v21  ;;  %v2980_v10 = vsel %vm210_vm15, %v1193_v48, 0.0  ;;  %v1460_v1 = vadd.f32 %v1459_v11, %v1458_v39  ;;  %v1719_v8 = vrot.slane %v1718_v51, 1  ;;  %v1494_v48 = vpop.permute.xlu1 %1493 }
 0x226   : > { %v1487_v29 = vrot.slane %v1486_v30, 2  ;;  %v1226_v54 = vadd.f32 %v1225_v46, %v1224_v50  ;;  %v1245_v15 = vcombine.high %v1243_v16, %v1243_v16  ;;  %v1247_v26 = vsel %vm273_vm5, %v1243_v16, 0.0 }
 0x227   : > { %v1731_v6 = vsel %vm1730_vm4, %v1724_v47, %v1729_v32  ;;  %v1220_v44 = vrot.slane %v1219_v24, 2  ;;  %v1481_v5 = vadd.f32 %v1480_v55, %v1479_v7  ;;  %vm1760_vm8 = vcmask 121856  }
 0x228   : > { %v1733_v27 = vmul.f32 %v2940_v62, %v1731_v6  ;;  %vm3217_vm0 = vcmp.ge.s32.totalorder %v2239_v33, 0  ;;  %v1713_v2 = vadd.f32 %v1712_v17, %v1711_v25  ;;  %v1254_v52 = vsel %vm273_vm5, %v1245_v15, 0.0 }
 0x229   : > { %v1461_v56 = vsel %vm3217_vm0, %v1453_v61, 0.0  ;;  %v1759_v39 = vsel %vm273_vm5, %v1757_v31, %v1758_v23  ;;  %v1462_v36 = vsel %vm219_vm11, %v1460_v1, 0.0  ;;  %v1720_v20 = vadd.f32 %v1719_v8, %v1718_v51  ;;  %v1524_v8 = vpop.permute.xlu1 %1523 }
 0x22a   : > { %v1488_v35 = vadd.f32 %v1487_v29, %v1486_v30  ;;  %v1248_v47 = vrot.slane %v1247_v26, 4  ;;  %v1227_v50 = vrot.slane %v1226_v54, 2  ;;  %v1735_v18 = vcombine.high %v1733_v27, %v1733_v27 }
 0x22b   : > { %v1737_v59 = vsel %vm273_vm5, %v1733_v27, 0.0  ;;  %v1761_v11 = vsel %vm1760_vm8, %v1754_v60, %v1759_v39  ;;  %v1221_v22 = vadd.f32 %v1220_v44, %v1219_v24  ;;  %v1482_v37 = vrot.slane %v1481_v5, 1  ;;  %v1526_v27 = vpop.permute.xlu0 %1525 }
 0x22c   : > { %v1255_v25 = vrot.slane %v1254_v52, 4  ;;  %v1497_v61 = vrot.slane %v1494_v48, 4  ;;  %v1738_v7 = vrot.slane %v1737_v59, 4  ;;  %v1744_v4 = vsel %vm273_vm5, %v1735_v18, 0.0 }
 0x22d   : > { %v1763_v12 = vmul.f32 %v2940_v62, %v1761_v11  ;;  %v1498_v19 = vrot.slane %v1496_v3, 4  ;;  %v1559_v51 = vsel %vm273_vm5, %v2954_v0, %v1461_v56  ;;  %v1489_v46 = vrot.slane %v1488_v35, 1  ;;  %v1784_v11 = vpop.permute.xlu1 %1783 }
 0x22e   : > { %v1249_v9 = vadd.f32 %v1248_v47, %v1247_v26  ;;  %v1745_v21 = vrot.slane %v1744_v4, 4  ;;  %v1721_v55 = vsel %vm226_vm12, %v1713_v2, 0.0  ;;  %v1722_v60 = vsel %vm227_vm14, %v1720_v20, 0.0 }
 0x22f   : > { %v1765_v24 = vcombine.high %v1763_v12, %v1763_v12  ;;  %vm1500_vm15 = vcmask 261120   ;;  %v1483_v30 = vadd.f32 %v1482_v37, %v1481_v5  ;;  %v1256_v16 = vadd.f32 %v1255_v25, %v1254_v52 }
 0x230   : > { %v1739_v17 = vadd.f32 %v1738_v7, %v1737_v59  ;;  %v1767_v32 = vsel %vm273_vm5, %v1763_v12, 0.0  ;;  %v1560_v31 = vsel %vm273_vm5, %v2958_v58, %v1462_v36  ;;  %v1222_v0 = vrot.slane %v1221_v22, 1 }
 0x231   : > { %v3002_v23 = vadd.f32 %v1227_v50, %v1226_v54  ;;  %v1499_v1 = vsel %vm273_vm5, %v1497_v61, %v1498_v19  ;;  %v1490_v29 = vadd.f32 %v1489_v46, %v1488_v35  ;;  %v1250_v15 = vrot.slane %v1249_v9, 2 }
 0x232   : > { %v1746_v26 = vadd.f32 %v1745_v21, %v1744_v4  ;;  %v1774_v6 = vsel %vm273_vm5, %v1765_v24, 0.0  ;;  %v3008_v44 = vsel %vm273_vm5, %v2962_v28, %v1721_v55  ;;  %v3012_v5 = vsel %vm273_vm5, %v2967_v49, %v1722_v60 }
 0x233   : > { %v1768_v58 = vrot.slane %v1767_v32, 4  ;;  %v1501_v54 = vsel %vm1500_vm15, %v1494_v48, %v1499_v1  ;;  %v1491_v56 = vsel %vm226_vm12, %v1483_v30, 0.0  ;;  %v1257_v2 = vrot.slane %v1256_v16, 2 }
 0x234   : > { %v1740_v52 = vrot.slane %v1739_v17, 2  ;;  %v1527_v39 = vrot.slane %v1524_v8, 4  ;;  %v3017_v36 = vadd.f32 %v1222_v0, %v1221_v22  ;;  %v1229_v20 = vrot.slane %v3002_v23, 1 }
 0x235   : > { %v1775_v28 = vrot.slane %v1774_v6, 4  ;;  %v1503_v35 = vmul.f32 %v2940_v62, %v1501_v54  ;;  %v1492_v49 = vsel %vm227_vm14, %v1490_v29, 0.0  ;;  %v3023_v47 = vadd.f32 %v1250_v15, %v1249_v9 }
 0x236   : > { %v1747_v48 = vrot.slane %v1746_v26, 2  ;;  %v1528_v3 = vrot.slane %v1526_v27, 4  ;;  %v3026_v50 = vsel %vm519_vm3, %v1559_v51, %v1491_v56  ;;  %v1769_v18 = vadd.f32 %v1768_v58, %v1767_v32  ;;  %v1786_v51 = vpop.permute.xlu0 %1785 }
 0x237   : > { %v1505_v59 = vcombine.high %v1503_v35, %v1503_v35  ;;  %vm1530_vm10 = vcmask 252928   ;;  %v3028_v22 = vadd.f32 %v1257_v2, %v1256_v16  ;;  %v1741_v37 = vadd.f32 %v1740_v52, %v1739_v17 }
 0x238   : > { %v1507_v25 = vsel %vm273_vm5, %v1503_v35, 0.0  ;;  %v1529_v61 = vsel %vm273_vm5, %v1527_v39, %v1528_v3  ;;  %v3033_v7 = vsel %vm519_vm3, %v1560_v31, %v1492_v49  ;;  %v1776_v4 = vadd.f32 %v1775_v28, %v1774_v6  ;;  %v1264_v6 = vpop.permute.xlu1 %1263 }
 0x239   : > { %v1508_v12 = vrot.slane %v1507_v25, 4  ;;  %v1514_v19 = vsel %vm273_vm5, %v1505_v59, 0.0  ;;  %v1252_v46 = vrot.slane %v3023_v47, 1  ;;  %v1748_v9 = vadd.f32 %v1747_v48, %v1746_v26 }
 0x23a   : > { %v1515_v21 = vrot.slane %v1514_v19, 4  ;;  %v1531_v55 = vsel %vm1530_vm10, %v1524_v8, %v1529_v61  ;;  %v1770_v60 = vrot.slane %v1769_v18, 2  ;;  %v1787_v16 = vrot.slane %v1784_v11, 4  ;;  %v1266_v39 = vpop.permute.xlu0 %1265 }
 0x23b   : > { %v1509_v24 = vadd.f32 %v1508_v12, %v1507_v25  ;;  %v1533_v30 = vmul.f32 %v2940_v62, %v1531_v55  ;;  %v1259_v17 = vrot.slane %v3028_v22, 1  ;;  %v1742_v32 = vrot.slane %v1741_v37, 1 }
 0x23c   : > { %v1516_v31 = vadd.f32 %v1515_v21, %v1514_v19  ;;  %v1788_v0 = vrot.slane %v1786_v51, 4  ;;  %v1777_v1 = vrot.slane %v1776_v4, 2  ;;  %vm1790_vm2 = vcmask 113664  }
 0x23d   : > { %v1510_v29 = vrot.slane %v1509_v24, 2  ;;  %v1535_v15 = vcombine.high %v1533_v30, %v1533_v30  ;;  %v1749_v58 = vrot.slane %v1748_v9, 1  ;;  %v1537_v26 = vsel %vm273_vm5, %v1533_v30, 0.0 }
 0x23e   : > { %v1517_v54 = vrot.slane %v1516_v31, 2  ;;  %v1789_v8 = vsel %vm273_vm5, %v1787_v16, %v1788_v0  ;;  %v1771_v27 = vadd.f32 %v1770_v60, %v1769_v18  ;;  %v1538_v2 = vrot.slane %v1537_v26, 4 }
 0x23f   : > { %v1511_v56 = vadd.f32 %v1510_v29, %v1509_v24  ;;  %v1544_v52 = vsel %vm273_vm5, %v1535_v15, 0.0  ;;  %v1791_v49 = vsel %vm1790_vm2, %v1784_v11, %v1789_v8  ;;  %v1267_v48 = vrot.slane %v1264_v6, 4 }
 0x240   : > { %v1518_v28 = vadd.f32 %v1517_v54, %v1516_v31  ;;  %v1545_v35 = vrot.slane %v1544_v52, 4  ;;  %v1743_v3 = vadd.f32 %v1742_v32, %v1741_v37  ;;  %v1778_v59 = vadd.f32 %v1777_v1, %v1776_v4 }
 0x241   : > { %v1539_v25 = vadd.f32 %v1538_v2, %v1537_v26  ;;  %v1793_v61 = vmul.f32 %v2940_v62, %v1791_v49  ;;  %v1512_v12 = vrot.slane %v1511_v56, 1  ;;  %vm1270_vm9 = vcmask 392192  }
 0x242   : > { %v1546_v19 = vadd.f32 %v1545_v35, %v1544_v52  ;;  %v1268_v51 = vrot.slane %v1266_v39, 4  ;;  %v1519_v21 = vrot.slane %v1518_v28, 1  ;;  %v1772_v24 = vrot.slane %v1771_v27, 1 }
 0x243   : > { %v1540_v18 = vrot.slane %v1539_v25, 2  ;;  %v1795_v55 = vcombine.high %v1793_v61, %v1793_v61  ;;  %v1797_v60 = vsel %vm273_vm5, %v1793_v61, 0.0  ;;  %v1779_v31 = vrot.slane %v1778_v59, 1 }
 0x244   : > { %v1547_v30 = vrot.slane %v1546_v19, 2  ;;  %v1798_v16 = vrot.slane %v1797_v60, 4  ;;  %v1269_v11 = vsel %vm273_vm5, %v1267_v48, %v1268_v51  ;;  %v1750_v0 = vadd.f32 %v1749_v58, %v1748_v9 }
 0x245   : > { %v1541_v37 = vadd.f32 %v1540_v18, %v1539_v25  ;;  %v1804_v4 = vsel %vm273_vm5, %v1795_v55, 0.0  ;;  %v1271_v32 = vsel %vm1270_vm9, %v1264_v6, %v1269_v11  ;;  %v1513_v54 = vadd.f32 %v1512_v12, %v1511_v56 }
 0x246   : > { %v1548_v1 = vadd.f32 %v1547_v30, %v1546_v19  ;;  %v1799_v29 = vadd.f32 %v1798_v16, %v1797_v60  ;;  %v1805_v15 = vrot.slane %v1804_v4, 4  ;;  %v1520_v26 = vadd.f32 %v1519_v21, %v1518_v28 }
 0x247   : > { %v1542_v8 = vrot.slane %v1541_v37, 1  ;;  %v1273_v2 = vmul.f32 %v2940_v62, %v1271_v32  ;;  %v1773_v52 = vadd.f32 %v1772_v24, %v1771_v27  ;;  %v1780_v61 = vadd.f32 %v1779_v31, %v1778_v59 }
 0x248   : > { %v1549_v39 = vrot.slane %v1548_v1, 1  ;;  %v1800_v35 = vrot.slane %v1799_v29, 2  ;;  %v1806_v49 = vadd.f32 %v1805_v15, %v1804_v4  ;;  %vm3218_vm13 = vcmask 1045504  }
 0x249   : > { %v1543_v48 = vadd.f32 %v1542_v8, %v1541_v37  ;;  %v1275_v51 = vcombine.high %v1273_v2, %v1273_v2  ;;  %v1277_v25 = vsel %vm273_vm5, %v1273_v2, 0.0  ;;  %v1563_v56 = vsel %vm3218_vm13, %v3026_v50, %v1513_v54  ;;  %vm3219_vm4 = vmmov %vm3218_vm13 }
 0x24a   : > { %v1550_v6 = vadd.f32 %v1549_v39, %v1548_v1  ;;  %v1801_v9 = vadd.f32 %v1800_v35, %v1799_v29  ;;  %v1807_v58 = vrot.slane %v1806_v49, 2  ;;  %v1278_v19 = vrot.slane %v1277_v25, 4  ;;  %vm3222_vm0 = vmmov %vm3219_vm4 }
 0x24b   : > { %v1564_v62 = vsel %vm3219_vm4, %v3033_v7, %v1520_v26  ;;  %v1551_v27 = vsel %vm242_vm1, %v1543_v48, 0.0  ;;  %v1284_v28 = vsel %vm273_vm5, %v1275_v51, 0.0  ;;  %vm3220_vm8 = vcmp.lt.s32.totalorder %v2254_v42, 16  ;;  %vm3225_vm2 = vmmov %vm3222_vm0 }
 0x24c   : > { %v1552_v59 = vsel %vm3220_vm8, %v1550_v6, 0.0  ;;  %v1565_v12 = vsel %vm525_vm7, %v1563_v56, %v1551_v27  ;;  %v1802_v21 = vrot.slane %v1801_v9, 1  ;;  %v1808_v18 = vadd.f32 %v1807_v58, %v1806_v49  ;;  %vm3229_vm13 = vmmov %vm3222_vm0 }
 0x24d   : > { %v1781_v55 = vsel %vm242_vm1, %v1773_v52, 0.0  ;;  %v1566_v50 = vsel %vm525_vm7, %v1564_v62, %v1552_v59  ;;  %1567 = vst [vmem:[%s2593_s22 + $0x40] sm:$0xff] %v1565_v12  ;;  %v1279_v60 = vadd.f32 %v1278_v19, %v1277_v25  ;;  %v1285_v7 = vrot.slane %v1284_v28, 4  ;;  %vm3221_vm1 = vmmov %vm3220_vm8 }
 0x24e   : > { %v1230_v24 = vadd.f32 %v1229_v20, %v3002_v23  ;;  %v1253_v30 = vadd.f32 %v1252_v46, %v3023_v47  ;;  %1568 = vst [vmem:[%s2593_s22 + $0x48] sm:$0xff] %v1566_v50  ;;  %v1803_v16 = vadd.f32 %v1802_v21, %v1801_v9  ;;  %v1809_v11 = vrot.slane %v1808_v18, 1 }
 0x24f   : > { %v1821_v41 = vsel %vm519_vm3, %v3008_v44, %v1743_v3  ;;  %v1782_v31 = vsel %vm3221_vm1, %v1780_v61, 0.0  ;;  %v1280_v37 = vrot.slane %v1279_v60, 2  ;;  %v1286_v4 = vadd.f32 %v1285_v7, %v1284_v28 }
 0x250   : > { %v1260_v23 = vadd.f32 %v1259_v17, %v3028_v22  ;;  %v1823_v20 = vsel %vm3222_vm0, %v1821_v41, %v1781_v55  ;;  %v1810_v32 = vadd.f32 %v1809_v11, %v1808_v18  ;;  %v1811_v47 = vsel %vm250_vm6, %v1803_v16, 0.0 }
 0x251   : > { %v1822_v46 = vsel %vm519_vm3, %v3012_v5, %v1750_v0  ;;  %v1825_v42 = vsel %vm525_vm7, %v1823_v20, %v1811_v47  ;;  %v1281_v44 = vadd.f32 %v1280_v37, %v1279_v60  ;;  %v1287_v3 = vrot.slane %v1286_v4, 2 }
 0x252   : > { %vm3223_vm15 = vcmp.ge.s32.totalorder %v2271_v53, 0  ;;  %vm3224_vm10 = vcmp.ge.s32.totalorder %v2239_v33, 0  ;;  %v1824_v17 = vsel %vm3225_vm2, %v1822_v46, %v1782_v31  ;;  %vm3226_vm6 = vcmp.lt.s32.totalorder %v2259_v45, 16  ;;  %1827 = vst [vmem:[%s2593_s22 + $0x50] sm:$0xff] %v1825_v42 }
 0x253   : > { %v1202_v1 = vsel %vm3223_vm15, %v2970_v13, 0.0  ;;  %v1231_v22 = vsel %vm3224_vm10, %v3017_v36, 0.0  ;;  %v1812_v43 = vsel %vm3226_vm6, %v1810_v32, 0.0  ;;  %v1261_v5 = vsel %vm226_vm12, %v1253_v30, 0.0  ;;  %vm3228_vm12 = vmmov %vm3222_vm0 }
 0x254   : > { %v1826_v0 = vsel %vm525_vm7, %v1824_v17, %v1812_v43  ;;  %v1282_v29 = vrot.slane %v1281_v44, 1  ;;  %v1288_v15 = vadd.f32 %v1287_v3, %v1286_v4  ;;  %vm3227_vm9 = vcmask 1042432  }
 0x255   : > { %v1298_v53 = vsel %vm3227_vm9, %v2873_v14, %v2950_v63  ;;  %v1299_v33 = vsel %vm273_vm5, %v2933_v57, %v2980_v10  ;;  %v1232_v45 = vsel %vm219_vm11, %v1230_v24, 0.0  ;;  %1828 = vst [vmem:[%s2593_s22 + $0x58] sm:$0xff] %v1826_v0  ;;  %v1262_v13 = vsel %vm227_vm14, %v1260_v23, 0.0 }
 0x256   : > { %v1301_v38 = vsel %vm519_vm3, %v1299_v33, %v1231_v22  ;;  %v1283_v36 = vadd.f32 %v1282_v29, %v1281_v44  ;;  %v1289_v54 = vrot.slane %v1288_v15, 1  ;;  %v1300_v26 = vsel %vm273_vm5, %v1298_v53, %v1202_v1 }
 0x257   : > { %v1303_v14 = vsel %vm3228_vm12, %v1301_v38, %v1261_v5  ;;  %v1302_v63 = vsel %vm519_vm3, %v1300_v26, %v1232_v45 }
 0x258   : > { %v1290_v8 = vadd.f32 %v1289_v54, %v1288_v15  ;;  %v1305_v57 = vsel %vm525_vm7, %v1303_v14, %v1283_v36  ;;  %v1304_v34 = vsel %vm3229_vm13, %v1302_v63, %v1262_v13 }
 0x259   : > { %1307 = vst [vmem:[%s2593_s22 + $0x30] sm:$0xff] %v1305_v57 }
 0x25a   : > { %v1306_v10 = vsel %vm525_vm7, %v1304_v34, %v1290_v8 }
 0x25b   : > { %1308 = vst [vmem:[%s2593_s22 + $0x38] sm:$0xff] %v1306_v10 }
 0x25c PF: > { %s12_s9 = sadd.s32 1, %s2038_s9  }
 0x25d   : > { %p9_p4 = scmp.ge.s32.totalorder %s12_s9, 4  }
 0x25f   :  { %11 = sbr.rel (!%p9_p4) target bundleno = 1 (0x1), region = 62 }

</bundles_post_ra>
